<compile_context>
chip_gen: v6e
topology: v6e:2x2x1
jax: 0.10.0
libtpu: 0.0.40
codegen_flags: <defaults>
</compile_context>

<pallas_src>
import math

import jax
import jax.numpy as jnp
from jax.experimental import pallas as pl
from jax.experimental.pallas import tpu as pltpu

_LANE = 128      # vreg lane width  (last-dim tiling)
_SUBLANE = 8     # vreg sublane count (second-to-last-dim tiling)


def _round_up(x, m):
    return ((x + m - 1) // m) * m


# ----------------------------------------------------------------------------
# Fused kernel: LstmBlock(E,H) -> LstmBlock(H,H) -> Linear(H,O).
# Whole sequence handled in a single grid step; everything VMEM-resident.
# ----------------------------------------------------------------------------
def shopping_lstm_kernel(x_ref,                        # (S*Bp, E)  bf16, rows ordered t*Bp + b
                         wih0_ref, whh0_ref, b0_ref,   # (E,4Hp) (Hp,4Hp) bf16, (1,4Hp) f32
                         wih1_ref, whh1_ref, b1_ref,   # (Hp,4Hp) (Hp,4Hp) bf16, (1,4Hp) f32
                         wfc_ref, bfc_ref,             # (Hp,Op) bf16, (1,Op) f32
                         out_ref):                     # (Bp, Op) f32
    Bp, _ = out_ref.shape
    Hp = whh0_ref.shape[0]
    T = x_ref.shape[0] // Bp

    def lstm_cell(z, c_prev):
        # gate order i, f, g, o; each slice is a whole 128-lane-aligned tile (Hp=128k).
        i_g = jax.nn.sigmoid(z[:, 0 * Hp:1 * Hp])
        f_g = jax.nn.sigmoid(z[:, 1 * Hp:2 * Hp])
        g_g = jnp.tanh(z[:, 2 * Hp:3 * Hp])
        o_g = jax.nn.sigmoid(z[:, 3 * Hp:4 * Hp])
        c_new = f_g * c_prev + i_g * g_g
        h_new = o_g * jnp.tanh(c_new)
        return h_new, c_new

    # ---- layer 1: hoisted time-parallel input projection, one (T*Bp)-row MXU matmul
    z1_in = (jnp.dot(x_ref[...], wih0_ref[...],
                     preferred_element_type=jnp.float32)
             + b0_ref[...])                               # (T*Bp, 4Hp) f32

    # ---- layer 1 recurrence (short static loop, fully unrolled) ----
    h = jnp.zeros((Bp, Hp), jnp.float32)
    c = jnp.zeros((Bp, Hp), jnp.float32)
    h1_steps = []
    for t in range(T):
        z = (z1_in[t * Bp:(t + 1) * Bp, :]
             + jnp.dot(h.astype(jnp.bfloat16), whh0_ref[...],
                       preferred_element_type=jnp.float32))
        h, c = lstm_cell(z, c)
        h1_steps.append(h)

    # ---- layer 2: hoisted time-parallel input projection over layer-1's hidden
    # sequence (which stays in VMEM, never written to HBM).
    h1_seq = jnp.concatenate(h1_steps, axis=0)            # (T*Bp, Hp) f32
    z2_in = (jnp.dot(h1_seq.astype(jnp.bfloat16), wih1_ref[...],
                     preferred_element_type=jnp.float32)
             + b1_ref[...])                               # (T*Bp, 4Hp) f32

    # ---- layer 2 recurrence; (h, c) carry over from layer 1's final state, matching
    # the module's dict threading of {'h_t','c_t'} through nn.Sequential.
    # TODO(synk): LstmBlock source not provided; a standard stacked LSTM would
    # zero-seed layer 2's state instead.
    for t in range(T):
        z = (z2_in[t * Bp:(t + 1) * Bp, :]
             + jnp.dot(h.astype(jnp.bfloat16), whh1_ref[...],
                       preferred_element_type=jnp.float32))
        h, c = lstm_cell(z, c)

    # ---- FC head on the final hidden state; Op padded to 128 -> lane-dense store ----
    out_ref[...] = (jnp.dot(h.astype(jnp.bfloat16), wfc_ref[...],
                            preferred_element_type=jnp.float32)
                    + bfc_ref[...]).astype(out_ref.dtype)


# ----------------------------------------------------------------------------
# One-time parameter layout prep: pad H/O to lane multiples (exact zero padding)
# and cast the big weight matrices to bf16 for the MXU. Biases stay f32.
# ----------------------------------------------------------------------------
def _pad_gate_cols(w, H, Hp):
    """Pad each of the 4 gate blocks along the last (4*H) axis from H to Hp columns."""
    lead = w.shape[:-1]
    w4 = w.reshape(lead + (4, H))
    pads = [(0, 0)] * (len(lead) + 1) + [(0, Hp - H)]
    return jnp.pad(w4, pads).reshape(lead + (4 * Hp,))


def prepare_params(params, H, O):
    Hp = _round_up(H, _LANE)
    Op = _round_up(O, _LANE)

    def rec_w(w, pad_rows=None):
        w = _pad_gate_cols(w, H, Hp)
        if pad_rows is not None:
            w = jnp.pad(w, ((0, pad_rows - w.shape[0]), (0, 0)))
        return w.astype(jnp.bfloat16)

    return {
        "emb":    params["emb"],
        "w_ih_0": rec_w(params["w_ih_0"]),                  # (E, 4Hp)  bf16
        "w_hh_0": rec_w(params["w_hh_0"], Hp),              # (Hp, 4Hp) bf16
        "b_0":    _pad_gate_cols(params["b_0"], H, Hp),     # (1, 4Hp)  f32
        "w_ih_1": rec_w(params["w_ih_1"], Hp),              # (Hp, 4Hp) bf16
        "w_hh_1": rec_w(params["w_hh_1"], Hp),              # (Hp, 4Hp) bf16
        "b_1":    _pad_gate_cols(params["b_1"], H, Hp),     # (1, 4Hp)  f32
        "w_fc":   jnp.pad(params["w_fc"],
                          ((0, Hp - H), (0, Op - O))).astype(jnp.bfloat16),
        "b_fc":   jnp.pad(params["b_fc"].reshape(1, O), ((0, 0), (0, Op - O))),
    }


# ----------------------------------------------------------------------------
# Full forward pass.
# ----------------------------------------------------------------------------
def shopping_lstm_forward(token_ids, prepared, output_sz):
    B, S = token_ids.shape
    E = prepared["emb"].shape[1]
    Hp = prepared["w_hh_0"].shape[0]
    Op = prepared["w_fc"].shape[1]
    Bp = _round_up(B, _SUBLANE)

    ids = token_ids
    if Bp != B:
        ids = jnp.pad(ids, ((0, Bp - B), (0, 0)))   # padded rows compute throwaway values

    # Embedding gather (plain-JAX glue) directly in time-major (S, Bp, E) order:
    # only the tiny int32 index array is transposed, never the embedded activations.
    x = jnp.take(prepared["emb"], ids.T, axis=0).reshape(S * Bp, E)
    x = x.astype(jnp.bfloat16)

    grid_spec = pltpu.PrefetchScalarGridSpec(
        num_scalar_prefetch=0,
        grid=(1,),                         # whole sequence in one grid step
        in_specs=[
            pl.BlockSpec((S * Bp, E), lambda i: (0, 0)),     # x, time-major rows
            pl.BlockSpec((E, 4 * Hp), lambda i: (0, 0)),     # W_ih layer 1
            pl.BlockSpec((Hp, 4 * Hp), lambda i: (0, 0)),    # W_hh layer 1
            pl.BlockSpec((1, 4 * Hp), lambda i: (0, 0)),     # bias  layer 1
            pl.BlockSpec((Hp, 4 * Hp), lambda i: (0, 0)),    # W_ih layer 2
            pl.BlockSpec((Hp, 4 * Hp), lambda i: (0, 0)),    # W_hh layer 2
            pl.BlockSpec((1, 4 * Hp), lambda i: (0, 0)),     # bias  layer 2
            pl.BlockSpec((Hp, Op), lambda i: (0, 0)),        # W_fc
            pl.BlockSpec((1, Op), lambda i: (0, 0)),         # b_fc
        ],
        out_specs=pl.BlockSpec((Bp, Op), lambda i: (0, 0)),
    )
    out = pl.pallas_call(
        shopping_lstm_kernel,
        out_shape=jax.ShapeDtypeStruct((Bp, Op), jnp.float32),
        grid_spec=grid_spec,
        compiler_params=pltpu.CompilerParams(
            dimension_semantics=("arbitrary",)),
    )(x, prepared["w_ih_0"], prepared["w_hh_0"], prepared["b_0"],
      prepared["w_ih_1"], prepared["w_hh_1"], prepared["b_1"],
      prepared["w_fc"], prepared["b_fc"])
    return out[:B, :output_sz]


# ----------------------------------------------------------------------------
# Parameters (deterministic init, PyTorch-style uniform(-1/sqrt(H), 1/sqrt(H)))
# ----------------------------------------------------------------------------
def init_params(key, E, H, O, V):
    ks = jax.random.split(key, 9)

    def u(k, shape, bound):
        return jax.random.uniform(k, shape, jnp.float32, -bound, bound)

    s = 1.0 / math.sqrt(H)
    return {
        "w_ih_0": u(ks[0], (E, 4 * H), s),
        "w_hh_0": u(ks[1], (H, 4 * H), s),
        "b_0":    u(ks[2], (1, 4 * H), s),
        "w_ih_1": u(ks[3], (H, 4 * H), s),
        "w_hh_1": u(ks[4], (H, 4 * H), s),
        "b_1":    u(ks[5], (1, 4 * H), s),
        "w_fc":   u(ks[6], (H, O), s),
        "b_fc":   u(ks[7], (O,), s),
        "emb":    jax.random.normal(ks[8], (V, E), jnp.float32),
    }


# ----------------------------------------------------------------------------
# Pure-JAX reference with the same bf16-weight / f32-gate numerics as the kernel.
# ----------------------------------------------------------------------------
def reference_forward(token_ids, params, H, O):
    def mm(a, b):
        return jnp.dot(a.astype(jnp.bfloat16).astype(jnp.float32),
                       b.astype(jnp.bfloat16).astype(jnp.float32))

    def layer(x_seq, w_ih, w_hh, b, h, c):
        hs = []
        for t in range(x_seq.shape[1]):
            z = mm(x_seq[:, t, :], w_ih) + mm(h, w_hh) + b
            i = jax.nn.sigmoid(z[:, 0 * H:1 * H])
            f = jax.nn.sigmoid(z[:, 1 * H:2 * H])
            g = jnp.tanh(z[:, 2 * H:3 * H])
            o = jax.nn.sigmoid(z[:, 3 * H:4 * H])
            c = f * c + i * g
            h = o * jnp.tanh(c)
            hs.append(h)
        return jnp.stack(hs, axis=1), h, c

    emb = jnp.take(params["emb"], token_ids, axis=0)          # (B, S, E)
    B = token_ids.shape[0]
    h0 = jnp.zeros((B, H), jnp.float32)
    c0 = jnp.zeros((B, H), jnp.float32)
    hseq1, h1, c1 = layer(emb, params["w_ih_0"], params["w_hh_0"], params["b_0"], h0, c0)
    _, h2, _ = layer(hseq1, params["w_ih_1"], params["w_hh_1"], params["b_1"], h1, c1)
    return mm(h2, params["w_fc"]) + params["b_fc"].reshape(1, O)


if __name__ == "__main__":
    B, S = 2, 8           # batch, sequence length
    V, E = 16, 8          # vocab size, embedding dim (input_size)
    H, O = 32, 4          # hidden_sz, output_sz

    key = jax.random.PRNGKey(0)
    k_ids, k_params = jax.random.split(key)
    params = init_params(k_params, E, H, O, V)
    token_ids = jax.random.randint(k_ids, (B, S), 0, V, dtype=jnp.int32)

    prepared = prepare_params(params, H, O)
    out = shopping_lstm_forward(token_ids, prepared, O)
    jax.block_until_ready(out)
    assert out.shape == (B, O), out.shape

    ref = reference_forward(token_ids, params, H, O)
    assert bool(jnp.allclose(out, ref, atol=5e-2, rtol=5e-2)), (out, ref)
    print("KERNEL_OK")
</pallas_src>

<mosaic_0001>
module attributes {stable_mosaic.version = 11 : i64} {
  func.func @shopping_lstm_kernel(%arg0: i32, %arg1: memref<64x8xbf16, #tpu.memory_space<vmem>>, %arg2: memref<8x512xbf16, #tpu.memory_space<vmem>>, %arg3: memref<128x512xbf16, #tpu.memory_space<vmem>>, %arg4: memref<1x512xf32, #tpu.memory_space<vmem>>, %arg5: memref<128x512xbf16, #tpu.memory_space<vmem>>, %arg6: memref<128x512xbf16, #tpu.memory_space<vmem>>, %arg7: memref<1x512xf32, #tpu.memory_space<vmem>>, %arg8: memref<128x128xbf16, #tpu.memory_space<vmem>>, %arg9: memref<1x128xf32, #tpu.memory_space<vmem>>, %arg10: memref<8x128xf32, #tpu.memory_space<vmem>>) attributes {dimension_semantics = [#tpu.dimension_semantics<arbitrary>], iteration_bounds = array<i64: 1>, scalar_prefetch = 0 : i64, scratch_operands = 0 : i64, tpu.core_type = #tpu.core_type<tc>, window_params = [{pipeline_mode = #tpu.pipeline_mode<synchronous>, transform_indices = @transform_0, window_bounds = array<i64: 64, 8>}, {pipeline_mode = #tpu.pipeline_mode<synchronous>, transform_indices = @transform_1, window_bounds = array<i64: 8, 512>}, {pipeline_mode = #tpu.pipeline_mode<synchronous>, transform_indices = @transform_2, window_bounds = array<i64: 128, 512>}, {pipeline_mode = #tpu.pipeline_mode<synchronous>, transform_indices = @transform_3, window_bounds = array<i64: 1, 512>}, {pipeline_mode = #tpu.pipeline_mode<synchronous>, transform_indices = @transform_4, window_bounds = array<i64: 128, 512>}, {pipeline_mode = #tpu.pipeline_mode<synchronous>, transform_indices = @transform_5, window_bounds = array<i64: 128, 512>}, {pipeline_mode = #tpu.pipeline_mode<synchronous>, transform_indices = @transform_6, window_bounds = array<i64: 1, 512>}, {pipeline_mode = #tpu.pipeline_mode<synchronous>, transform_indices = @transform_7, window_bounds = array<i64: 128, 128>}, {pipeline_mode = #tpu.pipeline_mode<synchronous>, transform_indices = @transform_8, window_bounds = array<i64: 1, 128>}, {pipeline_mode = #tpu.pipeline_mode<synchronous>, transform_indices = @transform_9, window_bounds = array<i64: 8, 128>}]} {
    %c0 = arith.constant 0 : index
    %c0_0 = arith.constant 0 : index
    %0 = vector.load %arg1[%c0, %c0_0] : memref<64x8xbf16, #tpu.memory_space<vmem>>, vector<64x8xbf16>
    %c0_1 = arith.constant 0 : index
    %c0_2 = arith.constant 0 : index
    %1 = vector.load %arg2[%c0_1, %c0_2] : memref<8x512xbf16, #tpu.memory_space<vmem>>, vector<8x512xbf16>
    %cst = arith.constant dense<0.000000e+00> : vector<64x512xf32>
    %2 = tpu.matmul %0, %1, %cst {dimension_numbers = #tpu.dot_dimension_numbers<[1], [0], [0], [1], [0, 0, 1, 1], [], []>} : vector<64x8xbf16>, vector<8x512xbf16>, vector<64x512xf32> -> vector<64x512xf32>
    %c0_3 = arith.constant 0 : index
    %c0_4 = arith.constant 0 : index
    %3 = vector.load %arg4[%c0_3, %c0_4] : memref<1x512xf32, #tpu.memory_space<vmem>>, vector<1x512xf32>
    %4 = vector.broadcast %3 : vector<1x512xf32> to vector<64x512xf32>
    %5 = arith.addf %2, %4 : vector<64x512xf32>
    %cst_5 = arith.constant 0.000000e+00 : f32
    %6 = vector.broadcast %cst_5 : f32 to vector<8x128xf32>
    %cst_6 = arith.constant 0.000000e+00 : f32
    %7 = vector.broadcast %cst_6 : f32 to vector<8x128xf32>
    %8 = vector.extract_strided_slice %5 {offsets = [0, 0], sizes = [8, 512], strides = [1, 1]} : vector<64x512xf32> to vector<8x512xf32>
    %9 = arith.truncf %6 : vector<8x128xf32> to vector<8x128xbf16>
    %c0_7 = arith.constant 0 : index
    %c0_8 = arith.constant 0 : index
    %10 = vector.load %arg3[%c0_7, %c0_8] : memref<128x512xbf16, #tpu.memory_space<vmem>>, vector<128x512xbf16>
    %cst_9 = arith.constant dense<0.000000e+00> : vector<8x512xf32>
    %11 = tpu.matmul %9, %10, %cst_9 {dimension_numbers = #tpu.dot_dimension_numbers<[1], [0], [0], [1], [0, 0, 1, 1], [], []>} : vector<8x128xbf16>, vector<128x512xbf16>, vector<8x512xf32> -> vector<8x512xf32>
    %12 = arith.addf %8, %11 : vector<8x512xf32>
    %13 = vector.extract_strided_slice %12 {offsets = [0, 0], sizes = [8, 128], strides = [1, 1]} : vector<8x512xf32> to vector<8x128xf32>
    %14 = arith.negf %13 : vector<8x128xf32>
    %15 = math.exp %14 : vector<8x128xf32>
    %cst_10 = arith.constant 1.000000e+00 : f32
    %16 = vector.broadcast %cst_10 : f32 to vector<8x128xf32>
    %17 = arith.addf %16, %15 : vector<8x128xf32>
    %18 = arith.divf %16, %17 : vector<8x128xf32>
    %19 = vector.extract_strided_slice %12 {offsets = [0, 128], sizes = [8, 128], strides = [1, 1]} : vector<8x512xf32> to vector<8x128xf32>
    %20 = arith.negf %19 : vector<8x128xf32>
    %21 = math.exp %20 : vector<8x128xf32>
    %cst_11 = arith.constant 1.000000e+00 : f32
    %22 = vector.broadcast %cst_11 : f32 to vector<8x128xf32>
    %23 = arith.addf %22, %21 : vector<8x128xf32>
    %24 = arith.divf %22, %23 : vector<8x128xf32>
    %25 = vector.extract_strided_slice %12 {offsets = [0, 256], sizes = [8, 128], strides = [1, 1]} : vector<8x512xf32> to vector<8x128xf32>
    %26 = math.tanh %25 : vector<8x128xf32>
    %27 = vector.extract_strided_slice %12 {offsets = [0, 384], sizes = [8, 128], strides = [1, 1]} : vector<8x512xf32> to vector<8x128xf32>
    %28 = arith.negf %27 : vector<8x128xf32>
    %29 = math.exp %28 : vector<8x128xf32>
    %cst_12 = arith.constant 1.000000e+00 : f32
    %30 = vector.broadcast %cst_12 : f32 to vector<8x128xf32>
    %31 = arith.addf %30, %29 : vector<8x128xf32>
    %32 = arith.divf %30, %31 : vector<8x128xf32>
    %33 = arith.mulf %24, %7 : vector<8x128xf32>
    %34 = arith.mulf %18, %26 : vector<8x128xf32>
    %35 = arith.addf %33, %34 : vector<8x128xf32>
    %36 = math.tanh %35 : vector<8x128xf32>
    %37 = arith.mulf %32, %36 : vector<8x128xf32>
    %38 = vector.extract_strided_slice %5 {offsets = [8, 0], sizes = [8, 512], strides = [1, 1]} : vector<64x512xf32> to vector<8x512xf32>
    %39 = arith.truncf %37 : vector<8x128xf32> to vector<8x128xbf16>
    %c0_13 = arith.constant 0 : index
    %c0_14 = arith.constant 0 : index
    %40 = vector.load %arg3[%c0_13, %c0_14] : memref<128x512xbf16, #tpu.memory_space<vmem>>, vector<128x512xbf16>
    %cst_15 = arith.constant dense<0.000000e+00> : vector<8x512xf32>
    %41 = tpu.matmul %39, %40, %cst_15 {dimension_numbers = #tpu.dot_dimension_numbers<[1], [0], [0], [1], [0, 0, 1, 1], [], []>} : vector<8x128xbf16>, vector<128x512xbf16>, vector<8x512xf32> -> vector<8x512xf32>
    %42 = arith.addf %38, %41 : vector<8x512xf32>
    %43 = vector.extract_strided_slice %42 {offsets = [0, 0], sizes = [8, 128], strides = [1, 1]} : vector<8x512xf32> to vector<8x128xf32>
    %44 = arith.negf %43 : vector<8x128xf32>
    %45 = math.exp %44 : vector<8x128xf32>
    %cst_16 = arith.constant 1.000000e+00 : f32
    %46 = vector.broadcast %cst_16 : f32 to vector<8x128xf32>
    %47 = arith.addf %46, %45 : vector<8x128xf32>
    %48 = arith.divf %46, %47 : vector<8x128xf32>
    %49 = vector.extract_strided_slice %42 {offsets = [0, 128], sizes = [8, 128], strides = [1, 1]} : vector<8x512xf32> to vector<8x128xf32>
    %50 = arith.negf %49 : vector<8x128xf32>
    %51 = math.exp %50 : vector<8x128xf32>
    %cst_17 = arith.constant 1.000000e+00 : f32
    %52 = vector.broadcast %cst_17 : f32 to vector<8x128xf32>
    %53 = arith.addf %52, %51 : vector<8x128xf32>
    %54 = arith.divf %52, %53 : vector<8x128xf32>
    %55 = vector.extract_strided_slice %42 {offsets = [0, 256], sizes = [8, 128], strides = [1, 1]} : vector<8x512xf32> to vector<8x128xf32>
    %56 = math.tanh %55 : vector<8x128xf32>
    %57 = vector.extract_strided_slice %42 {offsets = [0, 384], sizes = [8, 128], strides = [1, 1]} : vector<8x512xf32> to vector<8x128xf32>
    %58 = arith.negf %57 : vector<8x128xf32>
    %59 = math.exp %58 : vector<8x128xf32>
    %cst_18 = arith.constant 1.000000e+00 : f32
    %60 = vector.broadcast %cst_18 : f32 to vector<8x128xf32>
    %61 = arith.addf %60, %59 : vector<8x128xf32>
    %62 = arith.divf %60, %61 : vector<8x128xf32>
    %63 = arith.mulf %54, %35 : vector<8x128xf32>
    %64 = arith.mulf %48, %56 : vector<8x128xf32>
    %65 = arith.addf %63, %64 : vector<8x128xf32>
    %66 = math.tanh %65 : vector<8x128xf32>
    %67 = arith.mulf %62, %66 : vector<8x128xf32>
    %68 = vector.extract_strided_slice %5 {offsets = [16, 0], sizes = [8, 512], strides = [1, 1]} : vector<64x512xf32> to vector<8x512xf32>
    %69 = arith.truncf %67 : vector<8x128xf32> to vector<8x128xbf16>
    %c0_19 = arith.constant 0 : index
    %c0_20 = arith.constant 0 : index
    %70 = vector.load %arg3[%c0_19, %c0_20] : memref<128x512xbf16, #tpu.memory_space<vmem>>, vector<128x512xbf16>
    %cst_21 = arith.constant dense<0.000000e+00> : vector<8x512xf32>
    %71 = tpu.matmul %69, %70, %cst_21 {dimension_numbers = #tpu.dot_dimension_numbers<[1], [0], [0], [1], [0, 0, 1, 1], [], []>} : vector<8x128xbf16>, vector<128x512xbf16>, vector<8x512xf32> -> vector<8x512xf32>
    %72 = arith.addf %68, %71 : vector<8x512xf32>
    %73 = vector.extract_strided_slice %72 {offsets = [0, 0], sizes = [8, 128], strides = [1, 1]} : vector<8x512xf32> to vector<8x128xf32>
    %74 = arith.negf %73 : vector<8x128xf32>
    %75 = math.exp %74 : vector<8x128xf32>
    %cst_22 = arith.constant 1.000000e+00 : f32
    %76 = vector.broadcast %cst_22 : f32 to vector<8x128xf32>
    %77 = arith.addf %76, %75 : vector<8x128xf32>
    %78 = arith.divf %76, %77 : vector<8x128xf32>
    %79 = vector.extract_strided_slice %72 {offsets = [0, 128], sizes = [8, 128], strides = [1, 1]} : vector<8x512xf32> to vector<8x128xf32>
    %80 = arith.negf %79 : vector<8x128xf32>
    %81 = math.exp %80 : vector<8x128xf32>
    %cst_23 = arith.constant 1.000000e+00 : f32
    %82 = vector.broadcast %cst_23 : f32 to vector<8x128xf32>
    %83 = arith.addf %82, %81 : vector<8x128xf32>
    %84 = arith.divf %82, %83 : vector<8x128xf32>
    %85 = vector.extract_strided_slice %72 {offsets = [0, 256], sizes = [8, 128], strides = [1, 1]} : vector<8x512xf32> to vector<8x128xf32>
    %86 = math.tanh %85 : vector<8x128xf32>
    %87 = vector.extract_strided_slice %72 {offsets = [0, 384], sizes = [8, 128], strides = [1, 1]} : vector<8x512xf32> to vector<8x128xf32>
    %88 = arith.negf %87 : vector<8x128xf32>
    %89 = math.exp %88 : vector<8x128xf32>
    %cst_24 = arith.constant 1.000000e+00 : f32
    %90 = vector.broadcast %cst_24 : f32 to vector<8x128xf32>
    %91 = arith.addf %90, %89 : vector<8x128xf32>
    %92 = arith.divf %90, %91 : vector<8x128xf32>
    %93 = arith.mulf %84, %65 : vector<8x128xf32>
    %94 = arith.mulf %78, %86 : vector<8x128xf32>
    %95 = arith.addf %93, %94 : vector<8x128xf32>
    %96 = math.tanh %95 : vector<8x128xf32>
    %97 = arith.mulf %92, %96 : vector<8x128xf32>
    %98 = vector.extract_strided_slice %5 {offsets = [24, 0], sizes = [8, 512], strides = [1, 1]} : vector<64x512xf32> to vector<8x512xf32>
    %99 = arith.truncf %97 : vector<8x128xf32> to vector<8x128xbf16>
    %c0_25 = arith.constant 0 : index
    %c0_26 = arith.constant 0 : index
    %100 = vector.load %arg3[%c0_25, %c0_26] : memref<128x512xbf16, #tpu.memory_space<vmem>>, vector<128x512xbf16>
    %cst_27 = arith.constant dense<0.000000e+00> : vector<8x512xf32>
    %101 = tpu.matmul %99, %100, %cst_27 {dimension_numbers = #tpu.dot_dimension_numbers<[1], [0], [0], [1], [0, 0, 1, 1], [], []>} : vector<8x128xbf16>, vector<128x512xbf16>, vector<8x512xf32> -> vector<8x512xf32>
    %102 = arith.addf %98, %101 : vector<8x512xf32>
    %103 = vector.extract_strided_slice %102 {offsets = [0, 0], sizes = [8, 128], strides = [1, 1]} : vector<8x512xf32> to vector<8x128xf32>
    %104 = arith.negf %103 : vector<8x128xf32>
    %105 = math.exp %104 : vector<8x128xf32>
    %cst_28 = arith.constant 1.000000e+00 : f32
    %106 = vector.broadcast %cst_28 : f32 to vector<8x128xf32>
    %107 = arith.addf %106, %105 : vector<8x128xf32>
    %108 = arith.divf %106, %107 : vector<8x128xf32>
    %109 = vector.extract_strided_slice %102 {offsets = [0, 128], sizes = [8, 128], strides = [1, 1]} : vector<8x512xf32> to vector<8x128xf32>
    %110 = arith.negf %109 : vector<8x128xf32>
    %111 = math.exp %110 : vector<8x128xf32>
    %cst_29 = arith.constant 1.000000e+00 : f32
    %112 = vector.broadcast %cst_29 : f32 to vector<8x128xf32>
    %113 = arith.addf %112, %111 : vector<8x128xf32>
    %114 = arith.divf %112, %113 : vector<8x128xf32>
    %115 = vector.extract_strided_slice %102 {offsets = [0, 256], sizes = [8, 128], strides = [1, 1]} : vector<8x512xf32> to vector<8x128xf32>
    %116 = math.tanh %115 : vector<8x128xf32>
    %117 = vector.extract_strided_slice %102 {offsets = [0, 384], sizes = [8, 128], strides = [1, 1]} : vector<8x512xf32> to vector<8x128xf32>
    %118 = arith.negf %117 : vector<8x128xf32>
    %119 = math.exp %118 : vector<8x128xf32>
    %cst_30 = arith.constant 1.000000e+00 : f32
    %120 = vector.broadcast %cst_30 : f32 to vector<8x128xf32>
    %121 = arith.addf %120, %119 : vector<8x128xf32>
    %122 = arith.divf %120, %121 : vector<8x128xf32>
    %123 = arith.mulf %114, %95 : vector<8x128xf32>
    %124 = arith.mulf %108, %116 : vector<8x128xf32>
    %125 = arith.addf %123, %124 : vector<8x128xf32>
    %126 = math.tanh %125 : vector<8x128xf32>
    %127 = arith.mulf %122, %126 : vector<8x128xf32>
    %128 = vector.extract_strided_slice %5 {offsets = [32, 0], sizes = [8, 512], strides = [1, 1]} : vector<64x512xf32> to vector<8x512xf32>
    %129 = arith.truncf %127 : vector<8x128xf32> to vector<8x128xbf16>
    %c0_31 = arith.constant 0 : index
    %c0_32 = arith.constant 0 : index
    %130 = vector.load %arg3[%c0_31, %c0_32] : memref<128x512xbf16, #tpu.memory_space<vmem>>, vector<128x512xbf16>
    %cst_33 = arith.constant dense<0.000000e+00> : vector<8x512xf32>
    %131 = tpu.matmul %129, %130, %cst_33 {dimension_numbers = #tpu.dot_dimension_numbers<[1], [0], [0], [1], [0, 0, 1, 1], [], []>} : vector<8x128xbf16>, vector<128x512xbf16>, vector<8x512xf32> -> vector<8x512xf32>
    %132 = arith.addf %128, %131 : vector<8x512xf32>
    %133 = vector.extract_strided_slice %132 {offsets = [0, 0], sizes = [8, 128], strides = [1, 1]} : vector<8x512xf32> to vector<8x128xf32>
    %134 = arith.negf %133 : vector<8x128xf32>
    %135 = math.exp %134 : vector<8x128xf32>
    %cst_34 = arith.constant 1.000000e+00 : f32
    %136 = vector.broadcast %cst_34 : f32 to vector<8x128xf32>
    %137 = arith.addf %136, %135 : vector<8x128xf32>
    %138 = arith.divf %136, %137 : vector<8x128xf32>
    %139 = vector.extract_strided_slice %132 {offsets = [0, 128], sizes = [8, 128], strides = [1, 1]} : vector<8x512xf32> to vector<8x128xf32>
    %140 = arith.negf %139 : vector<8x128xf32>
    %141 = math.exp %140 : vector<8x128xf32>
    %cst_35 = arith.constant 1.000000e+00 : f32
    %142 = vector.broadcast %cst_35 : f32 to vector<8x128xf32>
    %143 = arith.addf %142, %141 : vector<8x128xf32>
    %144 = arith.divf %142, %143 : vector<8x128xf32>
    %145 = vector.extract_strided_slice %132 {offsets = [0, 256], sizes = [8, 128], strides = [1, 1]} : vector<8x512xf32> to vector<8x128xf32>
    %146 = math.tanh %145 : vector<8x128xf32>
    %147 = vector.extract_strided_slice %132 {offsets = [0, 384], sizes = [8, 128], strides = [1, 1]} : vector<8x512xf32> to vector<8x128xf32>
    %148 = arith.negf %147 : vector<8x128xf32>
    %149 = math.exp %148 : vector<8x128xf32>
    %cst_36 = arith.constant 1.000000e+00 : f32
    %150 = vector.broadcast %cst_36 : f32 to vector<8x128xf32>
    %151 = arith.addf %150, %149 : vector<8x128xf32>
    %152 = arith.divf %150, %151 : vector<8x128xf32>
    %153 = arith.mulf %144, %125 : vector<8x128xf32>
    %154 = arith.mulf %138, %146 : vector<8x128xf32>
    %155 = arith.addf %153, %154 : vector<8x128xf32>
    %156 = math.tanh %155 : vector<8x128xf32>
    %157 = arith.mulf %152, %156 : vector<8x128xf32>
    %158 = vector.extract_strided_slice %5 {offsets = [40, 0], sizes = [8, 512], strides = [1, 1]} : vector<64x512xf32> to vector<8x512xf32>
    %159 = arith.truncf %157 : vector<8x128xf32> to vector<8x128xbf16>
    %c0_37 = arith.constant 0 : index
    %c0_38 = arith.constant 0 : index
    %160 = vector.load %arg3[%c0_37, %c0_38] : memref<128x512xbf16, #tpu.memory_space<vmem>>, vector<128x512xbf16>
    %cst_39 = arith.constant dense<0.000000e+00> : vector<8x512xf32>
    %161 = tpu.matmul %159, %160, %cst_39 {dimension_numbers = #tpu.dot_dimension_numbers<[1], [0], [0], [1], [0, 0, 1, 1], [], []>} : vector<8x128xbf16>, vector<128x512xbf16>, vector<8x512xf32> -> vector<8x512xf32>
    %162 = arith.addf %158, %161 : vector<8x512xf32>
    %163 = vector.extract_strided_slice %162 {offsets = [0, 0], sizes = [8, 128], strides = [1, 1]} : vector<8x512xf32> to vector<8x128xf32>
    %164 = arith.negf %163 : vector<8x128xf32>
    %165 = math.exp %164 : vector<8x128xf32>
    %cst_40 = arith.constant 1.000000e+00 : f32
    %166 = vector.broadcast %cst_40 : f32 to vector<8x128xf32>
    %167 = arith.addf %166, %165 : vector<8x128xf32>
    %168 = arith.divf %166, %167 : vector<8x128xf32>
    %169 = vector.extract_strided_slice %162 {offsets = [0, 128], sizes = [8, 128], strides = [1, 1]} : vector<8x512xf32> to vector<8x128xf32>
    %170 = arith.negf %169 : vector<8x128xf32>
    %171 = math.exp %170 : vector<8x128xf32>
    %cst_41 = arith.constant 1.000000e+00 : f32
    %172 = vector.broadcast %cst_41 : f32 to vector<8x128xf32>
    %173 = arith.addf %172, %171 : vector<8x128xf32>
    %174 = arith.divf %172, %173 : vector<8x128xf32>
    %175 = vector.extract_strided_slice %162 {offsets = [0, 256], sizes = [8, 128], strides = [1, 1]} : vector<8x512xf32> to vector<8x128xf32>
    %176 = math.tanh %175 : vector<8x128xf32>
    %177 = vector.extract_strided_slice %162 {offsets = [0, 384], sizes = [8, 128], strides = [1, 1]} : vector<8x512xf32> to vector<8x128xf32>
    %178 = arith.negf %177 : vector<8x128xf32>
    %179 = math.exp %178 : vector<8x128xf32>
    %cst_42 = arith.constant 1.000000e+00 : f32
    %180 = vector.broadcast %cst_42 : f32 to vector<8x128xf32>
    %181 = arith.addf %180, %179 : vector<8x128xf32>
    %182 = arith.divf %180, %181 : vector<8x128xf32>
    %183 = arith.mulf %174, %155 : vector<8x128xf32>
    %184 = arith.mulf %168, %176 : vector<8x128xf32>
    %185 = arith.addf %183, %184 : vector<8x128xf32>
    %186 = math.tanh %185 : vector<8x128xf32>
    %187 = arith.mulf %182, %186 : vector<8x128xf32>
    %188 = vector.extract_strided_slice %5 {offsets = [48, 0], sizes = [8, 512], strides = [1, 1]} : vector<64x512xf32> to vector<8x512xf32>
    %189 = arith.truncf %187 : vector<8x128xf32> to vector<8x128xbf16>
    %c0_43 = arith.constant 0 : index
    %c0_44 = arith.constant 0 : index
    %190 = vector.load %arg3[%c0_43, %c0_44] : memref<128x512xbf16, #tpu.memory_space<vmem>>, vector<128x512xbf16>
    %cst_45 = arith.constant dense<0.000000e+00> : vector<8x512xf32>
    %191 = tpu.matmul %189, %190, %cst_45 {dimension_numbers = #tpu.dot_dimension_numbers<[1], [0], [0], [1], [0, 0, 1, 1], [], []>} : vector<8x128xbf16>, vector<128x512xbf16>, vector<8x512xf32> -> vector<8x512xf32>
    %192 = arith.addf %188, %191 : vector<8x512xf32>
    %193 = vector.extract_strided_slice %192 {offsets = [0, 0], sizes = [8, 128], strides = [1, 1]} : vector<8x512xf32> to vector<8x128xf32>
    %194 = arith.negf %193 : vector<8x128xf32>
    %195 = math.exp %194 : vector<8x128xf32>
    %cst_46 = arith.constant 1.000000e+00 : f32
    %196 = vector.broadcast %cst_46 : f32 to vector<8x128xf32>
    %197 = arith.addf %196, %195 : vector<8x128xf32>
    %198 = arith.divf %196, %197 : vector<8x128xf32>
    %199 = vector.extract_strided_slice %192 {offsets = [0, 128], sizes = [8, 128], strides = [1, 1]} : vector<8x512xf32> to vector<8x128xf32>
    %200 = arith.negf %199 : vector<8x128xf32>
    %201 = math.exp %200 : vector<8x128xf32>
    %cst_47 = arith.constant 1.000000e+00 : f32
    %202 = vector.broadcast %cst_47 : f32 to vector<8x128xf32>
    %203 = arith.addf %202, %201 : vector<8x128xf32>
    %204 = arith.divf %202, %203 : vector<8x128xf32>
    %205 = vector.extract_strided_slice %192 {offsets = [0, 256], sizes = [8, 128], strides = [1, 1]} : vector<8x512xf32> to vector<8x128xf32>
    %206 = math.tanh %205 : vector<8x128xf32>
    %207 = vector.extract_strided_slice %192 {offsets = [0, 384], sizes = [8, 128], strides = [1, 1]} : vector<8x512xf32> to vector<8x128xf32>
    %208 = arith.negf %207 : vector<8x128xf32>
    %209 = math.exp %208 : vector<8x128xf32>
    %cst_48 = arith.constant 1.000000e+00 : f32
    %210 = vector.broadcast %cst_48 : f32 to vector<8x128xf32>
    %211 = arith.addf %210, %209 : vector<8x128xf32>
    %212 = arith.divf %210, %211 : vector<8x128xf32>
    %213 = arith.mulf %204, %185 : vector<8x128xf32>
    %214 = arith.mulf %198, %206 : vector<8x128xf32>
    %215 = arith.addf %213, %214 : vector<8x128xf32>
    %216 = math.tanh %215 : vector<8x128xf32>
    %217 = arith.mulf %212, %216 : vector<8x128xf32>
    %218 = vector.extract_strided_slice %5 {offsets = [56, 0], sizes = [8, 512], strides = [1, 1]} : vector<64x512xf32> to vector<8x512xf32>
    %219 = arith.truncf %217 : vector<8x128xf32> to vector<8x128xbf16>
    %c0_49 = arith.constant 0 : index
    %c0_50 = arith.constant 0 : index
    %220 = vector.load %arg3[%c0_49, %c0_50] : memref<128x512xbf16, #tpu.memory_space<vmem>>, vector<128x512xbf16>
    %cst_51 = arith.constant dense<0.000000e+00> : vector<8x512xf32>
    %221 = tpu.matmul %219, %220, %cst_51 {dimension_numbers = #tpu.dot_dimension_numbers<[1], [0], [0], [1], [0, 0, 1, 1], [], []>} : vector<8x128xbf16>, vector<128x512xbf16>, vector<8x512xf32> -> vector<8x512xf32>
    %222 = arith.addf %218, %221 : vector<8x512xf32>
    %223 = vector.extract_strided_slice %222 {offsets = [0, 0], sizes = [8, 128], strides = [1, 1]} : vector<8x512xf32> to vector<8x128xf32>
    %224 = arith.negf %223 : vector<8x128xf32>
    %225 = math.exp %224 : vector<8x128xf32>
    %cst_52 = arith.constant 1.000000e+00 : f32
    %226 = vector.broadcast %cst_52 : f32 to vector<8x128xf32>
    %227 = arith.addf %226, %225 : vector<8x128xf32>
    %228 = arith.divf %226, %227 : vector<8x128xf32>
    %229 = vector.extract_strided_slice %222 {offsets = [0, 128], sizes = [8, 128], strides = [1, 1]} : vector<8x512xf32> to vector<8x128xf32>
    %230 = arith.negf %229 : vector<8x128xf32>
    %231 = math.exp %230 : vector<8x128xf32>
    %cst_53 = arith.constant 1.000000e+00 : f32
    %232 = vector.broadcast %cst_53 : f32 to vector<8x128xf32>
    %233 = arith.addf %232, %231 : vector<8x128xf32>
    %234 = arith.divf %232, %233 : vector<8x128xf32>
    %235 = vector.extract_strided_slice %222 {offsets = [0, 256], sizes = [8, 128], strides = [1, 1]} : vector<8x512xf32> to vector<8x128xf32>
    %236 = math.tanh %235 : vector<8x128xf32>
    %237 = vector.extract_strided_slice %222 {offsets = [0, 384], sizes = [8, 128], strides = [1, 1]} : vector<8x512xf32> to vector<8x128xf32>
    %238 = arith.negf %237 : vector<8x128xf32>
    %239 = math.exp %238 : vector<8x128xf32>
    %cst_54 = arith.constant 1.000000e+00 : f32
    %240 = vector.broadcast %cst_54 : f32 to vector<8x128xf32>
    %241 = arith.addf %240, %239 : vector<8x128xf32>
    %242 = arith.divf %240, %241 : vector<8x128xf32>
    %243 = arith.mulf %234, %215 : vector<8x128xf32>
    %244 = arith.mulf %228, %236 : vector<8x128xf32>
    %245 = arith.addf %243, %244 : vector<8x128xf32>
    %246 = math.tanh %245 : vector<8x128xf32>
    %247 = arith.mulf %242, %246 : vector<8x128xf32>
    %248 = tpu.concatenate %37, %67, %97, %127, %157, %187, %217, %247 in 0 : vector<8x128xf32>, vector<8x128xf32>, vector<8x128xf32>, vector<8x128xf32>, vector<8x128xf32>, vector<8x128xf32>, vector<8x128xf32>, vector<8x128xf32> -> vector<64x128xf32>
    %249 = arith.truncf %248 : vector<64x128xf32> to vector<64x128xbf16>
    %c0_55 = arith.constant 0 : index
    %c0_56 = arith.constant 0 : index
    %250 = vector.load %arg5[%c0_55, %c0_56] : memref<128x512xbf16, #tpu.memory_space<vmem>>, vector<128x512xbf16>
    %cst_57 = arith.constant dense<0.000000e+00> : vector<64x512xf32>
    %251 = tpu.matmul %249, %250, %cst_57 {dimension_numbers = #tpu.dot_dimension_numbers<[1], [0], [0], [1], [0, 0, 1, 1], [], []>} : vector<64x128xbf16>, vector<128x512xbf16>, vector<64x512xf32> -> vector<64x512xf32>
    %c0_58 = arith.constant 0 : index
    %c0_59 = arith.constant 0 : index
    %252 = vector.load %arg7[%c0_58, %c0_59] : memref<1x512xf32, #tpu.memory_space<vmem>>, vector<1x512xf32>
    %253 = vector.broadcast %252 : vector<1x512xf32> to vector<64x512xf32>
    %254 = arith.addf %251, %253 : vector<64x512xf32>
    %255 = vector.extract_strided_slice %254 {offsets = [0, 0], sizes = [8, 512], strides = [1, 1]} : vector<64x512xf32> to vector<8x512xf32>
    %256 = arith.truncf %247 : vector<8x128xf32> to vector<8x128xbf16>
    %c0_60 = arith.constant 0 : index
    %c0_61 = arith.constant 0 : index
    %257 = vector.load %arg6[%c0_60, %c0_61] : memref<128x512xbf16, #tpu.memory_space<vmem>>, vector<128x512xbf16>
    %cst_62 = arith.constant dense<0.000000e+00> : vector<8x512xf32>
    %258 = tpu.matmul %256, %257, %cst_62 {dimension_numbers = #tpu.dot_dimension_numbers<[1], [0], [0], [1], [0, 0, 1, 1], [], []>} : vector<8x128xbf16>, vector<128x512xbf16>, vector<8x512xf32> -> vector<8x512xf32>
    %259 = arith.addf %255, %258 : vector<8x512xf32>
    %260 = vector.extract_strided_slice %259 {offsets = [0, 0], sizes = [8, 128], strides = [1, 1]} : vector<8x512xf32> to vector<8x128xf32>
    %261 = arith.negf %260 : vector<8x128xf32>
    %262 = math.exp %261 : vector<8x128xf32>
    %cst_63 = arith.constant 1.000000e+00 : f32
    %263 = vector.broadcast %cst_63 : f32 to vector<8x128xf32>
    %264 = arith.addf %263, %262 : vector<8x128xf32>
    %265 = arith.divf %263, %264 : vector<8x128xf32>
    %266 = vector.extract_strided_slice %259 {offsets = [0, 128], sizes = [8, 128], strides = [1, 1]} : vector<8x512xf32> to vector<8x128xf32>
    %267 = arith.negf %266 : vector<8x128xf32>
    %268 = math.exp %267 : vector<8x128xf32>
    %cst_64 = arith.constant 1.000000e+00 : f32
    %269 = vector.broadcast %cst_64 : f32 to vector<8x128xf32>
    %270 = arith.addf %269, %268 : vector<8x128xf32>
    %271 = arith.divf %269, %270 : vector<8x128xf32>
    %272 = vector.extract_strided_slice %259 {offsets = [0, 256], sizes = [8, 128], strides = [1, 1]} : vector<8x512xf32> to vector<8x128xf32>
    %273 = math.tanh %272 : vector<8x128xf32>
    %274 = vector.extract_strided_slice %259 {offsets = [0, 384], sizes = [8, 128], strides = [1, 1]} : vector<8x512xf32> to vector<8x128xf32>
    %275 = arith.negf %274 : vector<8x128xf32>
    %276 = math.exp %275 : vector<8x128xf32>
    %cst_65 = arith.constant 1.000000e+00 : f32
    %277 = vector.broadcast %cst_65 : f32 to vector<8x128xf32>
    %278 = arith.addf %277, %276 : vector<8x128xf32>
    %279 = arith.divf %277, %278 : vector<8x128xf32>
    %280 = arith.mulf %271, %245 : vector<8x128xf32>
    %281 = arith.mulf %265, %273 : vector<8x128xf32>
    %282 = arith.addf %280, %281 : vector<8x128xf32>
    %283 = math.tanh %282 : vector<8x128xf32>
    %284 = arith.mulf %279, %283 : vector<8x128xf32>
    %285 = vector.extract_strided_slice %254 {offsets = [8, 0], sizes = [8, 512], strides = [1, 1]} : vector<64x512xf32> to vector<8x512xf32>
    %286 = arith.truncf %284 : vector<8x128xf32> to vector<8x128xbf16>
    %c0_66 = arith.constant 0 : index
    %c0_67 = arith.constant 0 : index
    %287 = vector.load %arg6[%c0_66, %c0_67] : memref<128x512xbf16, #tpu.memory_space<vmem>>, vector<128x512xbf16>
    %cst_68 = arith.constant dense<0.000000e+00> : vector<8x512xf32>
    %288 = tpu.matmul %286, %287, %cst_68 {dimension_numbers = #tpu.dot_dimension_numbers<[1], [0], [0], [1], [0, 0, 1, 1], [], []>} : vector<8x128xbf16>, vector<128x512xbf16>, vector<8x512xf32> -> vector<8x512xf32>
    %289 = arith.addf %285, %288 : vector<8x512xf32>
    %290 = vector.extract_strided_slice %289 {offsets = [0, 0], sizes = [8, 128], strides = [1, 1]} : vector<8x512xf32> to vector<8x128xf32>
    %291 = arith.negf %290 : vector<8x128xf32>
    %292 = math.exp %291 : vector<8x128xf32>
    %cst_69 = arith.constant 1.000000e+00 : f32
    %293 = vector.broadcast %cst_69 : f32 to vector<8x128xf32>
    %294 = arith.addf %293, %292 : vector<8x128xf32>
    %295 = arith.divf %293, %294 : vector<8x128xf32>
    %296 = vector.extract_strided_slice %289 {offsets = [0, 128], sizes = [8, 128], strides = [1, 1]} : vector<8x512xf32> to vector<8x128xf32>
    %297 = arith.negf %296 : vector<8x128xf32>
    %298 = math.exp %297 : vector<8x128xf32>
    %cst_70 = arith.constant 1.000000e+00 : f32
    %299 = vector.broadcast %cst_70 : f32 to vector<8x128xf32>
    %300 = arith.addf %299, %298 : vector<8x128xf32>
    %301 = arith.divf %299, %300 : vector<8x128xf32>
    %302 = vector.extract_strided_slice %289 {offsets = [0, 256], sizes = [8, 128], strides = [1, 1]} : vector<8x512xf32> to vector<8x128xf32>
    %303 = math.tanh %302 : vector<8x128xf32>
    %304 = vector.extract_strided_slice %289 {offsets = [0, 384], sizes = [8, 128], strides = [1, 1]} : vector<8x512xf32> to vector<8x128xf32>
    %305 = arith.negf %304 : vector<8x128xf32>
    %306 = math.exp %305 : vector<8x128xf32>
    %cst_71 = arith.constant 1.000000e+00 : f32
    %307 = vector.broadcast %cst_71 : f32 to vector<8x128xf32>
    %308 = arith.addf %307, %306 : vector<8x128xf32>
    %309 = arith.divf %307, %308 : vector<8x128xf32>
    %310 = arith.mulf %301, %282 : vector<8x128xf32>
    %311 = arith.mulf %295, %303 : vector<8x128xf32>
    %312 = arith.addf %310, %311 : vector<8x128xf32>
    %313 = math.tanh %312 : vector<8x128xf32>
    %314 = arith.mulf %309, %313 : vector<8x128xf32>
    %315 = vector.extract_strided_slice %254 {offsets = [16, 0], sizes = [8, 512], strides = [1, 1]} : vector<64x512xf32> to vector<8x512xf32>
    %316 = arith.truncf %314 : vector<8x128xf32> to vector<8x128xbf16>
    %c0_72 = arith.constant 0 : index
    %c0_73 = arith.constant 0 : index
    %317 = vector.load %arg6[%c0_72, %c0_73] : memref<128x512xbf16, #tpu.memory_space<vmem>>, vector<128x512xbf16>
    %cst_74 = arith.constant dense<0.000000e+00> : vector<8x512xf32>
    %318 = tpu.matmul %316, %317, %cst_74 {dimension_numbers = #tpu.dot_dimension_numbers<[1], [0], [0], [1], [0, 0, 1, 1], [], []>} : vector<8x128xbf16>, vector<128x512xbf16>, vector<8x512xf32> -> vector<8x512xf32>
    %319 = arith.addf %315, %318 : vector<8x512xf32>
    %320 = vector.extract_strided_slice %319 {offsets = [0, 0], sizes = [8, 128], strides = [1, 1]} : vector<8x512xf32> to vector<8x128xf32>
    %321 = arith.negf %320 : vector<8x128xf32>
    %322 = math.exp %321 : vector<8x128xf32>
    %cst_75 = arith.constant 1.000000e+00 : f32
    %323 = vector.broadcast %cst_75 : f32 to vector<8x128xf32>
    %324 = arith.addf %323, %322 : vector<8x128xf32>
    %325 = arith.divf %323, %324 : vector<8x128xf32>
    %326 = vector.extract_strided_slice %319 {offsets = [0, 128], sizes = [8, 128], strides = [1, 1]} : vector<8x512xf32> to vector<8x128xf32>
    %327 = arith.negf %326 : vector<8x128xf32>
    %328 = math.exp %327 : vector<8x128xf32>
    %cst_76 = arith.constant 1.000000e+00 : f32
    %329 = vector.broadcast %cst_76 : f32 to vector<8x128xf32>
    %330 = arith.addf %329, %328 : vector<8x128xf32>
    %331 = arith.divf %329, %330 : vector<8x128xf32>
    %332 = vector.extract_strided_slice %319 {offsets = [0, 256], sizes = [8, 128], strides = [1, 1]} : vector<8x512xf32> to vector<8x128xf32>
    %333 = math.tanh %332 : vector<8x128xf32>
    %334 = vector.extract_strided_slice %319 {offsets = [0, 384], sizes = [8, 128], strides = [1, 1]} : vector<8x512xf32> to vector<8x128xf32>
    %335 = arith.negf %334 : vector<8x128xf32>
    %336 = math.exp %335 : vector<8x128xf32>
    %cst_77 = arith.constant 1.000000e+00 : f32
    %337 = vector.broadcast %cst_77 : f32 to vector<8x128xf32>
    %338 = arith.addf %337, %336 : vector<8x128xf32>
    %339 = arith.divf %337, %338 : vector<8x128xf32>
    %340 = arith.mulf %331, %312 : vector<8x128xf32>
    %341 = arith.mulf %325, %333 : vector<8x128xf32>
    %342 = arith.addf %340, %341 : vector<8x128xf32>
    %343 = math.tanh %342 : vector<8x128xf32>
    %344 = arith.mulf %339, %343 : vector<8x128xf32>
    %345 = vector.extract_strided_slice %254 {offsets = [24, 0], sizes = [8, 512], strides = [1, 1]} : vector<64x512xf32> to vector<8x512xf32>
    %346 = arith.truncf %344 : vector<8x128xf32> to vector<8x128xbf16>
    %c0_78 = arith.constant 0 : index
    %c0_79 = arith.constant 0 : index
    %347 = vector.load %arg6[%c0_78, %c0_79] : memref<128x512xbf16, #tpu.memory_space<vmem>>, vector<128x512xbf16>
    %cst_80 = arith.constant dense<0.000000e+00> : vector<8x512xf32>
    %348 = tpu.matmul %346, %347, %cst_80 {dimension_numbers = #tpu.dot_dimension_numbers<[1], [0], [0], [1], [0, 0, 1, 1], [], []>} : vector<8x128xbf16>, vector<128x512xbf16>, vector<8x512xf32> -> vector<8x512xf32>
    %349 = arith.addf %345, %348 : vector<8x512xf32>
    %350 = vector.extract_strided_slice %349 {offsets = [0, 0], sizes = [8, 128], strides = [1, 1]} : vector<8x512xf32> to vector<8x128xf32>
    %351 = arith.negf %350 : vector<8x128xf32>
    %352 = math.exp %351 : vector<8x128xf32>
    %cst_81 = arith.constant 1.000000e+00 : f32
    %353 = vector.broadcast %cst_81 : f32 to vector<8x128xf32>
    %354 = arith.addf %353, %352 : vector<8x128xf32>
    %355 = arith.divf %353, %354 : vector<8x128xf32>
    %356 = vector.extract_strided_slice %349 {offsets = [0, 128], sizes = [8, 128], strides = [1, 1]} : vector<8x512xf32> to vector<8x128xf32>
    %357 = arith.negf %356 : vector<8x128xf32>
    %358 = math.exp %357 : vector<8x128xf32>
    %cst_82 = arith.constant 1.000000e+00 : f32
    %359 = vector.broadcast %cst_82 : f32 to vector<8x128xf32>
    %360 = arith.addf %359, %358 : vector<8x128xf32>
    %361 = arith.divf %359, %360 : vector<8x128xf32>
    %362 = vector.extract_strided_slice %349 {offsets = [0, 256], sizes = [8, 128], strides = [1, 1]} : vector<8x512xf32> to vector<8x128xf32>
    %363 = math.tanh %362 : vector<8x128xf32>
    %364 = vector.extract_strided_slice %349 {offsets = [0, 384], sizes = [8, 128], strides = [1, 1]} : vector<8x512xf32> to vector<8x128xf32>
    %365 = arith.negf %364 : vector<8x128xf32>
    %366 = math.exp %365 : vector<8x128xf32>
    %cst_83 = arith.constant 1.000000e+00 : f32
    %367 = vector.broadcast %cst_83 : f32 to vector<8x128xf32>
    %368 = arith.addf %367, %366 : vector<8x128xf32>
    %369 = arith.divf %367, %368 : vector<8x128xf32>
    %370 = arith.mulf %361, %342 : vector<8x128xf32>
    %371 = arith.mulf %355, %363 : vector<8x128xf32>
    %372 = arith.addf %370, %371 : vector<8x128xf32>
    %373 = math.tanh %372 : vector<8x128xf32>
    %374 = arith.mulf %369, %373 : vector<8x128xf32>
    %375 = vector.extract_strided_slice %254 {offsets = [32, 0], sizes = [8, 512], strides = [1, 1]} : vector<64x512xf32> to vector<8x512xf32>
    %376 = arith.truncf %374 : vector<8x128xf32> to vector<8x128xbf16>
    %c0_84 = arith.constant 0 : index
    %c0_85 = arith.constant 0 : index
    %377 = vector.load %arg6[%c0_84, %c0_85] : memref<128x512xbf16, #tpu.memory_space<vmem>>, vector<128x512xbf16>
    %cst_86 = arith.constant dense<0.000000e+00> : vector<8x512xf32>
    %378 = tpu.matmul %376, %377, %cst_86 {dimension_numbers = #tpu.dot_dimension_numbers<[1], [0], [0], [1], [0, 0, 1, 1], [], []>} : vector<8x128xbf16>, vector<128x512xbf16>, vector<8x512xf32> -> vector<8x512xf32>
    %379 = arith.addf %375, %378 : vector<8x512xf32>
    %380 = vector.extract_strided_slice %379 {offsets = [0, 0], sizes = [8, 128], strides = [1, 1]} : vector<8x512xf32> to vector<8x128xf32>
    %381 = arith.negf %380 : vector<8x128xf32>
    %382 = math.exp %381 : vector<8x128xf32>
    %cst_87 = arith.constant 1.000000e+00 : f32
    %383 = vector.broadcast %cst_87 : f32 to vector<8x128xf32>
    %384 = arith.addf %383, %382 : vector<8x128xf32>
    %385 = arith.divf %383, %384 : vector<8x128xf32>
    %386 = vector.extract_strided_slice %379 {offsets = [0, 128], sizes = [8, 128], strides = [1, 1]} : vector<8x512xf32> to vector<8x128xf32>
    %387 = arith.negf %386 : vector<8x128xf32>
    %388 = math.exp %387 : vector<8x128xf32>
    %cst_88 = arith.constant 1.000000e+00 : f32
    %389 = vector.broadcast %cst_88 : f32 to vector<8x128xf32>
    %390 = arith.addf %389, %388 : vector<8x128xf32>
    %391 = arith.divf %389, %390 : vector<8x128xf32>
    %392 = vector.extract_strided_slice %379 {offsets = [0, 256], sizes = [8, 128], strides = [1, 1]} : vector<8x512xf32> to vector<8x128xf32>
    %393 = math.tanh %392 : vector<8x128xf32>
    %394 = vector.extract_strided_slice %379 {offsets = [0, 384], sizes = [8, 128], strides = [1, 1]} : vector<8x512xf32> to vector<8x128xf32>
    %395 = arith.negf %394 : vector<8x128xf32>
    %396 = math.exp %395 : vector<8x128xf32>
    %cst_89 = arith.constant 1.000000e+00 : f32
    %397 = vector.broadcast %cst_89 : f32 to vector<8x128xf32>
    %398 = arith.addf %397, %396 : vector<8x128xf32>
    %399 = arith.divf %397, %398 : vector<8x128xf32>
    %400 = arith.mulf %391, %372 : vector<8x128xf32>
    %401 = arith.mulf %385, %393 : vector<8x128xf32>
    %402 = arith.addf %400, %401 : vector<8x128xf32>
    %403 = math.tanh %402 : vector<8x128xf32>
    %404 = arith.mulf %399, %403 : vector<8x128xf32>
    %405 = vector.extract_strided_slice %254 {offsets = [40, 0], sizes = [8, 512], strides = [1, 1]} : vector<64x512xf32> to vector<8x512xf32>
    %406 = arith.truncf %404 : vector<8x128xf32> to vector<8x128xbf16>
    %c0_90 = arith.constant 0 : index
    %c0_91 = arith.constant 0 : index
    %407 = vector.load %arg6[%c0_90, %c0_91] : memref<128x512xbf16, #tpu.memory_space<vmem>>, vector<128x512xbf16>
    %cst_92 = arith.constant dense<0.000000e+00> : vector<8x512xf32>
    %408 = tpu.matmul %406, %407, %cst_92 {dimension_numbers = #tpu.dot_dimension_numbers<[1], [0], [0], [1], [0, 0, 1, 1], [], []>} : vector<8x128xbf16>, vector<128x512xbf16>, vector<8x512xf32> -> vector<8x512xf32>
    %409 = arith.addf %405, %408 : vector<8x512xf32>
    %410 = vector.extract_strided_slice %409 {offsets = [0, 0], sizes = [8, 128], strides = [1, 1]} : vector<8x512xf32> to vector<8x128xf32>
    %411 = arith.negf %410 : vector<8x128xf32>
    %412 = math.exp %411 : vector<8x128xf32>
    %cst_93 = arith.constant 1.000000e+00 : f32
    %413 = vector.broadcast %cst_93 : f32 to vector<8x128xf32>
    %414 = arith.addf %413, %412 : vector<8x128xf32>
    %415 = arith.divf %413, %414 : vector<8x128xf32>
    %416 = vector.extract_strided_slice %409 {offsets = [0, 128], sizes = [8, 128], strides = [1, 1]} : vector<8x512xf32> to vector<8x128xf32>
    %417 = arith.negf %416 : vector<8x128xf32>
    %418 = math.exp %417 : vector<8x128xf32>
    %cst_94 = arith.constant 1.000000e+00 : f32
    %419 = vector.broadcast %cst_94 : f32 to vector<8x128xf32>
    %420 = arith.addf %419, %418 : vector<8x128xf32>
    %421 = arith.divf %419, %420 : vector<8x128xf32>
    %422 = vector.extract_strided_slice %409 {offsets = [0, 256], sizes = [8, 128], strides = [1, 1]} : vector<8x512xf32> to vector<8x128xf32>
    %423 = math.tanh %422 : vector<8x128xf32>
    %424 = vector.extract_strided_slice %409 {offsets = [0, 384], sizes = [8, 128], strides = [1, 1]} : vector<8x512xf32> to vector<8x128xf32>
    %425 = arith.negf %424 : vector<8x128xf32>
    %426 = math.exp %425 : vector<8x128xf32>
    %cst_95 = arith.constant 1.000000e+00 : f32
    %427 = vector.broadcast %cst_95 : f32 to vector<8x128xf32>
    %428 = arith.addf %427, %426 : vector<8x128xf32>
    %429 = arith.divf %427, %428 : vector<8x128xf32>
    %430 = arith.mulf %421, %402 : vector<8x128xf32>
    %431 = arith.mulf %415, %423 : vector<8x128xf32>
    %432 = arith.addf %430, %431 : vector<8x128xf32>
    %433 = math.tanh %432 : vector<8x128xf32>
    %434 = arith.mulf %429, %433 : vector<8x128xf32>
    %435 = vector.extract_strided_slice %254 {offsets = [48, 0], sizes = [8, 512], strides = [1, 1]} : vector<64x512xf32> to vector<8x512xf32>
    %436 = arith.truncf %434 : vector<8x128xf32> to vector<8x128xbf16>
    %c0_96 = arith.constant 0 : index
    %c0_97 = arith.constant 0 : index
    %437 = vector.load %arg6[%c0_96, %c0_97] : memref<128x512xbf16, #tpu.memory_space<vmem>>, vector<128x512xbf16>
    %cst_98 = arith.constant dense<0.000000e+00> : vector<8x512xf32>
    %438 = tpu.matmul %436, %437, %cst_98 {dimension_numbers = #tpu.dot_dimension_numbers<[1], [0], [0], [1], [0, 0, 1, 1], [], []>} : vector<8x128xbf16>, vector<128x512xbf16>, vector<8x512xf32> -> vector<8x512xf32>
    %439 = arith.addf %435, %438 : vector<8x512xf32>
    %440 = vector.extract_strided_slice %439 {offsets = [0, 0], sizes = [8, 128], strides = [1, 1]} : vector<8x512xf32> to vector<8x128xf32>
    %441 = arith.negf %440 : vector<8x128xf32>
    %442 = math.exp %441 : vector<8x128xf32>
    %cst_99 = arith.constant 1.000000e+00 : f32
    %443 = vector.broadcast %cst_99 : f32 to vector<8x128xf32>
    %444 = arith.addf %443, %442 : vector<8x128xf32>
    %445 = arith.divf %443, %444 : vector<8x128xf32>
    %446 = vector.extract_strided_slice %439 {offsets = [0, 128], sizes = [8, 128], strides = [1, 1]} : vector<8x512xf32> to vector<8x128xf32>
    %447 = arith.negf %446 : vector<8x128xf32>
    %448 = math.exp %447 : vector<8x128xf32>
    %cst_100 = arith.constant 1.000000e+00 : f32
    %449 = vector.broadcast %cst_100 : f32 to vector<8x128xf32>
    %450 = arith.addf %449, %448 : vector<8x128xf32>
    %451 = arith.divf %449, %450 : vector<8x128xf32>
    %452 = vector.extract_strided_slice %439 {offsets = [0, 256], sizes = [8, 128], strides = [1, 1]} : vector<8x512xf32> to vector<8x128xf32>
    %453 = math.tanh %452 : vector<8x128xf32>
    %454 = vector.extract_strided_slice %439 {offsets = [0, 384], sizes = [8, 128], strides = [1, 1]} : vector<8x512xf32> to vector<8x128xf32>
    %455 = arith.negf %454 : vector<8x128xf32>
    %456 = math.exp %455 : vector<8x128xf32>
    %cst_101 = arith.constant 1.000000e+00 : f32
    %457 = vector.broadcast %cst_101 : f32 to vector<8x128xf32>
    %458 = arith.addf %457, %456 : vector<8x128xf32>
    %459 = arith.divf %457, %458 : vector<8x128xf32>
    %460 = arith.mulf %451, %432 : vector<8x128xf32>
    %461 = arith.mulf %445, %453 : vector<8x128xf32>
    %462 = arith.addf %460, %461 : vector<8x128xf32>
    %463 = math.tanh %462 : vector<8x128xf32>
    %464 = arith.mulf %459, %463 : vector<8x128xf32>
    %465 = vector.extract_strided_slice %254 {offsets = [56, 0], sizes = [8, 512], strides = [1, 1]} : vector<64x512xf32> to vector<8x512xf32>
    %466 = arith.truncf %464 : vector<8x128xf32> to vector<8x128xbf16>
    %c0_102 = arith.constant 0 : index
    %c0_103 = arith.constant 0 : index
    %467 = vector.load %arg6[%c0_102, %c0_103] : memref<128x512xbf16, #tpu.memory_space<vmem>>, vector<128x512xbf16>
    %cst_104 = arith.constant dense<0.000000e+00> : vector<8x512xf32>
    %468 = tpu.matmul %466, %467, %cst_104 {dimension_numbers = #tpu.dot_dimension_numbers<[1], [0], [0], [1], [0, 0, 1, 1], [], []>} : vector<8x128xbf16>, vector<128x512xbf16>, vector<8x512xf32> -> vector<8x512xf32>
    %469 = arith.addf %465, %468 : vector<8x512xf32>
    %470 = vector.extract_strided_slice %469 {offsets = [0, 0], sizes = [8, 128], strides = [1, 1]} : vector<8x512xf32> to vector<8x128xf32>
    %471 = arith.negf %470 : vector<8x128xf32>
    %472 = math.exp %471 : vector<8x128xf32>
    %cst_105 = arith.constant 1.000000e+00 : f32
    %473 = vector.broadcast %cst_105 : f32 to vector<8x128xf32>
    %474 = arith.addf %473, %472 : vector<8x128xf32>
    %475 = arith.divf %473, %474 : vector<8x128xf32>
    %476 = vector.extract_strided_slice %469 {offsets = [0, 128], sizes = [8, 128], strides = [1, 1]} : vector<8x512xf32> to vector<8x128xf32>
    %477 = arith.negf %476 : vector<8x128xf32>
    %478 = math.exp %477 : vector<8x128xf32>
    %cst_106 = arith.constant 1.000000e+00 : f32
    %479 = vector.broadcast %cst_106 : f32 to vector<8x128xf32>
    %480 = arith.addf %479, %478 : vector<8x128xf32>
    %481 = arith.divf %479, %480 : vector<8x128xf32>
    %482 = vector.extract_strided_slice %469 {offsets = [0, 256], sizes = [8, 128], strides = [1, 1]} : vector<8x512xf32> to vector<8x128xf32>
    %483 = math.tanh %482 : vector<8x128xf32>
    %484 = vector.extract_strided_slice %469 {offsets = [0, 384], sizes = [8, 128], strides = [1, 1]} : vector<8x512xf32> to vector<8x128xf32>
    %485 = arith.negf %484 : vector<8x128xf32>
    %486 = math.exp %485 : vector<8x128xf32>
    %cst_107 = arith.constant 1.000000e+00 : f32
    %487 = vector.broadcast %cst_107 : f32 to vector<8x128xf32>
    %488 = arith.addf %487, %486 : vector<8x128xf32>
    %489 = arith.divf %487, %488 : vector<8x128xf32>
    %490 = arith.mulf %481, %462 : vector<8x128xf32>
    %491 = arith.mulf %475, %483 : vector<8x128xf32>
    %492 = arith.addf %490, %491 : vector<8x128xf32>
    %493 = math.tanh %492 : vector<8x128xf32>
    %494 = arith.mulf %489, %493 : vector<8x128xf32>
    %495 = arith.truncf %494 : vector<8x128xf32> to vector<8x128xbf16>
    %c0_108 = arith.constant 0 : index
    %c0_109 = arith.constant 0 : index
    %496 = vector.load %arg8[%c0_108, %c0_109] : memref<128x128xbf16, #tpu.memory_space<vmem>>, vector<128x128xbf16>
    %cst_110 = arith.constant dense<0.000000e+00> : vector<8x128xf32>
    %497 = tpu.matmul %495, %496, %cst_110 {dimension_numbers = #tpu.dot_dimension_numbers<[1], [0], [0], [1], [0, 0, 1, 1], [], []>} : vector<8x128xbf16>, vector<128x128xbf16>, vector<8x128xf32> -> vector<8x128xf32>
    %c0_111 = arith.constant 0 : index
    %c0_112 = arith.constant 0 : index
    %498 = vector.load %arg9[%c0_111, %c0_112] : memref<1x128xf32, #tpu.memory_space<vmem>>, vector<1x128xf32>
    %499 = vector.broadcast %498 : vector<1x128xf32> to vector<8x128xf32>
    %500 = arith.addf %497, %499 : vector<8x128xf32>
    %c0_113 = arith.constant 0 : index
    %c0_114 = arith.constant 0 : index
    %501 = vector.load %arg10[%c0_113, %c0_114] : memref<8x128xf32, #tpu.memory_space<vmem>>, vector<8x128xf32>
    tpu.vector_store %arg10[%c0_113, %c0_114], %500 {strides = array<i32>} : memref<8x128xf32, #tpu.memory_space<vmem>>, vector<8x128xf32>,
    return
  }
  func.func @transform_0(%arg0: i32) -> (i32, i32) {
    %c0_i32 = arith.constant 0 : i32
    %c0_i32_0 = arith.constant 0 : i32
    %c0_i32_1 = arith.constant 0 : i32
    return %c0_i32, %c0_i32_0 : i32, i32
  }
  func.func @transform_1(%arg0: i32) -> (i32, i32) {
    %c0_i32 = arith.constant 0 : i32
    %c0_i32_0 = arith.constant 0 : i32
    %c0_i32_1 = arith.constant 0 : i32
    return %c0_i32, %c0_i32_0 : i32, i32
  }
  func.func @transform_2(%arg0: i32) -> (i32, i32) {
    %c0_i32 = arith.constant 0 : i32
    %c0_i32_0 = arith.constant 0 : i32
    %c0_i32_1 = arith.constant 0 : i32
    return %c0_i32, %c0_i32_0 : i32, i32
  }
  func.func @transform_3(%arg0: i32) -> (i32, i32) {
    %c0_i32 = arith.constant 0 : i32
    %c0_i32_0 = arith.constant 0 : i32
    %c0_i32_1 = arith.constant 0 : i32
    return %c0_i32, %c0_i32_0 : i32, i32
  }
  func.func @transform_4(%arg0: i32) -> (i32, i32) {
    %c0_i32 = arith.constant 0 : i32
    %c0_i32_0 = arith.constant 0 : i32
    %c0_i32_1 = arith.constant 0 : i32
    return %c0_i32, %c0_i32_0 : i32, i32
  }
  func.func @transform_5(%arg0: i32) -> (i32, i32) {
    %c0_i32 = arith.constant 0 : i32
    %c0_i32_0 = arith.constant 0 : i32
    %c0_i32_1 = arith.constant 0 : i32
    return %c0_i32, %c0_i32_0 : i32, i32
  }
  func.func @transform_6(%arg0: i32) -> (i32, i32) {
    %c0_i32 = arith.constant 0 : i32
    %c0_i32_0 = arith.constant 0 : i32
    %c0_i32_1 = arith.constant 0 : i32
    return %c0_i32, %c0_i32_0 : i32, i32
  }
  func.func @transform_7(%arg0: i32) -> (i32, i32) {
    %c0_i32 = arith.constant 0 : i32
    %c0_i32_0 = arith.constant 0 : i32
    %c0_i32_1 = arith.constant 0 : i32
    return %c0_i32, %c0_i32_0 : i32, i32
  }
  func.func @transform_8(%arg0: i32) -> (i32, i32) {
    %c0_i32 = arith.constant 0 : i32
    %c0_i32_0 = arith.constant 0 : i32
    %c0_i32_1 = arith.constant 0 : i32
    return %c0_i32, %c0_i32_0 : i32, i32
  }
  func.func @transform_9(%arg0: i32) -> (i32, i32) {
    %c0_i32 = arith.constant 0 : i32
    %c0_i32_0 = arith.constant 0 : i32
    %c0_i32_1 = arith.constant 0 : i32
    return %c0_i32, %c0_i32_0 : i32, i32
  }
}

</mosaic_0001>

<bundles_post_ra>
// kernel: tpu_custom_call.1
= control target key start
LH: loop header
LB: loop body
LE: loop exit
PB: predicated region body
PF: predicated region fallthrough
CT: control target
= control target key end

     0   :  { %14 = vsyncpa [#allocation3], 0  ;;  %s5057_s0 = inlined_call_operand.vmem [shape: bf16[64,8], index: 0, kind: input, shape index: {}]   ;;  %s5058_s1 = inlined_call_operand.vmem [shape: bf16[8,512], index: 1, kind: input, shape index: {}]   ;;  %s5059_s2 = inlined_call_operand.hbm [shape: bf16[128,512], index: 2, kind: input, shape index: {}]   ;;  %s5060_s3 = inlined_call_operand.vmem [shape: f32[1,512], index: 3, kind: input, shape index: {}]   ;;  %s5061_s4 = inlined_call_operand.hbm [shape: bf16[128,512], index: 4, kind: input, shape index: {}]   ;;  %s5062_s5 = inlined_call_operand.hbm [shape: bf16[128,512], index: 5, kind: input, shape index: {}]   ;;  %s5063_s6 = inlined_call_operand.vmem [shape: f32[1,512], index: 6, kind: input, shape index: {}]   ;;  %s5064_s7 = inlined_call_operand.hbm [shape: bf16[128,128], index: 7, kind: input, shape index: {}]   ;;  %s5065_s8 = inlined_call_operand.vmem [shape: f32[1,128], index: 8, kind: input, shape index: {}]   ;;  %s5066_s9 = inlined_call_operand.hbm [shape: f32[8,128], index: 9, kind: output, shape index: {}]  }
   0x1   :  { %15 = vsyncpa [#allocation6], 0 }
   0x2   :  { %16 = vsyncpa [#allocation9], 0 }
   0x3   :  { %17 = vsyncpa [#allocation4], 0  ;;  %s3776_s30 = smov [#allocation5]   ;;  %s3777_s11 = smov [#allocation2]  }
   0x4   :  { %s41_s10 = sshll.u32 %s3776_s30, 4  ;;  %s27_s12 = sshll.u32 %s3777_s11, 4  ;;  %s42_s10 = int_to_ptr.vmem [resolvable:$true] %s41_s10  ;;  %s28_s12 = int_to_ptr.vmem [resolvable:$true] %s27_s12 }
   0x5   :  { %s3676_s13 = scalar_lea.vmem %s42_s10, 4096  ;;  %p3681_p1 = scmp.lt.s32.totalorder %s42_s10, %s42_s10 }
   0x6   :  { %p3677_p0 = scmp.ne.s32.totalorder %s42_s10, %s3676_s13  ;;  %p3682_p2 = scmp.lt.s32.totalorder %s3676_s13, %s3676_s13 }
   0x8   :  { %p3683_p3 = por %p3682_p2, %p3681_p1 }
   0xa   :  { %p3684_p4 = pnand %p3683_p3, %p3677_p0 }
   0xc   :  { %3687 = shalt.err (!%p3684_p4)
}
   0xd   :  { %s3778_s14 = smov 256   ;;  %s3779_s15 = smov 16  }
   0xe   :  { %47 = dma.hbm_to_vmem [thread:$0]  %s5061_s4, 4096, %s42_s10, [#allocation6], %s3778_s14, %s3778_s14, %s3779_s15  }
   0xf   :  { %s3696_s18 = scalar_lea.vmem %s28_s12, 4096  ;;  %p3701_p6 = scmp.lt.s32.totalorder %s28_s12, %s28_s12 }
  0x10   :  { %p3697_p5 = scmp.ne.s32.totalorder %s28_s12, %s3696_s18  ;;  %p3702_p7 = scmp.lt.s32.totalorder %s3696_s18, %s3696_s18 }
  0x12   :  { %p3703_p8 = por %p3702_p7, %p3701_p6 }
  0x14   :  { %p3704_p9 = pnand %p3703_p8, %p3697_p5 }
  0x16   :  { %3707 = shalt.err (!%p3704_p9)
}
  0x17   :  { %33 = dma.hbm_to_vmem [thread:$0]  %s5059_s2, 4096, %s28_s12, [#allocation3], %s3778_s14, %s3778_s14, %s3779_s15  }
  0x18   :  { %s3780_s21 = smov [#allocation7]   ;;  %s3781_s23 = smov [#allocation8]  }
  0x19   :  { %s53_s22 = sshll.u32 %s3780_s21, 4  ;;  %s67_s24 = sshll.u32 %s3781_s23, 4  ;;  %s54_s22 = int_to_ptr.vmem [resolvable:$true] %s53_s22  ;;  %s68_s24 = int_to_ptr.vmem [resolvable:$true] %s67_s24 }
  0x1a   :  { %s3716_s25 = scalar_lea.vmem %s54_s22, 4096  ;;  %p3721_p11 = scmp.lt.s32.totalorder %s54_s22, %s54_s22 }
  0x1b   :  { %p3717_p10 = scmp.ne.s32.totalorder %s54_s22, %s3716_s25  ;;  %p3722_p12 = scmp.lt.s32.totalorder %s3716_s25, %s3716_s25 }
  0x1d   :  { %p3723_p13 = por %p3722_p12, %p3721_p11 }
  0x1f   :  { %p3724_p0 = pnand %p3723_p13, %p3717_p10 }
  0x21   :  { %3727 = shalt.err (!%p3724_p0)
}
  0x22   :  { %59 = dma.hbm_to_vmem [thread:$0]  %s5062_s5, 4096, %s54_s22, [#allocation6], %s3778_s14, %s3778_s14, %s3779_s15  }
  0x23   :  { %s3736_s27 = scalar_lea.vmem %s68_s24, 1024  ;;  %p3741_p2 = scmp.lt.s32.totalorder %s68_s24, %s68_s24 }
  0x24   :  { %p3737_p1 = scmp.ne.s32.totalorder %s68_s24, %s3736_s27  ;;  %p3742_p3 = scmp.lt.s32.totalorder %s3736_s27, %s3736_s27 }
  0x26   :  { %p3743_p4 = por %p3742_p3, %p3741_p2 }
  0x28   :  { %p3744_p5 = pnand %p3743_p4, %p3737_p1 }
  0x2a   :  { %3747 = shalt.err (!%p3744_p5)
}
  0x2b   :  { %s3782_s2 = smov 64   ;;  %s3783_s28 = smov 4  }
  0x2c   :  { %73 = dma.hbm_to_vmem [thread:$0]  %s5064_s7, 1024, %s68_s24, [#allocation9], %s3782_s2, %s3782_s2, %s3783_s28  }
  0x2d   :  { %3768 = dma.done.wait [#allocation3], 4096  }
  0x2e   :  { %3769 = vsyncadd [#allocation3], 4294963200 }
  0x2f   :  { %3770 = dma.done.wait [#allocation6], 8192  }
  0x30   :  { %3771 = vsyncadd [#allocation6], 4294959104 }
  0x31   :  { %3772 = dma.done.wait [#allocation9], 1024  }
  0x32   :  { %3773 = vsyncadd [#allocation9], 4294966272  ;;  %v5071_v0 = vmov 0   ;;  %v97_v1 = vld [vmem:[%s5058_s1] sm:$0xff]  ;;  %vm164_vm0 = vcmask 1043456   ;;  %v98_v2 = vld [vmem:[%s5058_s1 + $0x8] sm:$0xff]  ;;  %v101_v45 = vlaneseq }
  0x33   :  { %209 = vmatprep.mubr.bf16.mxu0 %v5071_v0  ;;  %282 = vmatprep.mubr.bf16.mxu1 %v5071_v0  ;;  %v2981_v3 = vcombine.high %v97_v1, %v97_v1  ;;  %v2983_v4 = vcombine.high %v98_v2, %v98_v2  ;;  %v2980_v5 = vcombine.low %v97_v1, %v97_v1  ;;  %v3192_v7 = vld [vmem:[%s5057_s0] sm:$0xff]   ;;  %v3863_v11 = vld [vmem:[#allocation2 + $0xec] ss:$16 sps:$4 sm:$0xff]   ;;  %vm151_vm1 = vcmask 64512   ;;  %v3867_v13 = vld [vmem:[#allocation2 + $0xe8] ss:$16 sps:$4 sm:$0xff]  }
  0x34   :  { %v2982_v6 = vcombine.low %v98_v2, %v98_v2  ;;  %v3861_v8 = vld [vmem:[#allocation2 + $0xe4] ss:$16 sps:$4 sm:$0xff]   ;;  %v3865_v12 = vld [vmem:[#allocation2 + $0xe0] ss:$16 sps:$4 sm:$0xff]   ;;  %v3873_v15 = vld [vmem:[#allocation2 + $0xcc] ss:$16 sps:$4 sm:$0xff]  }
  0x35   :  { %2984 = vmatprep.subr.msk.bf16.mxu0 %vm164_vm0, %v2981_v3  ;;  %2989 = vmatprep.subr.msk.bf16.mxu1 %vm164_vm0, %v2983_v4  ;;  %v166_v9 = vsel %vm164_vm0, %v2980_v5, 0  ;;  %v3871_v14 = vld [vmem:[#allocation2 + $0xc4] ss:$16 sps:$4 sm:$0xff]   ;;  %v3875_v16 = vld [vmem:[#allocation2 + $0xc0] ss:$16 sps:$4 sm:$0xff]   ;;  %v3205_v20 = vld [vmem:[%s5057_s0 + $0x8] sm:$0xff]  }
  0x36   :  { %v172_v10 = vsel %vm164_vm0, %v2982_v6, 0  ;;  %192 = vmatpush1.bf16.msra.mxu0 %v166_v9  ;;  %v3879_v17 = vld [vmem:[#allocation2 + $0xc8] ss:$16 sps:$4 sm:$0xff]   ;;  %v3883_v18 = vld [vmem:[#allocation2 + $0xa4] ss:$16 sps:$4 sm:$0xff]   ;;  %v4020_v46 = vshrl.u32 %v101_v45, 7 }
  0x37   :  { %265 = vmatpush1.bf16.msra.mxu1 %v172_v10  ;;  %515 = vmatprep.subr.bf16.mxu0 %v3861_v8  ;;  %v3887_v19 = vld [vmem:[#allocation2 + $0xac] ss:$16 sps:$4 sm:$0xff]   ;;  %v3894_v21 = vld [vmem:[#allocation2 + $0xa0] ss:$16 sps:$4 sm:$0xff]   ;;  %v3898_v22 = vld [vmem:[#allocation2 + $0xa8] ss:$16 sps:$4 sm:$0xff]  }
  0x38   :  { %556 = vmatprep.subr.bf16.mxu1 %v3863_v11  ;;  %v3900_v23 = vld [vmem:[#allocation2 + $0x84] ss:$16 sps:$4 sm:$0xff]   ;;  %v3904_v24 = vld [vmem:[#allocation2 + $0x8c] ss:$16 sps:$4 sm:$0xff]   ;;  %v3910_v25 = vld [vmem:[#allocation2 + $0x80] ss:$16 sps:$4 sm:$0xff]  }
  0x39   :  { %2985 = vmatmul.mubr.msk.bf16.vlgmr.msra.gmra.mxu0 %vm151_vm1, %v3192_v7  ;;  %v3912_v26 = vld [vmem:[#allocation2 + $0x88] ss:$16 sps:$4 sm:$0xff]   ;;  %v3914_v27 = vld [vmem:[#allocation2 + $0x64] ss:$16 sps:$4 sm:$0xff]   ;;  %v3918_v28 = vld [vmem:[#allocation2 + $0x6c] ss:$16 sps:$4 sm:$0xff]  }
  0x3a   :  { %2990 = vmatmul.mubr.msk.bf16.vlgmr.msra.gmra.mxu1 %vm151_vm1, %v3192_v7  ;;  %516 = vmatpush1.bf16.msra.mxu0 %v3865_v12  ;;  %v3218_v29 = vld [vmem:[%s5057_s0 + $0x10] sm:$0xff]   ;;  %v3927_v31 = vld [vmem:[#allocation2 + $0x68] ss:$16 sps:$4 sm:$0xff]   ;;  %v3935_v33 = vld [vmem:[#allocation2 + $0x4c] ss:$16 sps:$4 sm:$0xff]   ;;  %5075 = vst [vmem:[#allocation15_spill] sm:$0xff] %v4020_v46 }
  0x3b   :  { %557 = vmatpush1.bf16.msra.mxu1 %v3867_v13  ;;  %517 = vmatprep.subr.bf16.mxu0 %v3871_v14  ;;  %v3925_v30 = vld [vmem:[#allocation2 + $0x60] ss:$16 sps:$4 sm:$0xff]   ;;  %v3931_v32 = vld [vmem:[#allocation2 + $0x44] ss:$16 sps:$4 sm:$0xff]   ;;  %v3943_v35 = vld [vmem:[#allocation2 + $0x48] ss:$16 sps:$4 sm:$0xff]  }
  0x3c   :  { %558 = vmatprep.subr.bf16.mxu1 %v3873_v15  ;;  %219 = vmatprep.mubr.bf16.mxu0 %v5071_v0  ;;  %v3939_v34 = vld [vmem:[#allocation2 + $0x40] ss:$16 sps:$4 sm:$0xff]   ;;  %v3231_v36 = vld [vmem:[%s5057_s0 + $0x18] sm:$0xff]   ;;  %v3950_v37 = vld [vmem:[#allocation2 + $0x24] ss:$16 sps:$4 sm:$0xff]   ;;  %v5067_v47 = vsub.s32 2, %v4020_v46 }
  0x3d   :  { %292 = vmatprep.mubr.bf16.mxu1 %v5071_v0  ;;  %v3952_v38 = vld [vmem:[#allocation2 + $0x2c] ss:$16 sps:$4 sm:$0xff]   ;;  %v3956_v39 = vld [vmem:[#allocation2 + $0x20] ss:$16 sps:$4 sm:$0xff]   ;;  %v3958_v40 = vld [vmem:[#allocation2 + $0x28] ss:$16 sps:$4 sm:$0xff]  }
  0x3e   :  { %518 = vmatpush1.bf16.msra.mxu0 %v3875_v16  ;;  %v3960_v41 = vld [vmem:[#allocation2 + $0x4] ss:$16 sps:$4 sm:$0xff]   ;;  %v3962_v42 = vld [vmem:[#allocation2 + $0xc] ss:$16 sps:$4 sm:$0xff]   ;;  %v3968_v43 = vld [vmem:[#allocation2] ss:$16 sps:$4 sm:$0xff]  }
  0x3f   :  { %559 = vmatpush1.bf16.msra.mxu1 %v3879_v17  ;;  %519 = vmatprep.subr.bf16.mxu0 %v3883_v18  ;;  %v3970_v44 = vld [vmem:[#allocation2 + $0x8] ss:$16 sps:$4 sm:$0xff]   ;;  %v5070_v48 = vsub.s32 0, %v4020_v46  ;;  %v5068_v49 = vsub.s32 3, %v4020_v46  ;;  %v99_v50 = vld [vmem:[%s5060_s3] sm:$0xf] }
  0x40   :  { %560 = vmatprep.subr.bf16.mxu1 %v3887_v19  ;;  %v4034_v53 = vrot.slane %v99_v50, %v5067_v47  ;;  %v5069_v54 = vsub.s32 1, %v4020_v46  ;;  %vm3786_vm2 = vmmov 0   ;;  %s3787_s22 = smov [#allocation10]  }
  0x41   :  { %2986 = vmatmul.mubr.msk.bf16.gmra.mxu0 %vm151_vm1, %v3205_v20  ;;  %v104_v57 = vrot.slane %v99_v50, %v5070_v48  ;;  %v4045_v58 = vrot.slane %v99_v50, %v5068_v49  ;;  %s2965_s23 = sshll.u32 %s3787_s22, 4  ;;  %s2966_s23 = int_to_ptr.vmem [resolvable:$true] %s2965_s23 }
  0x42   :  { %2991 = vmatmul.mubr.msk.bf16.gmra.mxu1 %vm151_vm1, %v3205_v20  ;;  %520 = vmatpush1.bf16.msra.mxu0 %v3894_v21  ;;  %v108_v61 = vrot.slane %v99_v50, %v5069_v54  ;;  %s3748_s24 = scalar_lea.vmem %s2966_s23, 128  ;;  %p3753_p7 = scmp.lt.s32.totalorder %s2966_s23, %s2966_s23 }
  0x43   :  { %561 = vmatpush1.bf16.msra.mxu1 %v3898_v22  ;;  %521 = vmatprep.subr.bf16.mxu0 %v3900_v23  ;;  %p3749_p6 = scmp.ne.s32.totalorder %s2966_s23, %s3748_s24  ;;  %p3754_p8 = scmp.lt.s32.totalorder %s3748_s24, %s3748_s24 }
  0x44   :  { %562 = vmatprep.subr.bf16.mxu1 %v3904_v24  ;;  %229 = vmatprep.mubr.bf16.mxu0 %v5071_v0 }
  0x45   :  { %302 = vmatprep.mubr.bf16.mxu1 %v5071_v0  ;;  %p3755_p9 = por %p3754_p8, %p3753_p7 }
  0x46   :  { %522 = vmatpush1.bf16.msra.mxu0 %v3910_v25 }
  0x47   :  { %563 = vmatpush1.bf16.msra.mxu1 %v3912_v26  ;;  %523 = vmatprep.subr.bf16.mxu0 %v3914_v27  ;;  %p3756_p10 = pnand %p3755_p9, %p3749_p6 }
  0x48   :  { %564 = vmatprep.subr.bf16.mxu1 %v3918_v28 }
  0x49   :  { %2987 = vmatmul.mubr.msk.bf16.gmra.mxu0 %vm151_vm1, %v3218_v29 }
  0x4a   :  { %2992 = vmatmul.mubr.msk.bf16.gmra.mxu1 %vm151_vm1, %v3218_v29  ;;  %524 = vmatpush1.bf16.msra.mxu0 %v3925_v30 }
  0x4b   :  { %565 = vmatpush1.bf16.msra.mxu1 %v3927_v31  ;;  %525 = vmatprep.subr.bf16.mxu0 %v3931_v32 }
  0x4c   :  { %566 = vmatprep.subr.bf16.mxu1 %v3935_v33  ;;  %239 = vmatprep.mubr.bf16.mxu0 %v5071_v0 }
  0x4d   :  { %312 = vmatprep.mubr.bf16.mxu1 %v5071_v0 }
  0x4e   :  { %526 = vmatpush1.bf16.msra.mxu0 %v3939_v34 }
  0x4f   :  { %567 = vmatpush1.bf16.msra.mxu1 %v3943_v35  ;;  %527 = vmatprep.subr.bf16.mxu0 %v3950_v37 }
  0x50   :  { %568 = vmatprep.subr.bf16.mxu1 %v3952_v38 }
  0x51   :  { %2988 = vmatmul.mubr.msk.bf16.gmra.mxu0 %vm151_vm1, %v3231_v36 }
  0x52   :  { %2993 = vmatmul.mubr.msk.bf16.gmra.mxu1 %vm151_vm1, %v3231_v36  ;;  %528 = vmatpush1.bf16.msra.mxu0 %v3956_v39 }
  0x53   :  { %569 = vmatpush1.bf16.msra.mxu1 %v3958_v40  ;;  %529 = vmatprep.subr.bf16.mxu0 %v3960_v41 }
  0x54   :  { %570 = vmatprep.subr.bf16.mxu1 %v3962_v42  ;;  %547 = vmatprep.mubr.bf16.mxu0 %v5071_v0 }
  0x55   :  { %588 = vmatprep.mubr.bf16.mxu1 %v5071_v0 }
  0x56   :  { %530 = vmatpush1.bf16.msra.mxu0 %v3968_v43 }
  0x57   :  { %571 = vmatpush1.bf16.msra.mxu1 %v3970_v44  ;;  %626 = vmatprep.subr.bf16.mxu0 %v3861_v8 }
  0x58   :  { %667 = vmatprep.subr.bf16.mxu1 %v3863_v11 }
  0x59   :  { %548 = vmatmul.mubr.bf16.vlgmr.msra.gmra.mxu0 %v5071_v0 }
  0x5a   :  { %589 = vmatmul.mubr.bf16.vlgmr.msra.gmra.mxu1 %v5071_v0  ;;  %627 = vmatpush1.bf16.msra.mxu0 %v3865_v12 }
  0x5b   :  { %668 = vmatpush1.bf16.msra.mxu1 %v3867_v13  ;;  %628 = vmatprep.subr.bf16.mxu0 %v3871_v14 }
  0x5c   :  { %669 = vmatprep.subr.bf16.mxu1 %v3873_v15  ;;  %658 = vmatprep.mubr.bf16.mxu0 %v5071_v0 }
  0x5d   :  { %699 = vmatprep.mubr.bf16.mxu1 %v5071_v0 }
  0x5e   :  { %629 = vmatpush1.bf16.msra.mxu0 %v3875_v16 }
  0x5f   :  { %670 = vmatpush1.bf16.msra.mxu1 %v3879_v17  ;;  %630 = vmatprep.subr.bf16.mxu0 %v3883_v18 }
  0x60   :  { %671 = vmatprep.subr.bf16.mxu1 %v3887_v19 }
  0x62   :  { %631 = vmatpush1.bf16.msra.mxu0 %v3894_v21 }
  0x63   :  { %672 = vmatpush1.bf16.msra.mxu1 %v3898_v22  ;;  %632 = vmatprep.subr.bf16.mxu0 %v3900_v23 }
  0x64   :  { %673 = vmatprep.subr.bf16.mxu1 %v3904_v24 }
  0x66   :  { %633 = vmatpush1.bf16.msra.mxu0 %v3910_v25 }
  0x67   :  { %674 = vmatpush1.bf16.msra.mxu1 %v3912_v26  ;;  %634 = vmatprep.subr.bf16.mxu0 %v3914_v27 }
  0x68   :  { %675 = vmatprep.subr.bf16.mxu1 %v3918_v28 }
  0x6a   :  { %635 = vmatpush1.bf16.msra.mxu0 %v3925_v30 }
  0x6b   :  { %676 = vmatpush1.bf16.msra.mxu1 %v3927_v31  ;;  %636 = vmatprep.subr.bf16.mxu0 %v3931_v32 }
  0x6c   :  { %677 = vmatprep.subr.bf16.mxu1 %v3935_v33 }
  0x6e   :  { %637 = vmatpush1.bf16.msra.mxu0 %v3939_v34 }
  0x6f   :  { %678 = vmatpush1.bf16.msra.mxu1 %v3943_v35  ;;  %638 = vmatprep.subr.bf16.mxu0 %v3950_v37 }
  0x70   :  { %679 = vmatprep.subr.bf16.mxu1 %v3952_v38 }
  0x72   :  { %639 = vmatpush1.bf16.msra.mxu0 %v3956_v39 }
  0x73   :  { %680 = vmatpush1.bf16.msra.mxu1 %v3958_v40  ;;  %640 = vmatprep.subr.bf16.mxu0 %v3960_v41 }
  0x74   :  { %681 = vmatprep.subr.bf16.mxu1 %v3962_v42 }
  0x76   :  { %641 = vmatpush1.bf16.msra.mxu0 %v3968_v43 }
  0x77   :  { %682 = vmatpush1.bf16.msra.mxu1 %v3970_v44  ;;  %737 = vmatprep.subr.bf16.mxu0 %v3861_v8 }
  0x78   :  { %778 = vmatprep.subr.bf16.mxu1 %v3863_v11 }
  0xf9   :  { %v4028_v51 = vpop.f32.mrf.mxu0 }
  0xfa   :  { %v4030_v52 = vpop.f32.mrf.mxu1 }
  0xfb   :  { %v4037_v55 = vpop.f32.mrf.mxu0 }
  0xfc   :  { %v4039_v56 = vpop.f32.mrf.mxu1 }
  0xfd   :  { %v215_v59 = vpop.f32.mrf.mxu0 }
  0xfe   :  { %v288_v60 = vpop.f32.mrf.mxu1  ;;  %v4049_v62 = vadd.f32 %v215_v59, %v104_v57 }
  0xff   :  { %v4052_v63 = vadd.f32 %v288_v60, %v4034_v53  ;;  %v217_v1 = vpop.f32.mrf.mxu0 }
 0x100   :  { %v290_v2 = vpop.f32.mrf.mxu1  ;;  %v4054_v3 = vadd.f32 %v217_v1, %v108_v61 }
 0x101   :  { %v4057_v4 = vadd.f32 %v290_v2, %v4045_v58  ;;  %v221_v5 = vpop.f32.mrf.mxu0 }
 0x102   :  { %v294_v6 = vpop.f32.mrf.mxu1  ;;  %v4059_v7 = vadd.f32 %v221_v5, %v104_v57 }
 0x103   :  { %v4062_v9 = vadd.f32 %v294_v6, %v4034_v53  ;;  %v223_v10 = vpop.f32.mrf.mxu0 }
 0x104   :  { %v296_v20 = vpop.f32.mrf.mxu1  ;;  %v4064_v29 = vadd.f32 %v223_v10, %v108_v61 }
 0x105   :  { %5076 = vst [vmem:[#allocation16_spill] sm:$0xff] %v4062_v9  ;;  %v4067_v36 = vadd.f32 %v296_v20, %v4045_v58  ;;  %v225_v45 = vpop.f32.mrf.mxu0 }
 0x106   :  { %v298_v50 = vpop.f32.mrf.mxu1  ;;  %v4069_v59 = vadd.f32 %v225_v45, %v104_v57 }
 0x107   :  { %v4072_v60 = vadd.f32 %v298_v50, %v4034_v53  ;;  %v227_v1 = vpop.f32.mrf.mxu0 }
 0x108   :  { %5077 = vst [vmem:[#allocation17_spill] sm:$0xff] %v4069_v59  ;;  %v300_v2 = vpop.f32.mrf.mxu1  ;;  %v4074_v5 = vadd.f32 %v227_v1, %v108_v61 }
 0x109   :  { %5078 = vst [vmem:[#allocation18_spill] sm:$0xff] %v4072_v60  ;;  %v4077_v6 = vadd.f32 %v300_v2, %v4045_v58  ;;  %v231_v47 = vpop.f32.mrf.mxu0 }
 0x10a   :  { %5079 = vst [vmem:[#allocation19_spill] sm:$0xff] %v4074_v5  ;;  %v304_v10 = vpop.f32.mrf.mxu1  ;;  %v4079_v49 = vadd.f32 %v231_v47, %v104_v57 }
 0x10b   :  { %5080 = vst [vmem:[#allocation20_spill] sm:$0xff] %v4077_v6  ;;  %v4082_v20 = vadd.f32 %v304_v10, %v4034_v53  ;;  %v233_v54 = vpop.f32.mrf.mxu0 }
 0x10c   :  { %5081 = vst [vmem:[#allocation21_spill] sm:$0xff] %v4079_v49  ;;  %v306_v45 = vpop.f32.mrf.mxu1  ;;  %v4084_v48 = vadd.f32 %v233_v54, %v108_v61 }
 0x10d   :  { %5082 = vst [vmem:[#allocation22_spill] sm:$0xff] %v4082_v20  ;;  %v4087_v50 = vadd.f32 %v306_v45, %v4045_v58  ;;  %v235_v0 = vpop.f32.mrf.mxu0 }
 0x10e   :  { %5083 = vst [vmem:[#allocation23_spill] sm:$0xff] %v4084_v48  ;;  %v308_v1 = vpop.f32.mrf.mxu1  ;;  %v4089_v46 = vadd.f32 %v235_v0, %v104_v57 }
 0x10f   :  { %5084 = vst [vmem:[#allocation24_spill] sm:$0xff] %v4087_v50  ;;  %v4092_v2 = vadd.f32 %v308_v1, %v4034_v53  ;;  %v237_v60 = vpop.f32.mrf.mxu0 }
 0x110   :  { %5085 = vst [vmem:[#allocation25_spill] sm:$0xff] %v4089_v46  ;;  %v310_v47 = vpop.f32.mrf.mxu1  ;;  %v4094_v49 = vadd.f32 %v237_v60, %v108_v61 }
 0x111   :  { %5086 = vst [vmem:[#allocation26_spill] sm:$0xff] %v4092_v2  ;;  %v4097_v10 = vadd.f32 %v310_v47, %v4045_v58  ;;  %v241_v20 = vpop.f32.mrf.mxu0 }
 0x112   :  { %5087 = vst [vmem:[#allocation27_spill] sm:$0xff] %v4094_v49  ;;  %v314_v54 = vpop.f32.mrf.mxu1  ;;  %v4099_v48 = vadd.f32 %v241_v20, %v104_v57 }
 0x113   :  { %5088 = vst [vmem:[#allocation28_spill] sm:$0xff] %v4097_v10  ;;  %v4102_v45 = vadd.f32 %v314_v54, %v4034_v53  ;;  %v243_v50 = vpop.f32.mrf.mxu0 }
 0x114   :  { %5089 = vst [vmem:[#allocation29_spill] sm:$0xff] %v4099_v48  ;;  %v316_v0 = vpop.f32.mrf.mxu1  ;;  %v4104_v46 = vadd.f32 %v243_v50, %v108_v61  ;;  %v212_v48 = vadd.f32 %v4028_v51, %v104_v57 }
 0x115   :  { %5090 = vst [vmem:[#allocation30_spill] sm:$0xff] %v4102_v45  ;;  %v4107_v1 = vadd.f32 %v316_v0, %v4045_v58  ;;  %v245_v2 = vpop.f32.mrf.mxu0  ;;  %v214_v0 = vadd.f32 %v4037_v55, %v108_v61 }
 0x116   :  { %5091 = vst [vmem:[#allocation31_spill] sm:$0xff] %v4104_v46  ;;  %v318_v60 = vpop.f32.mrf.mxu1  ;;  %v4109_v49 = vadd.f32 %v245_v2, %v104_v57  ;;  %v287_v57 = vadd.f32 %v4039_v56, %v4045_v58 }
 0x117   :  { %5092 = vst [vmem:[#allocation32_spill] sm:$0xff] %v4107_v1  ;;  %v4112_v47 = vadd.f32 %v318_v60, %v4034_v53  ;;  %v247_v10 = vpop.f32.mrf.mxu0 }
 0x118   :  { %5093 = vst [vmem:[#allocation33_spill] sm:$0xff] %v4109_v49  ;;  %v320_v20 = vpop.f32.mrf.mxu1  ;;  %v4115_v54 = vadd.f32 %v247_v10, %v108_v61 }
 0x119   :  { %5094 = vst [vmem:[#allocation34_spill] sm:$0xff] %v4112_v47  ;;  %v4118_v45 = vadd.f32 %v320_v20, %v4045_v58  ;;  %v549_v50 = vpop.f32.mrf.mxu0  ;;  %v285_v20 = vadd.f32 %v4030_v52, %v4034_v53 }
 0x11a   :  { %v590_v46 = vpop.f32.mrf.mxu1  ;;  %v597_v1 = vadd.f32 %v549_v50, %v212_v48 }
 0x11b   :  { %v551_v6 = vpop.f32.mrf.mxu0  ;;  %v599_v61 = vadd.f32 %v590_v46, %v285_v20 }
 0x11c   :  { %v592_v2 = vpop.f32.mrf.mxu1  ;;  %v3026_v49 = vmul.f32 -1.442695, %v597_v1  ;;  %v598_v5 = vadd.f32 %v551_v6, %v214_v0 }
 0x11d   :  { %v553_v60 = vpop.f32.mrf.mxu0  ;;  %v600_v10 = vadd.f32 %v592_v2, %v287_v57 }
 0x11e   :  { %v594_v47 = vpop.f32.mrf.mxu1  ;;  %3348 = vpow2.f32 %v3026_v49  ;;  %v3027_v59 = vmul.f32 -1.442695, %v598_v5  ;;  %v5095_v60 = vmov 0  }
 0x11f   :  { %v554_v9 = vpop.f32.mrf.mxu0  ;;  %v3028_v55 = vmul.f32 -1.442695, %v600_v10 }
 0x120   :  { %v595_v51 = vpop.f32.mrf.mxu1  ;;  %3350 = vpow2.f32 %v3027_v59 }
 0x121   :  { %3352 = vpow2.f32 %v3028_v55 }
 0x12b   :  { %v3349_v48 = vpop.eup %3348 }
 0x12c   :  { %v604_v50 = vadd.f32 1.0, %v3349_v48 }
 0x12d   :  { %v3351_v1 = vpop.eup %3350 }
 0x12e   :  { %3354 = vrcp.f32 %v604_v50  ;;  %v610_v6 = vadd.f32 1.0, %v3351_v1  ;;  %v3353_v49 = vpop.eup %3352 }
 0x12f   :  { %3356 = vtanh.f32 %v599_v61  ;;  %v617_v47 = vadd.f32 1.0, %v3353_v49 }
 0x130   :  { %3358 = vrcp.f32 %v610_v6 }
 0x131   :  { %3360 = vrcp.f32 %v617_v47 }
 0x13b   :  { %v3355_v9 = vpop.eup %3354 }
 0x13c   :  { %v3357_v59 = vpop.eup %3356 }
 0x13d   :  { %v3359_v5 = vpop.eup %3358  ;;  %v621_v58 = vmul.f32 %v3357_v59, %v3355_v9 }
 0x13e   :  { %v620_v56 = vmul.f32 0.0, %v3359_v5  ;;  %v3361_v46 = vpop.eup %3360 }
 0x140   :  { %v4125_v0 = vadd.f32 %v621_v58, %v620_v56 }
 0x142   :  { %3362 = vtanh.f32 %v4125_v0 }
 0x14f   :  { %v3363_v52 = vpop.eup %3362 }
 0x150   :  { %v4128_v53 = vmul.f32 %v3363_v52, %v3361_v46 }
 0x152   :  { %v625_v2 = vpack.c.bf16 %v4128_v53, %v4128_v53 }
 0x154   :  { %659 = vmatmul.mubr.bf16.vlgmr.msra.gmra.mxu0 %v625_v2  ;;  %700 = vmatmul.mubr.bf16.vlgmr.msra.gmra.mxu1 %v625_v2 }
 0x155   :  { %738 = vmatpush1.bf16.msra.mxu0 %v3865_v12  ;;  %779 = vmatpush1.bf16.msra.mxu1 %v3867_v13 }
 0x156   :  { %739 = vmatprep.subr.bf16.mxu0 %v3871_v14  ;;  %780 = vmatprep.subr.bf16.mxu1 %v3873_v15 }
 0x157   :  { %769 = vmatprep.mubr.bf16.mxu0 %v5095_v60  ;;  %810 = vmatprep.mubr.bf16.mxu1 %v5095_v60 }
 0x159   :  { %740 = vmatpush1.bf16.msra.mxu0 %v3875_v16  ;;  %781 = vmatpush1.bf16.msra.mxu1 %v3879_v17 }
 0x15a   :  { %741 = vmatprep.subr.bf16.mxu0 %v3883_v18  ;;  %782 = vmatprep.subr.bf16.mxu1 %v3887_v19 }
 0x15d   :  { %742 = vmatpush1.bf16.msra.mxu0 %v3894_v21  ;;  %783 = vmatpush1.bf16.msra.mxu1 %v3898_v22 }
 0x15e   :  { %743 = vmatprep.subr.bf16.mxu0 %v3900_v23  ;;  %784 = vmatprep.subr.bf16.mxu1 %v3904_v24 }
 0x161   :  { %744 = vmatpush1.bf16.msra.mxu0 %v3910_v25  ;;  %785 = vmatpush1.bf16.msra.mxu1 %v3912_v26 }
 0x162   :  { %745 = vmatprep.subr.bf16.mxu0 %v3914_v27  ;;  %786 = vmatprep.subr.bf16.mxu1 %v3918_v28 }
 0x165   :  { %746 = vmatpush1.bf16.msra.mxu0 %v3925_v30  ;;  %787 = vmatpush1.bf16.msra.mxu1 %v3927_v31 }
 0x166   :  { %747 = vmatprep.subr.bf16.mxu0 %v3931_v32  ;;  %788 = vmatprep.subr.bf16.mxu1 %v3935_v33 }
 0x169   :  { %748 = vmatpush1.bf16.msra.mxu0 %v3939_v34  ;;  %789 = vmatpush1.bf16.msra.mxu1 %v3943_v35 }
 0x16a   :  { %749 = vmatprep.subr.bf16.mxu0 %v3950_v37  ;;  %790 = vmatprep.subr.bf16.mxu1 %v3952_v38 }
 0x16d   :  { %750 = vmatpush1.bf16.msra.mxu0 %v3956_v39  ;;  %791 = vmatpush1.bf16.msra.mxu1 %v3958_v40 }
 0x16e   :  { %751 = vmatprep.subr.bf16.mxu0 %v3960_v41  ;;  %792 = vmatprep.subr.bf16.mxu1 %v3962_v42 }
 0x171   :  { %752 = vmatpush1.bf16.msra.mxu0 %v3968_v43  ;;  %793 = vmatpush1.bf16.msra.mxu1 %v3970_v44 }
 0x172   :  { %848 = vmatprep.subr.bf16.mxu0 %v3861_v8  ;;  %889 = vmatprep.subr.bf16.mxu1 %v3863_v11 }
 0x214   :  { %v660_v51 = vpop.f32.mrf.mxu0  ;;  %v701_v57 = vpop.f32.mrf.mxu1 }
 0x215   :  { %v708_v10 = vadd.f32 %v660_v51, %v4049_v62  ;;  %v710_v5 = vadd.f32 %v701_v57, %v4052_v63 }
 0x216   :  { %v662_v20 = vpop.f32.mrf.mxu0  ;;  %v703_v55 = vpop.f32.mrf.mxu1 }
 0x217   :  { %v3029_v48 = vmul.f32 -1.442695, %v708_v10  ;;  %v709_v61 = vadd.f32 %v662_v20, %v4054_v3  ;;  %v711_v59 = vadd.f32 %v703_v55, %v4057_v4 }
 0x218   :  { %v664_v50 = vpop.f32.mrf.mxu0  ;;  %v705_v1 = vpop.f32.mrf.mxu1 }
 0x219   :  { %3364 = vpow2.f32 %v3029_v48  ;;  %v3030_v6 = vmul.f32 -1.442695, %v709_v61  ;;  %v3031_v47 = vmul.f32 -1.442695, %v711_v59 }
 0x21a   :  { %v665_v49 = vpop.f32.mrf.mxu0  ;;  %v706_v9 = vpop.f32.mrf.mxu1 }
 0x21b   :  { %3366 = vpow2.f32 %v3030_v6 }
 0x21c   :  { %3368 = vtanh.f32 %v710_v5 }
 0x21d   :  { %3370 = vpow2.f32 %v3031_v47 }
 0x226   :  { %v3365_v56 = vpop.eup %3364 }
 0x227   :  { %v715_v58 = vadd.f32 1.0, %v3365_v56 }
 0x228   :  { %v3367_v62 = vpop.eup %3366 }
 0x229   :  { %3372 = vrcp.f32 %v715_v58  ;;  %v721_v46 = vadd.f32 1.0, %v3367_v62  ;;  %v3369_v3 = vpop.eup %3368 }
 0x22a   :  { %v3371_v52 = vpop.eup %3370 }
 0x22b   :  { %3374 = vrcp.f32 %v721_v46  ;;  %v728_v20 = vadd.f32 1.0, %v3371_v52  ;;  %v5096_v46 = vld [vmem:[#allocation16_spill] sm:$0xff] }
 0x22d   :  { %3376 = vrcp.f32 %v728_v20 }
 0x236   :  { %v3373_v2 = vpop.eup %3372 }
 0x237   :  { %v732_v51 = vmul.f32 %v3373_v2, %v3369_v3 }
 0x238   :  { %v3375_v10 = vpop.eup %3374 }
 0x239   :  { %v731_v48 = vmul.f32 %v3375_v10, %v4125_v0 }
 0x23a   :  { %v3377_v63 = vpop.eup %3376 }
 0x23b   :  { %v4171_v4 = vadd.f32 %v732_v51, %v731_v48 }
 0x23d   :  { %3378 = vtanh.f32 %v4171_v4 }
 0x24a   :  { %v3379_v57 = vpop.eup %3378 }
 0x24b   :  { %v4174_v55 = vmul.f32 %v3379_v57, %v3377_v63 }
 0x24d   :  { %v736_v61 = vpack.c.bf16 %v4174_v55, %v4174_v55 }
 0x24f   :  { %770 = vmatmul.mubr.bf16.vlgmr.msra.gmra.mxu0 %v736_v61  ;;  %811 = vmatmul.mubr.bf16.vlgmr.msra.gmra.mxu1 %v736_v61 }
 0x250   :  { %849 = vmatpush1.bf16.msra.mxu0 %v3865_v12  ;;  %890 = vmatpush1.bf16.msra.mxu1 %v3867_v13 }
 0x251   :  { %850 = vmatprep.subr.bf16.mxu0 %v3871_v14  ;;  %891 = vmatprep.subr.bf16.mxu1 %v3873_v15 }
 0x252   :  { %880 = vmatprep.mubr.bf16.mxu0 %v5095_v60  ;;  %921 = vmatprep.mubr.bf16.mxu1 %v5095_v60 }
 0x254   :  { %851 = vmatpush1.bf16.msra.mxu0 %v3875_v16  ;;  %892 = vmatpush1.bf16.msra.mxu1 %v3879_v17 }
 0x255   :  { %852 = vmatprep.subr.bf16.mxu0 %v3883_v18  ;;  %893 = vmatprep.subr.bf16.mxu1 %v3887_v19 }
 0x258   :  { %853 = vmatpush1.bf16.msra.mxu0 %v3894_v21  ;;  %894 = vmatpush1.bf16.msra.mxu1 %v3898_v22 }
 0x259   :  { %854 = vmatprep.subr.bf16.mxu0 %v3900_v23  ;;  %895 = vmatprep.subr.bf16.mxu1 %v3904_v24 }
 0x25c   :  { %855 = vmatpush1.bf16.msra.mxu0 %v3910_v25  ;;  %896 = vmatpush1.bf16.msra.mxu1 %v3912_v26 }
 0x25d   :  { %856 = vmatprep.subr.bf16.mxu0 %v3914_v27  ;;  %897 = vmatprep.subr.bf16.mxu1 %v3918_v28 }
 0x260   :  { %857 = vmatpush1.bf16.msra.mxu0 %v3925_v30  ;;  %898 = vmatpush1.bf16.msra.mxu1 %v3927_v31 }
 0x261   :  { %858 = vmatprep.subr.bf16.mxu0 %v3931_v32  ;;  %899 = vmatprep.subr.bf16.mxu1 %v3935_v33 }
 0x264   :  { %859 = vmatpush1.bf16.msra.mxu0 %v3939_v34  ;;  %900 = vmatpush1.bf16.msra.mxu1 %v3943_v35 }
 0x265   :  { %860 = vmatprep.subr.bf16.mxu0 %v3950_v37  ;;  %901 = vmatprep.subr.bf16.mxu1 %v3952_v38 }
 0x268   :  { %861 = vmatpush1.bf16.msra.mxu0 %v3956_v39  ;;  %902 = vmatpush1.bf16.msra.mxu1 %v3958_v40 }
 0x269   :  { %862 = vmatprep.subr.bf16.mxu0 %v3960_v41  ;;  %903 = vmatprep.subr.bf16.mxu1 %v3962_v42 }
 0x26c   :  { %863 = vmatpush1.bf16.msra.mxu0 %v3968_v43  ;;  %904 = vmatpush1.bf16.msra.mxu1 %v3970_v44 }
 0x26d   :  { %959 = vmatprep.subr.bf16.mxu0 %v3861_v8  ;;  %1000 = vmatprep.subr.bf16.mxu1 %v3863_v11 }
 0x30f   :  { %v771_v0 = vpop.f32.mrf.mxu0  ;;  %v812_v50 = vpop.f32.mrf.mxu1 }
 0x310   :  { %v819_v1 = vadd.f32 %v771_v0, %v4059_v7  ;;  %v821_v11 = vadd.f32 %v812_v50, %v5096_v46 }
 0x311   :  { %v773_v6 = vpop.f32.mrf.mxu0  ;;  %v814_v49 = vpop.f32.mrf.mxu1 }
 0x312   :  { %v3032_v9 = vmul.f32 -1.442695, %v819_v1  ;;  %v820_v59 = vadd.f32 %v773_v6, %v4064_v29  ;;  %v822_v8 = vadd.f32 %v814_v49, %v4067_v36 }
 0x313   :  { %v775_v5 = vpop.f32.mrf.mxu0  ;;  %v816_v47 = vpop.f32.mrf.mxu1 }
 0x314   :  { %3380 = vpow2.f32 %v3032_v9  ;;  %v3033_v56 = vmul.f32 -1.442695, %v820_v59  ;;  %v3034_v3 = vmul.f32 -1.442695, %v822_v8 }
 0x315   :  { %v776_v58 = vpop.f32.mrf.mxu0  ;;  %v817_v62 = vpop.f32.mrf.mxu1 }
 0x316   :  { %3382 = vpow2.f32 %v3033_v56 }
 0x317   :  { %3384 = vtanh.f32 %v821_v11 }
 0x318   :  { %3386 = vpow2.f32 %v3034_v3 }
 0x321   :  { %v3381_v52 = vpop.eup %3380 }
 0x322   :  { %v826_v2 = vadd.f32 1.0, %v3381_v52 }
 0x323   :  { %v3383_v7 = vpop.eup %3382 }
 0x324   :  { %3388 = vrcp.f32 %v826_v2  ;;  %v832_v51 = vadd.f32 1.0, %v3383_v7  ;;  %v3385_v29 = vpop.eup %3384  ;;  %v4274_v7 = vld [vmem:[#allocation2 + $0xe0] ss:$16 sps:$4 sm:$0xff]  }
 0x325   :  { %v3387_v10 = vpop.eup %3386 }
 0x326   :  { %3390 = vrcp.f32 %v832_v51  ;;  %v839_v57 = vadd.f32 1.0, %v3387_v10  ;;  %v4277_v51 = vld [vmem:[#allocation2 + $0xe8] ss:$16 sps:$4 sm:$0xff]   ;;  %v4283_v10 = vld [vmem:[#allocation2 + $0xcc] ss:$16 sps:$4 sm:$0xff]  }
 0x328   :  { %3392 = vrcp.f32 %v839_v57  ;;  %v4297_v57 = vld [vmem:[#allocation2 + $0xac] ss:$16 sps:$4 sm:$0xff]  }
 0x331   :  { %v3389_v20 = vpop.eup %3388 }
 0x332   :  { %v843_v48 = vmul.f32 %v3389_v20, %v3385_v29  ;;  %v4280_v29 = vld [vmem:[#allocation2 + $0xc4] ss:$16 sps:$4 sm:$0xff]   ;;  %v4288_v20 = vld [vmem:[#allocation2 + $0xc0] ss:$16 sps:$4 sm:$0xff]  }
 0x333   :  { %v3391_v63 = vpop.eup %3390 }
 0x334   :  { %v842_v61 = vmul.f32 %v3391_v63, %v4171_v4  ;;  %v4294_v63 = vld [vmem:[#allocation2 + $0xa4] ss:$16 sps:$4 sm:$0xff]  }
 0x335   :  { %v3393_v0 = vpop.eup %3392 }
 0x336   :  { %v4217_v36 = vadd.f32 %v843_v48, %v842_v61  ;;  %v4291_v48 = vld [vmem:[#allocation2 + $0xc8] ss:$16 sps:$4 sm:$0xff]   ;;  %v4300_v61 = vld [vmem:[#allocation2 + $0xa0] ss:$16 sps:$4 sm:$0xff]  }
 0x338   :  { %3394 = vtanh.f32 %v4217_v36 }
 0x345   :  { %v3395_v50 = vpop.eup %3394 }
 0x346   :  { %v4220_v1 = vmul.f32 %v3395_v50, %v3393_v0  ;;  %v4306_v0 = vld [vmem:[#allocation2 + $0x84] ss:$16 sps:$4 sm:$0xff]   ;;  %v4309_v50 = vld [vmem:[#allocation2 + $0x8c] ss:$16 sps:$4 sm:$0xff]  }
 0x348   :  { %v847_v6 = vpack.c.bf16 %v4220_v1, %v4220_v1 }
 0x34a   :  { %881 = vmatmul.mubr.bf16.vlgmr.msra.gmra.mxu0 %v847_v6  ;;  %922 = vmatmul.mubr.bf16.vlgmr.msra.gmra.mxu1 %v847_v6  ;;  %v4312_v6 = vld [vmem:[#allocation2 + $0x80] ss:$16 sps:$4 sm:$0xff]  }
 0x34b   :  { %960 = vmatpush1.bf16.msra.mxu0 %v3865_v12  ;;  %1001 = vmatpush1.bf16.msra.mxu1 %v3867_v13  ;;  %v4256_v12 = vld [vmem:[#allocation2 + $0xe4] ss:$16 sps:$4 sm:$0xff]   ;;  %v4259_v13 = vld [vmem:[#allocation2 + $0xec] ss:$16 sps:$4 sm:$0xff]  }
 0x34c   :  { %961 = vmatprep.subr.bf16.mxu0 %v3871_v14  ;;  %1002 = vmatprep.subr.bf16.mxu1 %v3873_v15 }
 0x34d   :  { %991 = vmatprep.mubr.bf16.mxu0 %v5095_v60  ;;  %1032 = vmatprep.mubr.bf16.mxu1 %v5095_v60 }
 0x34f   :  { %962 = vmatpush1.bf16.msra.mxu0 %v3875_v16  ;;  %1003 = vmatpush1.bf16.msra.mxu1 %v3879_v17  ;;  %v5097_v16 = vld [vmem:[#allocation17_spill] sm:$0xff] }
 0x350   :  { %963 = vmatprep.subr.bf16.mxu0 %v3883_v18  ;;  %1004 = vmatprep.subr.bf16.mxu1 %v3887_v19 }
 0x353   :  { %964 = vmatpush1.bf16.msra.mxu0 %v3894_v21  ;;  %1005 = vmatpush1.bf16.msra.mxu1 %v3898_v22  ;;  %v5098_v22 = vld [vmem:[#allocation19_spill] sm:$0xff] }
 0x354   :  { %965 = vmatprep.subr.bf16.mxu0 %v3900_v23  ;;  %1006 = vmatprep.subr.bf16.mxu1 %v3904_v24 }
 0x357   :  { %966 = vmatpush1.bf16.msra.mxu0 %v3910_v25  ;;  %1007 = vmatpush1.bf16.msra.mxu1 %v3912_v26 }
 0x358   :  { %967 = vmatprep.subr.bf16.mxu0 %v3914_v27  ;;  %1008 = vmatprep.subr.bf16.mxu1 %v3918_v28 }
 0x35b   :  { %968 = vmatpush1.bf16.msra.mxu0 %v3925_v30  ;;  %1009 = vmatpush1.bf16.msra.mxu1 %v3927_v31  ;;  %v5099_v30 = vld [vmem:[#allocation20_spill] sm:$0xff] }
 0x35c   :  { %969 = vmatprep.subr.bf16.mxu0 %v3931_v32  ;;  %1010 = vmatprep.subr.bf16.mxu1 %v3935_v33  ;;  %v5100_v32 = vld [vmem:[#allocation18_spill] sm:$0xff] }
 0x35f   :  { %970 = vmatpush1.bf16.msra.mxu0 %v3939_v34  ;;  %1011 = vmatpush1.bf16.msra.mxu1 %v3943_v35 }
 0x360   :  { %971 = vmatprep.subr.bf16.mxu0 %v3950_v37  ;;  %1012 = vmatprep.subr.bf16.mxu1 %v3952_v38 }
 0x363   :  { %972 = vmatpush1.bf16.msra.mxu0 %v3956_v39  ;;  %1013 = vmatpush1.bf16.msra.mxu1 %v3958_v40 }
 0x364   :  { %973 = vmatprep.subr.bf16.mxu0 %v3960_v41  ;;  %1014 = vmatprep.subr.bf16.mxu1 %v3962_v42 }
 0x367   :  { %974 = vmatpush1.bf16.msra.mxu0 %v3968_v43  ;;  %1015 = vmatpush1.bf16.msra.mxu1 %v3970_v44 }
 0x368   :  { %1070 = vmatprep.subr.bf16.mxu0 %v4256_v12  ;;  %1111 = vmatprep.subr.bf16.mxu1 %v4259_v13 }
 0x40a   :  { %v882_v14 = vpop.f32.mrf.mxu0  ;;  %v923_v15 = vpop.f32.mrf.mxu1 }
 0x40b   :  { %v930_v17 = vadd.f32 %v882_v14, %v5097_v16  ;;  %v932_v33 = vadd.f32 %v923_v15, %v5100_v32  ;;  %v4315_v14 = vld [vmem:[#allocation2 + $0x88] ss:$16 sps:$4 sm:$0xff]   ;;  %v4318_v15 = vld [vmem:[#allocation2 + $0x64] ss:$16 sps:$4 sm:$0xff]   ;;  %v4321_v16 = vld [vmem:[#allocation2 + $0x6c] ss:$16 sps:$4 sm:$0xff]  }
 0x40c   :  { %v884_v18 = vpop.f32.mrf.mxu0  ;;  %v925_v19 = vpop.f32.mrf.mxu1 }
 0x40d   :  { %v3035_v21 = vmul.f32 -1.442695, %v930_v17  ;;  %v931_v23 = vadd.f32 %v884_v18, %v5098_v22  ;;  %v933_v31 = vadd.f32 %v925_v19, %v5099_v30  ;;  %v4324_v17 = vld [vmem:[#allocation2 + $0x60] ss:$16 sps:$4 sm:$0xff]   ;;  %v4327_v18 = vld [vmem:[#allocation2 + $0x68] ss:$16 sps:$4 sm:$0xff]  }
 0x40e   :  { %v886_v24 = vpop.f32.mrf.mxu0  ;;  %v927_v25 = vpop.f32.mrf.mxu1  ;;  %v4330_v19 = vld [vmem:[#allocation2 + $0x44] ss:$16 sps:$4 sm:$0xff]   ;;  %v4336_v22 = vld [vmem:[#allocation2 + $0x40] ss:$16 sps:$4 sm:$0xff]  }
 0x40f   :  { %3396 = vpow2.f32 %v3035_v21  ;;  %v3036_v26 = vmul.f32 -1.442695, %v931_v23  ;;  %v3037_v34 = vmul.f32 -1.442695, %v933_v31  ;;  %v4333_v21 = vld [vmem:[#allocation2 + $0x4c] ss:$16 sps:$4 sm:$0xff]  }
 0x410   :  { %v887_v27 = vpop.f32.mrf.mxu0  ;;  %v928_v28 = vpop.f32.mrf.mxu1  ;;  %v4339_v23 = vld [vmem:[#allocation2 + $0x48] ss:$16 sps:$4 sm:$0xff]  }
 0x411   :  { %3398 = vpow2.f32 %v3036_v26  ;;  %v5101_v25 = vld [vmem:[#allocation21_spill] sm:$0xff] }
 0x412   :  { %3400 = vtanh.f32 %v932_v33  ;;  %v5104_v33 = vld [vmem:[#allocation22_spill] sm:$0xff] }
 0x413   :  { %3402 = vpow2.f32 %v3037_v34 }
 0x41c   :  { %v3397_v35 = vpop.eup %3396 }
 0x41d   :  { %v937_v4 = vadd.f32 1.0, %v3397_v35 }
 0x41e   :  { %v3399_v49 = vpop.eup %3398 }
 0x41f   :  { %3404 = vrcp.f32 %v937_v4  ;;  %v943_v9 = vadd.f32 1.0, %v3399_v49  ;;  %v3401_v59 = vpop.eup %3400 }
 0x420   :  { %v3403_v5 = vpop.eup %3402 }
 0x421   :  { %3406 = vrcp.f32 %v943_v9  ;;  %v950_v62 = vadd.f32 1.0, %v3403_v5 }
 0x423   :  { %3408 = vrcp.f32 %v950_v62 }
 0x42c   :  { %v3405_v47 = vpop.eup %3404 }
 0x42d   :  { %v954_v56 = vmul.f32 %v3405_v47, %v3401_v59 }
 0x42e   :  { %v3407_v58 = vpop.eup %3406 }
 0x42f   :  { %v953_v8 = vmul.f32 %v3407_v58, %v4217_v36  ;;  %v4303_v36 = vld [vmem:[#allocation2 + $0xa8] ss:$16 sps:$4 sm:$0xff]  }
 0x430   :  { %v3409_v11 = vpop.eup %3408 }
 0x431   :  { %v4267_v46 = vadd.f32 %v954_v56, %v953_v8 }
 0x433   :  { %3410 = vtanh.f32 %v4267_v46 }
 0x440   :  { %v3411_v3 = vpop.eup %3410 }
 0x441   :  { %v4270_v52 = vmul.f32 %v3411_v3, %v3409_v11 }
 0x443   :  { %v958_v2 = vpack.c.bf16 %v4270_v52, %v4270_v52 }
 0x445   :  { %992 = vmatmul.mubr.bf16.vlgmr.msra.gmra.mxu0 %v958_v2  ;;  %1033 = vmatmul.mubr.bf16.vlgmr.msra.gmra.mxu1 %v958_v2 }
 0x446   :  { %1071 = vmatpush1.bf16.msra.mxu0 %v4274_v7  ;;  %1112 = vmatpush1.bf16.msra.mxu1 %v4277_v51 }
 0x447   :  { %1072 = vmatprep.subr.bf16.mxu0 %v4280_v29  ;;  %1113 = vmatprep.subr.bf16.mxu1 %v4283_v10 }
 0x448   :  { %1102 = vmatprep.mubr.bf16.mxu0 %v5095_v60  ;;  %1143 = vmatprep.mubr.bf16.mxu1 %v5095_v60 }
 0x44a   :  { %1073 = vmatpush1.bf16.msra.mxu0 %v4288_v20  ;;  %1114 = vmatpush1.bf16.msra.mxu1 %v4291_v48 }
 0x44b   :  { %1074 = vmatprep.subr.bf16.mxu0 %v4294_v63  ;;  %1115 = vmatprep.subr.bf16.mxu1 %v4297_v57 }
 0x44e   :  { %1075 = vmatpush1.bf16.msra.mxu0 %v4300_v61  ;;  %1116 = vmatpush1.bf16.msra.mxu1 %v4303_v36 }
 0x44f   :  { %1076 = vmatprep.subr.bf16.mxu0 %v4306_v0  ;;  %1117 = vmatprep.subr.bf16.mxu1 %v4309_v50 }
 0x452   :  { %1077 = vmatpush1.bf16.msra.mxu0 %v4312_v6  ;;  %1118 = vmatpush1.bf16.msra.mxu1 %v4315_v14 }
 0x453   :  { %1078 = vmatprep.subr.bf16.mxu0 %v4318_v15  ;;  %1119 = vmatprep.subr.bf16.mxu1 %v4321_v16 }
 0x456   :  { %1079 = vmatpush1.bf16.msra.mxu0 %v4324_v17  ;;  %1120 = vmatpush1.bf16.msra.mxu1 %v4327_v18 }
 0x457   :  { %1080 = vmatprep.subr.bf16.mxu0 %v4330_v19  ;;  %1121 = vmatprep.subr.bf16.mxu1 %v4333_v21 }
 0x45a   :  { %1081 = vmatpush1.bf16.msra.mxu0 %v4336_v22  ;;  %1122 = vmatpush1.bf16.msra.mxu1 %v4339_v23 }
 0x45b   :  { %1082 = vmatprep.subr.bf16.mxu0 %v3950_v37  ;;  %1123 = vmatprep.subr.bf16.mxu1 %v3952_v38 }
 0x45e   :  { %1083 = vmatpush1.bf16.msra.mxu0 %v3956_v39  ;;  %1124 = vmatpush1.bf16.msra.mxu1 %v3958_v40  ;;  %v5102_v40 = vld [vmem:[#allocation23_spill] sm:$0xff] }
 0x45f   :  { %1084 = vmatprep.subr.bf16.mxu0 %v3960_v41  ;;  %1125 = vmatprep.subr.bf16.mxu1 %v3962_v42 }
 0x462   :  { %1085 = vmatpush1.bf16.msra.mxu0 %v3968_v43  ;;  %1126 = vmatpush1.bf16.msra.mxu1 %v3970_v44  ;;  %v5103_v44 = vld [vmem:[#allocation24_spill] sm:$0xff] }
 0x463   :  { %1181 = vmatprep.subr.bf16.mxu0 %v4256_v12  ;;  %1222 = vmatprep.subr.bf16.mxu1 %v4259_v13 }
 0x505   :  { %v993_v24 = vpop.f32.mrf.mxu0  ;;  %v1034_v37 = vpop.f32.mrf.mxu1 }
 0x506   :  { %v1041_v38 = vadd.f32 %v993_v24, %v5101_v25  ;;  %v1043_v34 = vadd.f32 %v1034_v37, %v5104_v33 }
 0x507   :  { %v995_v26 = vpop.f32.mrf.mxu0  ;;  %v1036_v39 = vpop.f32.mrf.mxu1 }
 0x508   :  { %v3038_v27 = vmul.f32 -1.442695, %v1041_v38  ;;  %v1042_v28 = vadd.f32 %v995_v26, %v5102_v40  ;;  %v1044_v32 = vadd.f32 %v1036_v39, %v5103_v44  ;;  %v4391_v38 = vld [vmem:[#allocation2 + $0x2c] ss:$16 sps:$4 sm:$0xff]   ;;  %v4394_v26 = vld [vmem:[#allocation2 + $0x20] ss:$16 sps:$4 sm:$0xff]  }
 0x509   :  { %v997_v41 = vpop.f32.mrf.mxu0  ;;  %v1038_v30 = vpop.f32.mrf.mxu1  ;;  %v4397_v39 = vld [vmem:[#allocation2 + $0x28] ss:$16 sps:$4 sm:$0xff]   ;;  %v4403_v40 = vld [vmem:[#allocation2 + $0xc] ss:$16 sps:$4 sm:$0xff]  }
 0x50a   :  { %3412 = vpow2.f32 %v3038_v27  ;;  %v3039_v42 = vmul.f32 -1.442695, %v1042_v28  ;;  %v3040_v35 = vmul.f32 -1.442695, %v1044_v32  ;;  %v4400_v27 = vld [vmem:[#allocation2 + $0x4] ss:$16 sps:$4 sm:$0xff]  }
 0x50b   :  { %v998_v43 = vpop.f32.mrf.mxu0  ;;  %v1039_v31 = vpop.f32.mrf.mxu1  ;;  %v4406_v28 = vld [vmem:[#allocation2] ss:$16 sps:$4 sm:$0xff]   ;;  %v4409_v41 = vld [vmem:[#allocation2 + $0x8] ss:$16 sps:$4 sm:$0xff]  }
 0x50c   :  { %3414 = vpow2.f32 %v3039_v42  ;;  %v5105_v43 = vld [vmem:[#allocation25_spill] sm:$0xff] }
 0x50d   :  { %3416 = vtanh.f32 %v1043_v34  ;;  %v5106_v34 = vld [vmem:[#allocation27_spill] sm:$0xff] }
 0x50e   :  { %3418 = vpow2.f32 %v3040_v35 }
 0x517   :  { %v3413_v4 = vpop.eup %3412 }
 0x518   :  { %v1048_v49 = vadd.f32 1.0, %v3413_v4 }
 0x519   :  { %v3415_v9 = vpop.eup %3414 }
 0x51a   :  { %3420 = vrcp.f32 %v1048_v49  ;;  %v1054_v59 = vadd.f32 1.0, %v3415_v9  ;;  %v3417_v5 = vpop.eup %3416 }
 0x51b   :  { %v3419_v47 = vpop.eup %3418 }
 0x51c   :  { %3422 = vrcp.f32 %v1054_v59  ;;  %v1061_v8 = vadd.f32 1.0, %v3419_v47  ;;  %v5107_v47 = vld [vmem:[#allocation28_spill] sm:$0xff] }
 0x51e   :  { %3424 = vrcp.f32 %v1061_v8 }
 0x527   :  { %v3421_v56 = vpop.eup %3420 }
 0x528   :  { %v1065_v58 = vmul.f32 %v3421_v56, %v3417_v5  ;;  %v5108_v56 = vld [vmem:[#allocation26_spill] sm:$0xff] }
 0x529   :  { %v3423_v62 = vpop.eup %3422 }
 0x52a   :  { %v1064_v11 = vmul.f32 %v3423_v62, %v4267_v46  ;;  %v4388_v46 = vld [vmem:[#allocation2 + $0x24] ss:$16 sps:$4 sm:$0xff]  }
 0x52b   :  { %v3425_v2 = vpop.eup %3424 }
 0x52c   :  { %v4357_v3 = vadd.f32 %v1065_v58, %v1064_v11 }
 0x52e   :  { %3426 = vtanh.f32 %v4357_v3 }
 0x53b   :  { %v3427_v24 = vpop.eup %3426 }
 0x53c   :  { %v4360_v37 = vmul.f32 %v3427_v24, %v3425_v2 }
 0x53e   :  { %v1069_v25 = vpack.c.bf16 %v4360_v37, %v4360_v37 }
 0x540   :  { %1103 = vmatmul.mubr.bf16.vlgmr.msra.gmra.mxu0 %v1069_v25  ;;  %1144 = vmatmul.mubr.bf16.vlgmr.msra.gmra.mxu1 %v1069_v25 }
 0x541   :  { %1182 = vmatpush1.bf16.msra.mxu0 %v4274_v7  ;;  %1223 = vmatpush1.bf16.msra.mxu1 %v4277_v51 }
 0x542   :  { %1183 = vmatprep.subr.bf16.mxu0 %v4280_v29  ;;  %1224 = vmatprep.subr.bf16.mxu1 %v4283_v10 }
 0x543   :  { %1213 = vmatprep.mubr.bf16.mxu0 %v5095_v60  ;;  %1254 = vmatprep.mubr.bf16.mxu1 %v5095_v60 }
 0x545   :  { %1184 = vmatpush1.bf16.msra.mxu0 %v4288_v20  ;;  %1225 = vmatpush1.bf16.msra.mxu1 %v4291_v48 }
 0x546   :  { %1185 = vmatprep.subr.bf16.mxu0 %v4294_v63  ;;  %1226 = vmatprep.subr.bf16.mxu1 %v4297_v57 }
 0x549   :  { %1186 = vmatpush1.bf16.msra.mxu0 %v4300_v61  ;;  %1227 = vmatpush1.bf16.msra.mxu1 %v4303_v36 }
 0x54a   :  { %1187 = vmatprep.subr.bf16.mxu0 %v4306_v0  ;;  %1228 = vmatprep.subr.bf16.mxu1 %v4309_v50 }
 0x54d   :  { %1188 = vmatpush1.bf16.msra.mxu0 %v4312_v6  ;;  %1229 = vmatpush1.bf16.msra.mxu1 %v4315_v14 }
 0x54e   :  { %1189 = vmatprep.subr.bf16.mxu0 %v4318_v15  ;;  %1230 = vmatprep.subr.bf16.mxu1 %v4321_v16 }
 0x551   :  { %1190 = vmatpush1.bf16.msra.mxu0 %v4324_v17  ;;  %1231 = vmatpush1.bf16.msra.mxu1 %v4327_v18 }
 0x552   :  { %1191 = vmatprep.subr.bf16.mxu0 %v4330_v19  ;;  %1232 = vmatprep.subr.bf16.mxu1 %v4333_v21 }
 0x555   :  { %1192 = vmatpush1.bf16.msra.mxu0 %v4336_v22  ;;  %1233 = vmatpush1.bf16.msra.mxu1 %v4339_v23 }
 0x556   :  { %1193 = vmatprep.subr.bf16.mxu0 %v4388_v46  ;;  %1234 = vmatprep.subr.bf16.mxu1 %v4391_v38 }
 0x559   :  { %1194 = vmatpush1.bf16.msra.mxu0 %v4394_v26  ;;  %1235 = vmatpush1.bf16.msra.mxu1 %v4397_v39 }
 0x55a   :  { %1195 = vmatprep.subr.bf16.mxu0 %v4400_v27  ;;  %1236 = vmatprep.subr.bf16.mxu1 %v4403_v40 }
 0x55d   :  { %1196 = vmatpush1.bf16.msra.mxu0 %v4406_v28  ;;  %1237 = vmatpush1.bf16.msra.mxu1 %v4409_v41 }
 0x55e   :  { %1292 = vmatprep.subr.bf16.mxu0 %v4256_v12  ;;  %1333 = vmatprep.subr.bf16.mxu1 %v4259_v13 }
 0x600   :  { %v1104_v30 = vpop.f32.mrf.mxu0  ;;  %v1145_v42 = vpop.f32.mrf.mxu1 }
 0x601   :  { %v1152_v31 = vadd.f32 %v1104_v30, %v5105_v43  ;;  %v1154_v13 = vadd.f32 %v1145_v42, %v5108_v56  ;;  %v3247_v56 = vld [vmem:[#allocation5 + $0xe8] ss:$16 sps:$4 sm:$0xff]  }
 0x602   :  { %v1106_v44 = vpop.f32.mrf.mxu0  ;;  %v1147_v32 = vpop.f32.mrf.mxu1 }
 0x603   :  { %v3041_v33 = vmul.f32 -1.442695, %v1152_v31  ;;  %v1153_v35 = vadd.f32 %v1106_v44, %v5106_v34  ;;  %v1155_v12 = vadd.f32 %v1147_v32, %v5107_v47 }
 0x604   :  { %v1108_v4 = vpop.f32.mrf.mxu0  ;;  %v1149_v49 = vpop.f32.mrf.mxu1 }
 0x605   :  { %3428 = vpow2.f32 %v3041_v33  ;;  %v3042_v9 = vmul.f32 -1.442695, %v1153_v35  ;;  %v3043_v58 = vmul.f32 -1.442695, %v1155_v12  ;;  %v3244_v12 = vld [vmem:[#allocation5 + $0xe0] ss:$16 sps:$4 sm:$0xff]  }
 0x606   :  { %v1109_v59 = vpop.f32.mrf.mxu0  ;;  %v1150_v5 = vpop.f32.mrf.mxu1 }
 0x607   :  { %3430 = vpow2.f32 %v3042_v9 }
 0x608   :  { %3432 = vtanh.f32 %v1154_v13 }
 0x609   :  { %3434 = vpow2.f32 %v3043_v58  ;;  %v3252_v58 = vld [vmem:[#allocation5 + $0xc4] ss:$16 sps:$4 sm:$0xff]  }
 0x612   :  { %v3429_v62 = vpop.eup %3428 }
 0x613   :  { %v1159_v8 = vadd.f32 1.0, %v3429_v62  ;;  %v3255_v62 = vld [vmem:[#allocation5 + $0xcc] ss:$16 sps:$4 sm:$0xff]  }
 0x614   :  { %v3431_v11 = vpop.eup %3430 }
 0x615   :  { %3436 = vrcp.f32 %v1159_v8  ;;  %v1165_v2 = vadd.f32 1.0, %v3431_v11  ;;  %v3433_v24 = vpop.eup %3432  ;;  %v3250_v8 = vld [vmem:[#allocation5 + $0xc0] ss:$16 sps:$4 sm:$0xff]   ;;  %v3253_v11 = vld [vmem:[#allocation5 + $0xc8] ss:$16 sps:$4 sm:$0xff]  }
 0x616   :  { %v3435_v25 = vpop.eup %3434 }
 0x617   :  { %3438 = vrcp.f32 %v1165_v2  ;;  %v1172_v44 = vadd.f32 1.0, %v3435_v25  ;;  %v3258_v2 = vld [vmem:[#allocation5 + $0xa4] ss:$16 sps:$4 sm:$0xff]   ;;  %v3256_v25 = vld [vmem:[#allocation5 + $0xa0] ss:$16 sps:$4 sm:$0xff]  }
 0x619   :  { %3440 = vrcp.f32 %v1172_v44  ;;  %v3262_v44 = vld [vmem:[#allocation5 + $0x80] ss:$16 sps:$4 sm:$0xff]  }
 0x622   :  { %v3437_v30 = vpop.eup %3436 }
 0x623   :  { %v1176_v43 = vmul.f32 %v3437_v30, %v3433_v24  ;;  %v3261_v24 = vld [vmem:[#allocation5 + $0xac] ss:$16 sps:$4 sm:$0xff]   ;;  %v3259_v30 = vld [vmem:[#allocation5 + $0xa8] ss:$16 sps:$4 sm:$0xff]  }
 0x624   :  { %v3439_v31 = vpop.eup %3438 }
 0x625   :  { %v1175_v33 = vmul.f32 %v3439_v31, %v4357_v3  ;;  %v3267_v31 = vld [vmem:[#allocation5 + $0x8c] ss:$16 sps:$4 sm:$0xff]  }
 0x626   :  { %v3441_v42 = vpop.eup %3440 }
 0x627   :  { %v4419_v32 = vadd.f32 %v1176_v43, %v1175_v33  ;;  %v3264_v43 = vld [vmem:[#allocation5 + $0x84] ss:$16 sps:$4 sm:$0xff]   ;;  %v3265_v33 = vld [vmem:[#allocation5 + $0x88] ss:$16 sps:$4 sm:$0xff]  }
 0x629   :  { %3442 = vtanh.f32 %v4419_v32 }
 0x636   :  { %v3443_v34 = vpop.eup %3442 }
 0x637   :  { %v4422_v35 = vmul.f32 %v3443_v34, %v3441_v42  ;;  %v3273_v42 = vld [vmem:[#allocation5 + $0x6c] ss:$16 sps:$4 sm:$0xff]   ;;  %v3268_v34 = vld [vmem:[#allocation5 + $0x60] ss:$16 sps:$4 sm:$0xff]  }
 0x639   :  { %v1180_v4 = vpack.c.bf16 %v4422_v35, %v4422_v35 }
 0x63b   :  { %1214 = vmatmul.mubr.bf16.vlgmr.msra.gmra.mxu0 %v1180_v4  ;;  %1255 = vmatmul.mubr.bf16.vlgmr.msra.gmra.mxu1 %v1180_v4  ;;  %v3271_v4 = vld [vmem:[#allocation5 + $0x68] ss:$16 sps:$4 sm:$0xff]  }
 0x63c   :  { %1293 = vmatpush1.bf16.msra.mxu0 %v4274_v7  ;;  %1334 = vmatpush1.bf16.msra.mxu1 %v4277_v51  ;;  %v3246_v7 = vld [vmem:[#allocation5 + $0xe4] ss:$16 sps:$4 sm:$0xff]   ;;  %v3249_v51 = vld [vmem:[#allocation5 + $0xec] ss:$16 sps:$4 sm:$0xff]  }
 0x63d   :  { %1294 = vmatprep.subr.bf16.mxu0 %v4280_v29  ;;  %1335 = vmatprep.subr.bf16.mxu1 %v4283_v10 }
 0x63e   :  { %1324 = vmatprep.mubr.bf16.mxu0 %v5095_v60  ;;  %1365 = vmatprep.mubr.bf16.mxu1 %v5095_v60 }
 0x640   :  { %1295 = vmatpush1.bf16.msra.mxu0 %v4288_v20  ;;  %1336 = vmatpush1.bf16.msra.mxu1 %v4291_v48  ;;  %v5109_v20 = vld [vmem:[#allocation29_spill] sm:$0xff] }
 0x641   :  { %1296 = vmatprep.subr.bf16.mxu0 %v4294_v63  ;;  %1337 = vmatprep.subr.bf16.mxu1 %v4297_v57 }
 0x644   :  { %1297 = vmatpush1.bf16.msra.mxu0 %v4300_v61  ;;  %1338 = vmatpush1.bf16.msra.mxu1 %v4303_v36  ;;  %v5110_v36 = vld [vmem:[#allocation31_spill] sm:$0xff] }
 0x645   :  { %1298 = vmatprep.subr.bf16.mxu0 %v4306_v0  ;;  %1339 = vmatprep.subr.bf16.mxu1 %v4309_v50 }
 0x648   :  { %1299 = vmatpush1.bf16.msra.mxu0 %v4312_v6  ;;  %1340 = vmatpush1.bf16.msra.mxu1 %v4315_v14 }
 0x649   :  { %1300 = vmatprep.subr.bf16.mxu0 %v4318_v15  ;;  %1341 = vmatprep.subr.bf16.mxu1 %v4321_v16 }
 0x64c   :  { %1301 = vmatpush1.bf16.msra.mxu0 %v4324_v17  ;;  %1342 = vmatpush1.bf16.msra.mxu1 %v4327_v18  ;;  %v5111_v17 = vld [vmem:[#allocation32_spill] sm:$0xff] }
 0x64d   :  { %1302 = vmatprep.subr.bf16.mxu0 %v4330_v19  ;;  %1343 = vmatprep.subr.bf16.mxu1 %v4333_v21  ;;  %v5112_v19 = vld [vmem:[#allocation30_spill] sm:$0xff] }
 0x650   :  { %1303 = vmatpush1.bf16.msra.mxu0 %v4336_v22  ;;  %1344 = vmatpush1.bf16.msra.mxu1 %v4339_v23 }
 0x651   :  { %1304 = vmatprep.subr.bf16.mxu0 %v4388_v46  ;;  %1345 = vmatprep.subr.bf16.mxu1 %v4391_v38 }
 0x654   :  { %1305 = vmatpush1.bf16.msra.mxu0 %v4394_v26  ;;  %1346 = vmatpush1.bf16.msra.mxu1 %v4397_v39 }
 0x655   :  { %1306 = vmatprep.subr.bf16.mxu0 %v4400_v27  ;;  %1347 = vmatprep.subr.bf16.mxu1 %v4403_v40 }
 0x658   :  { %1307 = vmatpush1.bf16.msra.mxu0 %v4406_v28  ;;  %1348 = vmatpush1.bf16.msra.mxu1 %v4409_v41 }
 0x659   :  { %1620 = vmatprep.subr.bf16.mxu0 %v3246_v7  ;;  %1693 = vmatprep.subr.bf16.mxu1 %v3249_v51  ;;  %v3276_v7 = vld [vmem:[#allocation5 + $0x44] ss:$16 sps:$4 sm:$0xff]   ;;  %v3279_v51 = vld [vmem:[#allocation5 + $0x4c] ss:$16 sps:$4 sm:$0xff]  }
 0x6fb   :  { %v1215_v29 = vpop.f32.mrf.mxu0  ;;  %v1256_v10 = vpop.f32.mrf.mxu1 }
 0x6fc   :  { %v1263_v48 = vadd.f32 %v1215_v29, %v5109_v20  ;;  %v1265_v21 = vadd.f32 %v1256_v10, %v5112_v19  ;;  %v3274_v29 = vld [vmem:[#allocation5 + $0x40] ss:$16 sps:$4 sm:$0xff]   ;;  %v3277_v10 = vld [vmem:[#allocation5 + $0x48] ss:$16 sps:$4 sm:$0xff]   ;;  %v3282_v20 = vld [vmem:[#allocation5 + $0x24] ss:$16 sps:$4 sm:$0xff]  }
 0x6fd   :  { %v1217_v63 = vpop.f32.mrf.mxu0  ;;  %v1258_v57 = vpop.f32.mrf.mxu1  ;;  %v4510_v19 = vld [vmem:[#allocation7 + $0xac] ss:$16 sps:$4 sm:$0xff]  }
 0x6fe   :  { %v3044_v61 = vmul.f32 -1.442695, %v1263_v48  ;;  %v1264_v0 = vadd.f32 %v1217_v63, %v5110_v36  ;;  %v1266_v18 = vadd.f32 %v1258_v57, %v5111_v17  ;;  %v3285_v48 = vld [vmem:[#allocation5 + $0x2c] ss:$16 sps:$4 sm:$0xff]   ;;  %v3280_v63 = vld [vmem:[#allocation5 + $0x20] ss:$16 sps:$4 sm:$0xff]  }
 0x6ff   :  { %v1219_v50 = vpop.f32.mrf.mxu0  ;;  %v1260_v6 = vpop.f32.mrf.mxu1  ;;  %v3283_v57 = vld [vmem:[#allocation5 + $0x28] ss:$16 sps:$4 sm:$0xff]   ;;  %v3291_v36 = vld [vmem:[#allocation5 + $0xc] ss:$16 sps:$4 sm:$0xff]  }
 0x700   :  { %3444 = vpow2.f32 %v3044_v61  ;;  %v3045_v14 = vmul.f32 -1.442695, %v1264_v0  ;;  %v3046_v22 = vmul.f32 -1.442695, %v1266_v18  ;;  %v3288_v61 = vld [vmem:[#allocation5 + $0x4] ss:$16 sps:$4 sm:$0xff]   ;;  %v1402_v6 = vpack.c.bf16 %v4174_v55, %v4128_v53 }
 0x701   :  { %v1220_v15 = vpop.f32.mrf.mxu0  ;;  %v1261_v16 = vpop.f32.mrf.mxu1  ;;  %v3286_v0 = vld [vmem:[#allocation5] ss:$16 sps:$4 sm:$0xff]   ;;  %v3289_v50 = vld [vmem:[#allocation5 + $0x8] ss:$16 sps:$4 sm:$0xff]   ;;  %v4484_v53 = vld [vmem:[#allocation7 + $0xe4] ss:$16 sps:$4 sm:$0xff]  }
 0x702   :  { %3446 = vpow2.f32 %v3045_v14  ;;  %v1403_v14 = vpack.c.bf16 %v4270_v52, %v4220_v1  ;;  %v1404_v15 = vpack.c.bf16 %v4422_v35, %v4360_v37  ;;  %v4486_v55 = vld [vmem:[#allocation7 + $0xec] ss:$16 sps:$4 sm:$0xff]   ;;  %v4488_v1 = vld [vmem:[#allocation7 + $0xe0] ss:$16 sps:$4 sm:$0xff]   ;;  %v4490_v52 = vld [vmem:[#allocation7 + $0xe8] ss:$16 sps:$4 sm:$0xff]  }
 0x703   :  { %3448 = vtanh.f32 %v1265_v21  ;;  %v4496_v37 = vld [vmem:[#allocation7 + $0xc4] ss:$16 sps:$4 sm:$0xff]   ;;  %v4498_v35 = vld [vmem:[#allocation7 + $0xcc] ss:$16 sps:$4 sm:$0xff]   ;;  %v4500_v16 = vld [vmem:[#allocation7 + $0xc0] ss:$16 sps:$4 sm:$0xff]  }
 0x704   :  { %3450 = vpow2.f32 %v3046_v22  ;;  %v4502_v17 = vld [vmem:[#allocation7 + $0xc8] ss:$16 sps:$4 sm:$0xff]   ;;  %v4508_v18 = vld [vmem:[#allocation7 + $0xa4] ss:$16 sps:$4 sm:$0xff]   ;;  %v4512_v21 = vld [vmem:[#allocation7 + $0xa0] ss:$16 sps:$4 sm:$0xff]  }
 0x705   :  { %v4514_v22 = vld [vmem:[#allocation7 + $0xa8] ss:$16 sps:$4 sm:$0xff]  }
 0x70d   :  { %v3445_v23 = vpop.eup %3444 }
 0x70e   :  { %v1270_v3 = vadd.f32 1.0, %v3445_v23  ;;  %v4520_v23 = vld [vmem:[#allocation7 + $0x84] ss:$16 sps:$4 sm:$0xff]  }
 0x70f   :  { %v3447_v46 = vpop.eup %3446 }
 0x710   :  { %3452 = vrcp.f32 %v1270_v3  ;;  %v1276_v38 = vadd.f32 1.0, %v3447_v46  ;;  %v3449_v26 = vpop.eup %3448  ;;  %v4522_v3 = vld [vmem:[#allocation7 + $0x8c] ss:$16 sps:$4 sm:$0xff]   ;;  %v4524_v46 = vld [vmem:[#allocation7 + $0x80] ss:$16 sps:$4 sm:$0xff]  }
 0x711   :  { %v3451_v39 = vpop.eup %3450 }
 0x712   :  { %3454 = vrcp.f32 %v1276_v38  ;;  %v1283_v41 = vadd.f32 1.0, %v3451_v39  ;;  %v4526_v38 = vld [vmem:[#allocation7 + $0x88] ss:$16 sps:$4 sm:$0xff]   ;;  %v4534_v39 = vld [vmem:[#allocation7 + $0x6c] ss:$16 sps:$4 sm:$0xff]  }
 0x714   :  { %3456 = vrcp.f32 %v1283_v41  ;;  %v4546_v41 = vld [vmem:[#allocation7 + $0x4c] ss:$16 sps:$4 sm:$0xff]  }
 0x71d   :  { %v3453_v27 = vpop.eup %3452 }
 0x71e   :  { %v1287_v40 = vmul.f32 %v3453_v27, %v3449_v26  ;;  %v4532_v26 = vld [vmem:[#allocation7 + $0x64] ss:$16 sps:$4 sm:$0xff]   ;;  %v4536_v27 = vld [vmem:[#allocation7 + $0x60] ss:$16 sps:$4 sm:$0xff]  }
 0x71f   :  { %v3455_v28 = vpop.eup %3454 }
 0x720   :  { %v1286_v49 = vmul.f32 %v3455_v28, %v4419_v32  ;;  %v3270_v32 = vld [vmem:[#allocation5 + $0x64] ss:$16 sps:$4 sm:$0xff]  }
 0x721   :  { %v3457_v59 = vpop.eup %3456  ;;  %v4544_v28 = vld [vmem:[#allocation7 + $0x44] ss:$16 sps:$4 sm:$0xff]  }
 0x722   :  { %v4463_v9 = vadd.f32 %v1287_v40, %v1286_v49  ;;  %v4538_v40 = vld [vmem:[#allocation7 + $0x68] ss:$16 sps:$4 sm:$0xff]   ;;  %v4548_v49 = vld [vmem:[#allocation7 + $0x40] ss:$16 sps:$4 sm:$0xff]  }
 0x724   :  { %3458 = vtanh.f32 %v4463_v9 }
 0x731   :  { %v3459_v5 = vpop.eup %3458 }
 0x732   :  { %v4466_v47 = vmul.f32 %v3459_v5, %v3457_v59  ;;  %v4550_v59 = vld [vmem:[#allocation7 + $0x48] ss:$16 sps:$4 sm:$0xff]   ;;  %v4556_v5 = vld [vmem:[#allocation7 + $0x24] ss:$16 sps:$4 sm:$0xff]  }
 0x734   :  { %v1291_v13 = vpack.c.bf16 %v4466_v47, %v4466_v47 }
 0x736   :  { %1325 = vmatmul.mubr.bf16.vlgmr.msra.gmra.mxu0 %v1291_v13  ;;  %1366 = vmatmul.mubr.bf16.vlgmr.msra.gmra.mxu1 %v1291_v13  ;;  %v4562_v13 = vld [vmem:[#allocation7 + $0x28] ss:$16 sps:$4 sm:$0xff]  }
 0x737   :  { %1621 = vmatpush1.bf16.msra.mxu0 %v3244_v12  ;;  %1694 = vmatpush1.bf16.msra.mxu1 %v3247_v56  ;;  %v4558_v12 = vld [vmem:[#allocation7 + $0x2c] ss:$16 sps:$4 sm:$0xff]   ;;  %v4560_v56 = vld [vmem:[#allocation7 + $0x20] ss:$16 sps:$4 sm:$0xff]  }
 0x738   :  { %1622 = vmatprep.subr.bf16.mxu0 %v3252_v58  ;;  %1695 = vmatprep.subr.bf16.mxu1 %v3255_v62  ;;  %v4564_v58 = vld [vmem:[#allocation7 + $0x4] ss:$16 sps:$4 sm:$0xff]   ;;  %v4568_v62 = vld [vmem:[#allocation7 + $0xc] ss:$16 sps:$4 sm:$0xff]  }
 0x739   :  { %1652 = vmatprep.mubr.bf16.mxu0 %v5095_v60  ;;  %1725 = vmatprep.mubr.bf16.mxu1 %v5095_v60 }
 0x73b   :  { %1623 = vmatpush1.bf16.msra.mxu0 %v3250_v8  ;;  %1696 = vmatpush1.bf16.msra.mxu1 %v3253_v11  ;;  %v4572_v8 = vld [vmem:[#allocation7] ss:$16 sps:$4 sm:$0xff]   ;;  %v4574_v11 = vld [vmem:[#allocation7 + $0x8] ss:$16 sps:$4 sm:$0xff]  }
 0x73c   :  { %1624 = vmatprep.subr.bf16.mxu0 %v3258_v2  ;;  %1697 = vmatprep.subr.bf16.mxu1 %v3261_v24 }
 0x73f   :  { %1625 = vmatpush1.bf16.msra.mxu0 %v3256_v25  ;;  %1698 = vmatpush1.bf16.msra.mxu1 %v3259_v30  ;;  %v5113_v25 = vld [vmem:[#allocation33_spill] sm:$0xff] }
 0x740   :  { %1626 = vmatprep.subr.bf16.mxu0 %v3264_v43  ;;  %1699 = vmatprep.subr.bf16.mxu1 %v3267_v31 }
 0x743   :  { %1627 = vmatpush1.bf16.msra.mxu0 %v3262_v44  ;;  %1700 = vmatpush1.bf16.msra.mxu1 %v3265_v33 }
 0x744   :  { %1628 = vmatprep.subr.bf16.mxu0 %v3270_v32  ;;  %1701 = vmatprep.subr.bf16.mxu1 %v3273_v42 }
 0x747   :  { %1629 = vmatpush1.bf16.msra.mxu0 %v3268_v34  ;;  %1702 = vmatpush1.bf16.msra.mxu1 %v3271_v4 }
 0x748   :  { %1630 = vmatprep.subr.bf16.mxu0 %v3276_v7  ;;  %1703 = vmatprep.subr.bf16.mxu1 %v3279_v51 }
 0x74b   :  { %1631 = vmatpush1.bf16.msra.mxu0 %v3274_v29  ;;  %1704 = vmatpush1.bf16.msra.mxu1 %v3277_v10  ;;  %v5114_v29 = vld [vmem:[#allocation34_spill] sm:$0xff] }
 0x74c   :  { %1632 = vmatprep.subr.bf16.mxu0 %v3282_v20  ;;  %1705 = vmatprep.subr.bf16.mxu1 %v3285_v48 }
 0x74f   :  { %1633 = vmatpush1.bf16.msra.mxu0 %v3280_v63  ;;  %1706 = vmatpush1.bf16.msra.mxu1 %v3283_v57 }
 0x750   :  { %1634 = vmatprep.subr.bf16.mxu0 %v3288_v61  ;;  %1707 = vmatprep.subr.bf16.mxu1 %v3291_v36 }
 0x753   :  { %1635 = vmatpush1.bf16.msra.mxu0 %v3286_v0  ;;  %1708 = vmatpush1.bf16.msra.mxu1 %v3289_v50 }
 0x754   :  { %1959 = vmatprep.subr.bf16.mxu0 %v4484_v53  ;;  %2000 = vmatprep.subr.bf16.mxu1 %v4486_v55 }
 0x756   :  { %1653 = vmatmul.mubr.bf16.vlgmr.msra.gmra.mxu0 %v1402_v6  ;;  %1726 = vmatmul.mubr.bf16.vlgmr.msra.gmra.mxu1 %v1402_v6 }
 0x757   :  { %1662 = vmatprep.mubr.bf16.mxu0 %v5095_v60  ;;  %1735 = vmatprep.mubr.bf16.mxu1 %v5095_v60 }
 0x758   :  { %1960 = vmatpush1.bf16.msra.mxu0 %v4488_v1  ;;  %2001 = vmatpush1.bf16.msra.mxu1 %v4490_v52 }
 0x759   :  { %1961 = vmatprep.subr.bf16.mxu0 %v4496_v37  ;;  %2002 = vmatprep.subr.bf16.mxu1 %v4498_v35 }
 0x75c   :  { %1962 = vmatpush1.bf16.msra.mxu0 %v4500_v16  ;;  %2003 = vmatpush1.bf16.msra.mxu1 %v4502_v17 }
 0x75d   :  { %1963 = vmatprep.subr.bf16.mxu0 %v4508_v18  ;;  %2004 = vmatprep.subr.bf16.mxu1 %v4510_v19 }
 0x75e   :  { %1663 = vmatmul.mubr.bf16.gmra.mxu0 %v1403_v14  ;;  %1736 = vmatmul.mubr.bf16.gmra.mxu1 %v1403_v14 }
 0x75f   :  { %1672 = vmatprep.mubr.bf16.mxu0 %v5095_v60  ;;  %1745 = vmatprep.mubr.bf16.mxu1 %v5095_v60 }
 0x760   :  { %1964 = vmatpush1.bf16.msra.mxu0 %v4512_v21  ;;  %2005 = vmatpush1.bf16.msra.mxu1 %v4514_v22 }
 0x761   :  { %1965 = vmatprep.subr.bf16.mxu0 %v4520_v23  ;;  %2006 = vmatprep.subr.bf16.mxu1 %v4522_v3 }
 0x764   :  { %1966 = vmatpush1.bf16.msra.mxu0 %v4524_v46  ;;  %2007 = vmatpush1.bf16.msra.mxu1 %v4526_v38 }
 0x765   :  { %1967 = vmatprep.subr.bf16.mxu0 %v4532_v26  ;;  %2008 = vmatprep.subr.bf16.mxu1 %v4534_v39 }
 0x766   :  { %1673 = vmatmul.mubr.bf16.gmra.mxu0 %v1404_v15  ;;  %1746 = vmatmul.mubr.bf16.gmra.mxu1 %v1404_v15 }
 0x767   :  { %1682 = vmatprep.mubr.bf16.mxu0 %v5095_v60  ;;  %1755 = vmatprep.mubr.bf16.mxu1 %v5095_v60 }
 0x768   :  { %1968 = vmatpush1.bf16.msra.mxu0 %v4536_v27  ;;  %2009 = vmatpush1.bf16.msra.mxu1 %v4538_v40 }
 0x769   :  { %1969 = vmatprep.subr.bf16.mxu0 %v4544_v28  ;;  %2010 = vmatprep.subr.bf16.mxu1 %v4546_v41 }
 0x76c   :  { %1970 = vmatpush1.bf16.msra.mxu0 %v4548_v49  ;;  %2011 = vmatpush1.bf16.msra.mxu1 %v4550_v59 }
 0x76d   :  { %1971 = vmatprep.subr.bf16.mxu0 %v4556_v5  ;;  %2012 = vmatprep.subr.bf16.mxu1 %v4558_v12 }
 0x770   :  { %1972 = vmatpush1.bf16.msra.mxu0 %v4560_v56  ;;  %2013 = vmatpush1.bf16.msra.mxu1 %v4562_v13 }
 0x771   :  { %1973 = vmatprep.subr.bf16.mxu0 %v4564_v58  ;;  %2014 = vmatprep.subr.bf16.mxu1 %v4568_v62 }
 0x774   :  { %1974 = vmatpush1.bf16.msra.mxu0 %v4572_v8  ;;  %2015 = vmatpush1.bf16.msra.mxu1 %v4574_v11 }
 0x775   :  { %2070 = vmatprep.subr.bf16.mxu0 %v4484_v53  ;;  %2111 = vmatprep.subr.bf16.mxu1 %v4486_v55 }
 0x7f6   :  { %v1326_v2 = vpop.f32.mrf.mxu0  ;;  %v1367_v24 = vpop.f32.mrf.mxu1 }
 0x7f7   :  { %v1374_v30 = vadd.f32 %v1326_v2, %v5113_v25  ;;  %v1376_v10 = vadd.f32 %v1367_v24, %v5114_v29 }
 0x7f8   :  { %v1328_v43 = vpop.f32.mrf.mxu0  ;;  %v1369_v31 = vpop.f32.mrf.mxu1 }
 0x7f9   :  { %v3047_v44 = vmul.f32 -1.442695, %v1374_v30  ;;  %v1375_v33 = vadd.f32 %v1328_v43, %v4115_v54  ;;  %v1377_v51 = vadd.f32 %v1369_v31, %v4118_v45 }
 0x7fa   :  { %v1330_v32 = vpop.f32.mrf.mxu0  ;;  %v1371_v42 = vpop.f32.mrf.mxu1 }
 0x7fb   :  { %3460 = vpow2.f32 %v3047_v44  ;;  %v3048_v34 = vmul.f32 -1.442695, %v1375_v33  ;;  %v3049_v20 = vmul.f32 -1.442695, %v1377_v51 }
 0x7fc   :  { %v1331_v4 = vpop.f32.mrf.mxu0  ;;  %v1372_v7 = vpop.f32.mrf.mxu1 }
 0x7fd   :  { %3462 = vpow2.f32 %v3048_v34 }
 0x7fe   :  { %3464 = vtanh.f32 %v1376_v10 }
 0x7ff   :  { %3466 = vpow2.f32 %v3049_v20 }
 0x808   :  { %v3461_v48 = vpop.eup %3460 }
 0x809   :  { %v1381_v63 = vadd.f32 1.0, %v3461_v48 }
 0x80a   :  { %v3463_v57 = vpop.eup %3462 }
 0x80b   :  { %3468 = vrcp.f32 %v1381_v63  ;;  %v1387_v61 = vadd.f32 1.0, %v3463_v57  ;;  %v3465_v54 = vpop.eup %3464 }
 0x80c   :  { %v3467_v36 = vpop.eup %3466 }
 0x80d   :  { %3470 = vrcp.f32 %v1387_v61  ;;  %v1394_v14 = vadd.f32 1.0, %v3467_v36 }
 0x80f   :  { %3472 = vrcp.f32 %v1394_v14 }
 0x818   :  { %v3469_v0 = vpop.eup %3468 }
 0x819   :  { %v1398_v50 = vmul.f32 %v3469_v0, %v3465_v54 }
 0x81a   :  { %v3471_v6 = vpop.eup %3470 }
 0x81b   :  { %v1397_v15 = vmul.f32 %v3471_v6, %v4463_v9  ;;  %v1654_v9 = vpop.f32.mrf.mxu0 }
 0x81c   :  { %v3473_v2 = vpop.eup %3472 }
 0x81d   :  { %v4587_v45 = vadd.f32 %v1398_v50, %v1397_v15  ;;  %v1656_v31 = vpop.f32.mrf.mxu0  ;;  %v1438_v15 = vld [vmem:[%s5063_s6] sm:$0xf] }
 0x81f   :  { %3474 = vtanh.f32 %v4587_v45  ;;  %v4627_v33 = vpop.f32.mrf.mxu0 }
 0x821   :  { %v4631_v42 = vpop.f32.mrf.mxu0 }
 0x823   :  { %v4635_v4 = vpop.f32.mrf.mxu0 }
 0x825   :  { %v4639_v51 = vpop.f32.mrf.mxu0 }
 0x827   :  { %v4643_v10 = vpop.f32.mrf.mxu0 }
 0x828   :  { %5117 = vst [vmem:[#allocation19_spill] sm:$0xff] %v4643_v10 }
 0x829   :  { %v4647_v48 = vpop.f32.mrf.mxu0 }
 0x82a   :  { %5119 = vst [vmem:[#allocation18_spill] sm:$0xff] %v4647_v48 }
 0x82b   :  { %v4651_v57 = vpop.f32.mrf.mxu0 }
 0x82c   :  { %v3475_v24 = vpop.eup %3474  ;;  %5121 = vst [vmem:[#allocation23_spill] sm:$0xff] %v4651_v57 }
 0x82d   :  { %v1401_v25 = vmul.f32 %v3475_v24, %v3473_v2  ;;  %v4655_v54 = vpop.f32.mrf.mxu0 }
 0x82e   :  { %5123 = vst [vmem:[#allocation22_spill] sm:$0xff] %v4655_v54 }
 0x82f   :  { %v1405_v30 = vpack.c.bf16 %v1401_v25, %v4466_v47  ;;  %v1766_v43 = vpack.c.bf16 %v1401_v25, %v1401_v25  ;;  %v1727_v47 = vpop.f32.mrf.mxu1  ;;  %v4659_v0 = vpop.f32.mrf.mxu0 }
 0x830   :  { %5125 = vst [vmem:[#allocation27_spill] sm:$0xff] %v4659_v0 }
 0x831   :  { %1683 = vmatmul.mubr.bf16.gmra.mxu0 %v1405_v30  ;;  %1756 = vmatmul.mubr.bf16.gmra.mxu1 %v1405_v30  ;;  %v1729_v44 = vpop.f32.mrf.mxu1  ;;  %v4663_v6 = vpop.f32.mrf.mxu0 }
 0x832   :  { %1991 = vmatprep.mubr.bf16.mxu0 %v5095_v60  ;;  %2032 = vmatprep.mubr.bf16.mxu1 %v5095_v60  ;;  %5127 = vst [vmem:[#allocation26_spill] sm:$0xff] %v4663_v6 }
 0x833   :  { %v4629_v32 = vpop.f32.mrf.mxu1 }
 0x835   :  { %v4633_v34 = vpop.f32.mrf.mxu1 }
 0x837   :  { %v4637_v7 = vpop.f32.mrf.mxu1 }
 0x838   :  { %5115 = vst [vmem:[#allocation16_spill] sm:$0xff] %v4637_v7 }
 0x839   :  { %1992 = vmatmul.mubr.bf16.vlgmr.msra.gmra.mxu0 %v1766_v43  ;;  %2033 = vmatmul.mubr.bf16.vlgmr.msra.gmra.mxu1 %v1766_v43  ;;  %v4641_v29 = vpop.f32.mrf.mxu1  ;;  %v5133_v43 = vld [vmem:[#allocation15_spill] sm:$0xff] }
 0x83a   :  { %2071 = vmatpush1.bf16.msra.mxu0 %v4488_v1  ;;  %2112 = vmatpush1.bf16.msra.mxu1 %v4490_v52  ;;  %5116 = vst [vmem:[#allocation17_spill] sm:$0xff] %v4641_v29  ;;  %v5134_v0 = vsub.s32 0, %v5133_v43  ;;  %v5140_v7 = vsub.s32 3, %v5133_v43 }
 0x83b   :  { %2072 = vmatprep.subr.bf16.mxu0 %v4496_v37  ;;  %2113 = vmatprep.subr.bf16.mxu1 %v4498_v35  ;;  %v4645_v20 = vpop.f32.mrf.mxu1 }
 0x83c   :  { %2102 = vmatprep.mubr.bf16.mxu0 %v5095_v60  ;;  %2143 = vmatprep.mubr.bf16.mxu1 %v5095_v60  ;;  %5118 = vst [vmem:[#allocation20_spill] sm:$0xff] %v4645_v20 }
 0x83d   :  { %v4649_v63 = vpop.f32.mrf.mxu1 }
 0x83e   :  { %2073 = vmatpush1.bf16.msra.mxu0 %v4500_v16  ;;  %2114 = vmatpush1.bf16.msra.mxu1 %v4502_v17  ;;  %5120 = vst [vmem:[#allocation21_spill] sm:$0xff] %v4649_v63 }
 0x83f   :  { %2074 = vmatprep.subr.bf16.mxu0 %v4508_v18  ;;  %2115 = vmatprep.subr.bf16.mxu1 %v4510_v19  ;;  %v4653_v61 = vpop.f32.mrf.mxu1 }
 0x840   :  { %5122 = vst [vmem:[#allocation24_spill] sm:$0xff] %v4653_v61  ;;  %v4680_v61 = vrot.slane %v1438_v15, %v5134_v0 }
 0x841   :  { %v4657_v36 = vpop.f32.mrf.mxu1 }
 0x842   :  { %2075 = vmatpush1.bf16.msra.mxu0 %v4512_v21  ;;  %2116 = vmatpush1.bf16.msra.mxu1 %v4514_v22  ;;  %5124 = vst [vmem:[#allocation25_spill] sm:$0xff] %v4657_v36 }
 0x843   :  { %2076 = vmatprep.subr.bf16.mxu0 %v4520_v23  ;;  %2117 = vmatprep.subr.bf16.mxu1 %v4522_v3  ;;  %v4661_v50 = vpop.f32.mrf.mxu1 }
 0x844   :  { %5126 = vst [vmem:[#allocation28_spill] sm:$0xff] %v4661_v50 }
 0x845   :  { %v4665_v14 = vpop.f32.mrf.mxu1 }
 0x846   :  { %2077 = vmatpush1.bf16.msra.mxu0 %v4524_v46  ;;  %2118 = vmatpush1.bf16.msra.mxu1 %v4526_v38  ;;  %5128 = vst [vmem:[#allocation29_spill] sm:$0xff] %v4665_v14  ;;  %v5137_v14 = vsub.s32 1, %v5133_v43 }
 0x847   :  { %2078 = vmatprep.subr.bf16.mxu0 %v4532_v26  ;;  %2119 = vmatprep.subr.bf16.mxu1 %v4534_v39 }
 0x848   :  { %v4688_v36 = vrot.slane %v1438_v15, %v5137_v14 }
 0x84a   :  { %2079 = vmatpush1.bf16.msra.mxu0 %v4536_v27  ;;  %2120 = vmatpush1.bf16.msra.mxu1 %v4538_v40  ;;  %v1657_v57 = vadd.f32 %v1656_v31, %v4688_v36  ;;  %v5141_v31 = vsub.s32 2, %v5133_v43 }
 0x84b   :  { %2080 = vmatprep.subr.bf16.mxu0 %v4544_v28  ;;  %2121 = vmatprep.subr.bf16.mxu1 %v4546_v41 }
 0x84e   :  { %2081 = vmatpush1.bf16.msra.mxu0 %v4548_v49  ;;  %2122 = vmatpush1.bf16.msra.mxu1 %v4550_v59 }
 0x84f   :  { %2082 = vmatprep.subr.bf16.mxu0 %v4556_v5  ;;  %2123 = vmatprep.subr.bf16.mxu1 %v4558_v12 }
 0x852   :  { %2083 = vmatpush1.bf16.msra.mxu0 %v4560_v56  ;;  %2124 = vmatpush1.bf16.msra.mxu1 %v4562_v13 }
 0x853   :  { %2084 = vmatprep.subr.bf16.mxu0 %v4564_v58  ;;  %2125 = vmatprep.subr.bf16.mxu1 %v4568_v62 }
 0x856   :  { %2085 = vmatpush1.bf16.msra.mxu0 %v4572_v8  ;;  %2126 = vmatpush1.bf16.msra.mxu1 %v4574_v11 }
 0x857   :  { %2181 = vmatprep.subr.bf16.mxu0 %v4484_v53  ;;  %2222 = vmatprep.subr.bf16.mxu1 %v4486_v55 }
 0x8f1   :  { %v4670_v2 = vpop.f32.mrf.mxu0  ;;  %v4672_v24 = vpop.f32.mrf.mxu1 }
 0x8f2   :  { %5129 = vst [vmem:[#allocation31_spill] sm:$0xff] %v4670_v2  ;;  %5130 = vst [vmem:[#allocation32_spill] sm:$0xff] %v4672_v24  ;;  %v1655_v24 = vadd.f32 %v1654_v9, %v4680_v61 }
 0x8f3   :  { %v4674_v25 = vpop.f32.mrf.mxu0  ;;  %v4676_v30 = vpop.f32.mrf.mxu1 }
 0x8f4   :  { %5131 = vst [vmem:[#allocation30_spill] sm:$0xff] %v4674_v25  ;;  %5132 = vst [vmem:[#allocation33_spill] sm:$0xff] %v4676_v30 }
 0x8f5   :  { %v4682_v50 = vpop.f32.mrf.mxu0  ;;  %v4684_v6 = vpop.f32.mrf.mxu1 }
 0x8f6   :  { %5135 = vst [vmem:[#allocation34_spill] sm:$0xff] %v4682_v50  ;;  %5136 = vst [vmem:[#allocation15_spill] sm:$0xff] %v4684_v6 }
 0x8f7   :  { %v4690_v54 = vpop.f32.mrf.mxu0  ;;  %v4692_v2 = vpop.f32.mrf.mxu1 }
 0x8f8   :  { %5138 = vst [vmem:[#allocation35_spill] sm:$0xff] %v4690_v54  ;;  %5139 = vst [vmem:[#allocation36_spill] sm:$0xff] %v4692_v2  ;;  %v4698_v54 = vrot.slane %v1438_v15, %v5140_v7 }
 0x8f9   :  { %v1993_v25 = vpop.f32.mrf.mxu0  ;;  %v2034_v30 = vpop.f32.mrf.mxu1 }
 0x8fa   :  { %v2041_v0 = vadd.f32 %v1993_v25, %v1655_v24  ;;  %v1730_v9 = vadd.f32 %v1729_v44, %v4698_v54  ;;  %v4703_v24 = vrot.slane %v1438_v15, %v5141_v31 }
 0x8fb   :  { %v1995_v20 = vpop.f32.mrf.mxu0  ;;  %v2036_v63 = vpop.f32.mrf.mxu1 }
 0x8fc   :  { %v3114_v50 = vmul.f32 -1.442695, %v2041_v0  ;;  %v2042_v48 = vadd.f32 %v1995_v20, %v1657_v57  ;;  %v2044_v25 = vadd.f32 %v2036_v63, %v1730_v9  ;;  %v1728_v20 = vadd.f32 %v1727_v47, %v4703_v24 }
 0x8fd   :  { %v1997_v6 = vpop.f32.mrf.mxu0  ;;  %v2038_v10 = vpop.f32.mrf.mxu1 }
 0x8fe   :  { %3476 = vpow2.f32 %v3114_v50  ;;  %v3115_v14 = vmul.f32 -1.442695, %v2042_v48  ;;  %v3116_v57 = vmul.f32 -1.442695, %v2044_v25  ;;  %v2043_v50 = vadd.f32 %v2034_v30, %v1728_v20 }
 0x8ff   :  { %v1998_v2 = vpop.f32.mrf.mxu0  ;;  %v2039_v29 = vpop.f32.mrf.mxu1 }
 0x900   :  { %3478 = vpow2.f32 %v3115_v14 }
 0x901   :  { %3480 = vpow2.f32 %v3116_v57  ;;  %v1661_v57 = vadd.f32 %v4631_v42, %v4688_v36 }
 0x90b   :  { %v3477_v10 = vpop.eup %3476 }
 0x90c   :  { %v2048_v48 = vadd.f32 1.0, %v3477_v10 }
 0x90d   :  { %v3479_v6 = vpop.eup %3478 }
 0x90e   :  { %3482 = vrcp.f32 %v2048_v48  ;;  %v2054_v7 = vadd.f32 1.0, %v3479_v6  ;;  %v3481_v29 = vpop.eup %3480 }
 0x90f   :  { %3484 = vtanh.f32 %v2043_v50  ;;  %v2061_v43 = vadd.f32 1.0, %v3481_v29 }
 0x910   :  { %3486 = vrcp.f32 %v2054_v7 }
 0x911   :  { %3488 = vrcp.f32 %v2061_v43 }
 0x91b   :  { %v3483_v2 = vpop.eup %3482 }
 0x91c   :  { %v3485_v44 = vpop.eup %3484 }
 0x91d   :  { %v3487_v0 = vpop.eup %3486  ;;  %v2065_v15 = vmul.f32 %v3485_v44, %v3483_v2 }
 0x91e   :  { %v2064_v63 = vmul.f32 %v3487_v0, %v4587_v45  ;;  %v3489_v47 = vpop.eup %3488  ;;  %v1659_v45 = vadd.f32 %v4627_v33, %v4680_v61  ;;  %v1734_v33 = vadd.f32 %v4633_v34, %v4698_v54 }
 0x920   :  { %v4707_v14 = vadd.f32 %v2065_v15, %v2064_v63  ;;  %v1732_v63 = vadd.f32 %v4629_v32, %v4703_v24 }
 0x922   :  { %3490 = vtanh.f32 %v4707_v14 }
 0x92f   :  { %v3491_v30 = vpop.eup %3490 }
 0x930   :  { %v2068_v9 = vmul.f32 %v3491_v30, %v3489_v47 }
 0x932   :  { %v2069_v31 = vpack.c.bf16 %v2068_v9, %v2068_v9 }
 0x934   :  { %2103 = vmatmul.mubr.bf16.vlgmr.msra.gmra.mxu0 %v2069_v31  ;;  %2144 = vmatmul.mubr.bf16.vlgmr.msra.gmra.mxu1 %v2069_v31 }
 0x935   :  { %2182 = vmatpush1.bf16.msra.mxu0 %v4488_v1  ;;  %2223 = vmatpush1.bf16.msra.mxu1 %v4490_v52 }
 0x936   :  { %2183 = vmatprep.subr.bf16.mxu0 %v4496_v37  ;;  %2224 = vmatprep.subr.bf16.mxu1 %v4498_v35 }
 0x937   :  { %2213 = vmatprep.mubr.bf16.mxu0 %v5095_v60  ;;  %2254 = vmatprep.mubr.bf16.mxu1 %v5095_v60 }
 0x939   :  { %2184 = vmatpush1.bf16.msra.mxu0 %v4500_v16  ;;  %2225 = vmatpush1.bf16.msra.mxu1 %v4502_v17 }
 0x93a   :  { %2185 = vmatprep.subr.bf16.mxu0 %v4508_v18  ;;  %2226 = vmatprep.subr.bf16.mxu1 %v4510_v19 }
 0x93d   :  { %2186 = vmatpush1.bf16.msra.mxu0 %v4512_v21  ;;  %2227 = vmatpush1.bf16.msra.mxu1 %v4514_v22 }
 0x93e   :  { %2187 = vmatprep.subr.bf16.mxu0 %v4520_v23  ;;  %2228 = vmatprep.subr.bf16.mxu1 %v4522_v3 }
 0x941   :  { %2188 = vmatpush1.bf16.msra.mxu0 %v4524_v46  ;;  %2229 = vmatpush1.bf16.msra.mxu1 %v4526_v38 }
 0x942   :  { %2189 = vmatprep.subr.bf16.mxu0 %v4532_v26  ;;  %2230 = vmatprep.subr.bf16.mxu1 %v4534_v39 }
 0x945   :  { %2190 = vmatpush1.bf16.msra.mxu0 %v4536_v27  ;;  %2231 = vmatpush1.bf16.msra.mxu1 %v4538_v40 }
 0x946   :  { %2191 = vmatprep.subr.bf16.mxu0 %v4544_v28  ;;  %2232 = vmatprep.subr.bf16.mxu1 %v4546_v41 }
 0x949   :  { %2192 = vmatpush1.bf16.msra.mxu0 %v4548_v49  ;;  %2233 = vmatpush1.bf16.msra.mxu1 %v4550_v59 }
 0x94a   :  { %2193 = vmatprep.subr.bf16.mxu0 %v4556_v5  ;;  %2234 = vmatprep.subr.bf16.mxu1 %v4558_v12 }
 0x94d   :  { %2194 = vmatpush1.bf16.msra.mxu0 %v4560_v56  ;;  %2235 = vmatpush1.bf16.msra.mxu1 %v4562_v13 }
 0x94e   :  { %2195 = vmatprep.subr.bf16.mxu0 %v4564_v58  ;;  %2236 = vmatprep.subr.bf16.mxu1 %v4568_v62 }
 0x951   :  { %2196 = vmatpush1.bf16.msra.mxu0 %v4572_v8  ;;  %2237 = vmatpush1.bf16.msra.mxu1 %v4574_v11 }
 0x952   :  { %2292 = vmatprep.subr.bf16.mxu0 %v4484_v53  ;;  %2333 = vmatprep.subr.bf16.mxu1 %v4486_v55 }
 0x9f4   :  { %v2104_v25 = vpop.f32.mrf.mxu0  ;;  %v2145_v20 = vpop.f32.mrf.mxu1 }
 0x9f5   :  { %v2152_v10 = vadd.f32 %v2104_v25, %v1659_v45  ;;  %v2154_v42 = vadd.f32 %v2145_v20, %v1732_v63 }
 0x9f6   :  { %v2106_v50 = vpop.f32.mrf.mxu0  ;;  %v2147_v48 = vpop.f32.mrf.mxu1 }
 0x9f7   :  { %v3117_v6 = vmul.f32 -1.442695, %v2152_v10  ;;  %v2153_v7 = vadd.f32 %v2106_v50, %v1661_v57  ;;  %v2155_v15 = vadd.f32 %v2147_v48, %v1734_v33 }
 0x9f8   :  { %v2108_v29 = vpop.f32.mrf.mxu0  ;;  %v2149_v2 = vpop.f32.mrf.mxu1 }
 0x9f9   :  { %3492 = vpow2.f32 %v3117_v6  ;;  %v3118_v44 = vmul.f32 -1.442695, %v2153_v7  ;;  %v3119_v47 = vmul.f32 -1.442695, %v2155_v15 }
 0x9fa   :  { %v2109_v0 = vpop.f32.mrf.mxu0  ;;  %v2150_v43 = vpop.f32.mrf.mxu1 }
 0x9fb   :  { %3494 = vpow2.f32 %v3118_v44  ;;  %v1667_v43 = vadd.f32 %v4639_v51, %v4688_v36 }
 0x9fc   :  { %3496 = vtanh.f32 %v2154_v42 }
 0x9fd   :  { %3498 = vpow2.f32 %v3119_v47 }
 0xa06   :  { %v3493_v30 = vpop.eup %3492 }
 0xa07   :  { %v2159_v9 = vadd.f32 1.0, %v3493_v30 }
 0xa08   :  { %v3495_v31 = vpop.eup %3494 }
 0xa09   :  { %3500 = vrcp.f32 %v2159_v9  ;;  %v2165_v45 = vadd.f32 1.0, %v3495_v31  ;;  %v3497_v25 = vpop.eup %3496 }
 0xa0a   :  { %v3499_v57 = vpop.eup %3498 }
 0xa0b   :  { %3502 = vrcp.f32 %v2165_v45  ;;  %v2172_v34 = vadd.f32 1.0, %v3499_v57  ;;  %v5142_v57 = vld [vmem:[#allocation17_spill] sm:$0xff] }
 0xa0d   :  { %3504 = vrcp.f32 %v2172_v34 }
 0xa16   :  { %v3501_v10 = vpop.eup %3500 }
 0xa17   :  { %v2176_v50 = vmul.f32 %v3501_v10, %v3497_v25 }
 0xa18   :  { %v3503_v6 = vpop.eup %3502 }
 0xa19   :  { %v2175_v48 = vmul.f32 %v3503_v6, %v4707_v14  ;;  %v1665_v14 = vadd.f32 %v4635_v4, %v4680_v61  ;;  %v1740_v4 = vadd.f32 %v5142_v57, %v4698_v54  ;;  %v5145_v57 = vld [vmem:[#allocation18_spill] sm:$0xff] }
 0xa1a   :  { %v3505_v32 = vpop.eup %3504 }
 0xa1b   :  { %v4753_v7 = vadd.f32 %v2176_v50, %v2175_v48  ;;  %v5143_v50 = vld [vmem:[#allocation16_spill] sm:$0xff] }
 0xa1c   :  { %v1738_v6 = vadd.f32 %v5143_v50, %v4703_v24 }
 0xa1d   :  { %3506 = vtanh.f32 %v4753_v7 }
 0xa2a   :  { %v3507_v20 = vpop.eup %3506 }
 0xa2b   :  { %v2179_v29 = vmul.f32 %v3507_v20, %v3505_v32 }
 0xa2d   :  { %v2180_v2 = vpack.c.bf16 %v2179_v29, %v2179_v29 }
 0xa2f   :  { %2214 = vmatmul.mubr.bf16.vlgmr.msra.gmra.mxu0 %v2180_v2  ;;  %2255 = vmatmul.mubr.bf16.vlgmr.msra.gmra.mxu1 %v2180_v2 }
 0xa30   :  { %2293 = vmatpush1.bf16.msra.mxu0 %v4488_v1  ;;  %2334 = vmatpush1.bf16.msra.mxu1 %v4490_v52 }
 0xa31   :  { %2294 = vmatprep.subr.bf16.mxu0 %v4496_v37  ;;  %2335 = vmatprep.subr.bf16.mxu1 %v4498_v35 }
 0xa32   :  { %2324 = vmatprep.mubr.bf16.mxu0 %v5095_v60  ;;  %2365 = vmatprep.mubr.bf16.mxu1 %v5095_v60 }
 0xa34   :  { %2295 = vmatpush1.bf16.msra.mxu0 %v4500_v16  ;;  %2336 = vmatpush1.bf16.msra.mxu1 %v4502_v17 }
 0xa35   :  { %2296 = vmatprep.subr.bf16.mxu0 %v4508_v18  ;;  %2337 = vmatprep.subr.bf16.mxu1 %v4510_v19 }
 0xa38   :  { %2297 = vmatpush1.bf16.msra.mxu0 %v4512_v21  ;;  %2338 = vmatpush1.bf16.msra.mxu1 %v4514_v22 }
 0xa39   :  { %2298 = vmatprep.subr.bf16.mxu0 %v4520_v23  ;;  %2339 = vmatprep.subr.bf16.mxu1 %v4522_v3 }
 0xa3c   :  { %2299 = vmatpush1.bf16.msra.mxu0 %v4524_v46  ;;  %2340 = vmatpush1.bf16.msra.mxu1 %v4526_v38 }
 0xa3d   :  { %2300 = vmatprep.subr.bf16.mxu0 %v4532_v26  ;;  %2341 = vmatprep.subr.bf16.mxu1 %v4534_v39 }
 0xa40   :  { %2301 = vmatpush1.bf16.msra.mxu0 %v4536_v27  ;;  %2342 = vmatpush1.bf16.msra.mxu1 %v4538_v40 }
 0xa41   :  { %2302 = vmatprep.subr.bf16.mxu0 %v4544_v28  ;;  %2343 = vmatprep.subr.bf16.mxu1 %v4546_v41 }
 0xa44   :  { %2303 = vmatpush1.bf16.msra.mxu0 %v4548_v49  ;;  %2344 = vmatpush1.bf16.msra.mxu1 %v4550_v59 }
 0xa45   :  { %2304 = vmatprep.subr.bf16.mxu0 %v4556_v5  ;;  %2345 = vmatprep.subr.bf16.mxu1 %v4558_v12 }
 0xa48   :  { %2305 = vmatpush1.bf16.msra.mxu0 %v4560_v56  ;;  %2346 = vmatpush1.bf16.msra.mxu1 %v4562_v13 }
 0xa49   :  { %2306 = vmatprep.subr.bf16.mxu0 %v4564_v58  ;;  %2347 = vmatprep.subr.bf16.mxu1 %v4568_v62 }
 0xa4c   :  { %2307 = vmatpush1.bf16.msra.mxu0 %v4572_v8  ;;  %2348 = vmatpush1.bf16.msra.mxu1 %v4574_v11 }
 0xa4d   :  { %2403 = vmatprep.subr.bf16.mxu0 %v4484_v53  ;;  %2444 = vmatprep.subr.bf16.mxu1 %v4486_v55 }
 0xaef   :  { %v2215_v44 = vpop.f32.mrf.mxu0  ;;  %v2256_v0 = vpop.f32.mrf.mxu1 }
 0xaf0   :  { %v2263_v33 = vadd.f32 %v2215_v44, %v1665_v14  ;;  %v2265_v51 = vadd.f32 %v2256_v0, %v1738_v6 }
 0xaf1   :  { %v2217_v15 = vpop.f32.mrf.mxu0  ;;  %v2258_v63 = vpop.f32.mrf.mxu1 }
 0xaf2   :  { %v3120_v42 = vmul.f32 -1.442695, %v2263_v33  ;;  %v2264_v47 = vadd.f32 %v2217_v15, %v1667_v43  ;;  %v2266_v10 = vadd.f32 %v2258_v63, %v1740_v4  ;;  %v1671_v4 = vadd.f32 %v5145_v57, %v4688_v36 }
 0xaf3   :  { %v2219_v30 = vpop.f32.mrf.mxu0  ;;  %v2260_v9 = vpop.f32.mrf.mxu1 }
 0xaf4   :  { %3508 = vpow2.f32 %v3120_v42  ;;  %v3121_v31 = vmul.f32 -1.442695, %v2264_v47  ;;  %v3122_v34 = vmul.f32 -1.442695, %v2266_v10 }
 0xaf5   :  { %v2220_v45 = vpop.f32.mrf.mxu0  ;;  %v2261_v25 = vpop.f32.mrf.mxu1 }
 0xaf6   :  { %3510 = vpow2.f32 %v3121_v31 }
 0xaf7   :  { %3512 = vtanh.f32 %v2265_v51 }
 0xaf8   :  { %3514 = vpow2.f32 %v3122_v34 }
 0xb01   :  { %v3509_v48 = vpop.eup %3508 }
 0xb02   :  { %v2270_v32 = vadd.f32 1.0, %v3509_v48 }
 0xb03   :  { %v3511_v20 = vpop.eup %3510 }
 0xb04   :  { %3516 = vrcp.f32 %v2270_v32  ;;  %v2276_v29 = vadd.f32 1.0, %v3511_v20  ;;  %v3513_v2 = vpop.eup %3512 }
 0xb05   :  { %v3515_v14 = vpop.eup %3514 }
 0xb06   :  { %3518 = vrcp.f32 %v2276_v29  ;;  %v2283_v15 = vadd.f32 1.0, %v3515_v14  ;;  %v5146_v14 = vld [vmem:[#allocation21_spill] sm:$0xff] }
 0xb08   :  { %3520 = vrcp.f32 %v2283_v15 }
 0xb11   :  { %v3517_v44 = vpop.eup %3516 }
 0xb12   :  { %v2287_v43 = vmul.f32 %v3517_v44, %v3513_v2  ;;  %v1744_v44 = vadd.f32 %v5146_v14, %v4698_v54 }
 0xb13   :  { %v3519_v33 = vpop.eup %3518 }
 0xb14   :  { %v2286_v63 = vmul.f32 %v3519_v33, %v4753_v7  ;;  %v5144_v7 = vld [vmem:[#allocation19_spill] sm:$0xff]  ;;  %v5147_v33 = vld [vmem:[#allocation20_spill] sm:$0xff] }
 0xb15   :  { %v3521_v0 = vpop.eup %3520  ;;  %v1669_v31 = vadd.f32 %v5144_v7, %v4680_v61  ;;  %v1742_v15 = vadd.f32 %v5147_v33, %v4703_v24  ;;  %v4894_v33 = vld [vmem:[#allocation7 + $0xe0] ss:$16 sps:$4 sm:$0xff]  }
 0xb16   :  { %v4799_v42 = vadd.f32 %v2287_v43, %v2286_v63 }
 0xb18   :  { %3522 = vtanh.f32 %v4799_v42 }
 0xb25   :  { %v3523_v47 = vpop.eup %3522 }
 0xb26   :  { %v2290_v30 = vmul.f32 %v3523_v47, %v3521_v0 }
 0xb28   :  { %v2291_v9 = vpack.c.bf16 %v2290_v30, %v2290_v30 }
 0xb2a   :  { %2325 = vmatmul.mubr.bf16.vlgmr.msra.gmra.mxu0 %v2291_v9  ;;  %2366 = vmatmul.mubr.bf16.vlgmr.msra.gmra.mxu1 %v2291_v9 }
 0xb2b   :  { %2404 = vmatpush1.bf16.msra.mxu0 %v4488_v1  ;;  %2445 = vmatpush1.bf16.msra.mxu1 %v4490_v52 }
 0xb2c   :  { %2405 = vmatprep.subr.bf16.mxu0 %v4496_v37  ;;  %2446 = vmatprep.subr.bf16.mxu1 %v4498_v35 }
 0xb2d   :  { %2435 = vmatprep.mubr.bf16.mxu0 %v5095_v60  ;;  %2476 = vmatprep.mubr.bf16.mxu1 %v5095_v60 }
 0xb2f   :  { %2406 = vmatpush1.bf16.msra.mxu0 %v4500_v16  ;;  %2447 = vmatpush1.bf16.msra.mxu1 %v4502_v17 }
 0xb30   :  { %2407 = vmatprep.subr.bf16.mxu0 %v4508_v18  ;;  %2448 = vmatprep.subr.bf16.mxu1 %v4510_v19 }
 0xb33   :  { %2408 = vmatpush1.bf16.msra.mxu0 %v4512_v21  ;;  %2449 = vmatpush1.bf16.msra.mxu1 %v4514_v22 }
 0xb34   :  { %2409 = vmatprep.subr.bf16.mxu0 %v4520_v23  ;;  %2450 = vmatprep.subr.bf16.mxu1 %v4522_v3 }
 0xb37   :  { %2410 = vmatpush1.bf16.msra.mxu0 %v4524_v46  ;;  %2451 = vmatpush1.bf16.msra.mxu1 %v4526_v38 }
 0xb38   :  { %2411 = vmatprep.subr.bf16.mxu0 %v4532_v26  ;;  %2452 = vmatprep.subr.bf16.mxu1 %v4534_v39 }
 0xb3b   :  { %2412 = vmatpush1.bf16.msra.mxu0 %v4536_v27  ;;  %2453 = vmatpush1.bf16.msra.mxu1 %v4538_v40 }
 0xb3c   :  { %2413 = vmatprep.subr.bf16.mxu0 %v4544_v28  ;;  %2454 = vmatprep.subr.bf16.mxu1 %v4546_v41 }
 0xb3f   :  { %2414 = vmatpush1.bf16.msra.mxu0 %v4548_v49  ;;  %2455 = vmatpush1.bf16.msra.mxu1 %v4550_v59 }
 0xb40   :  { %2415 = vmatprep.subr.bf16.mxu0 %v4556_v5  ;;  %2456 = vmatprep.subr.bf16.mxu1 %v4558_v12 }
 0xb43   :  { %2416 = vmatpush1.bf16.msra.mxu0 %v4560_v56  ;;  %2457 = vmatpush1.bf16.msra.mxu1 %v4562_v13 }
 0xb44   :  { %2417 = vmatprep.subr.bf16.mxu0 %v4564_v58  ;;  %2458 = vmatprep.subr.bf16.mxu1 %v4568_v62 }
 0xb47   :  { %2418 = vmatpush1.bf16.msra.mxu0 %v4572_v8  ;;  %2459 = vmatpush1.bf16.msra.mxu1 %v4574_v11 }
 0xb48   :  { %2514 = vmatprep.subr.bf16.mxu0 %v4484_v53  ;;  %2555 = vmatprep.subr.bf16.mxu1 %v4486_v55 }
 0xbea   :  { %v2326_v45 = vpop.f32.mrf.mxu0  ;;  %v2367_v25 = vpop.f32.mrf.mxu1 }
 0xbeb   :  { %v2374_v10 = vadd.f32 %v2326_v45, %v1669_v31  ;;  %v2376_v63 = vadd.f32 %v2367_v25, %v1742_v15  ;;  %v4897_v15 = vld [vmem:[#allocation7 + $0xe8] ss:$16 sps:$4 sm:$0xff]  }
 0xbec   :  { %v2328_v50 = vpop.f32.mrf.mxu0  ;;  %v2369_v6 = vpop.f32.mrf.mxu1 }
 0xbed   :  { %v3123_v51 = vmul.f32 -1.442695, %v2374_v10  ;;  %v2375_v34 = vadd.f32 %v2328_v50, %v1671_v4  ;;  %v2377_v43 = vadd.f32 %v2369_v6, %v1744_v44 }
 0xbee   :  { %v2330_v48 = vpop.f32.mrf.mxu0  ;;  %v2371_v32 = vpop.f32.mrf.mxu1 }
 0xbef   :  { %3524 = vpow2.f32 %v3123_v51  ;;  %v3124_v20 = vmul.f32 -1.442695, %v2375_v34  ;;  %v3125_v0 = vmul.f32 -1.442695, %v2377_v43 }
 0xbf0   :  { %v2331_v29 = vpop.f32.mrf.mxu0  ;;  %v2372_v2 = vpop.f32.mrf.mxu1 }
 0xbf1   :  { %3526 = vpow2.f32 %v3124_v20 }
 0xbf2   :  { %3528 = vtanh.f32 %v2376_v63  ;;  %v4900_v63 = vld [vmem:[#allocation7 + $0xc4] ss:$16 sps:$4 sm:$0xff]  }
 0xbf3   :  { %3530 = vpow2.f32 %v3125_v0  ;;  %v4903_v0 = vld [vmem:[#allocation7 + $0xcc] ss:$16 sps:$4 sm:$0xff]  }
 0xbfc   :  { %v3525_v47 = vpop.eup %3524 }
 0xbfd   :  { %v2381_v30 = vadd.f32 1.0, %v3525_v47  ;;  %v4908_v47 = vld [vmem:[#allocation7 + $0xc0] ss:$16 sps:$4 sm:$0xff]  }
 0xbfe   :  { %v3527_v9 = vpop.eup %3526 }
 0xbff   :  { %3532 = vrcp.f32 %v2381_v30  ;;  %v2387_v7 = vadd.f32 1.0, %v3527_v9  ;;  %v3529_v31 = vpop.eup %3528  ;;  %v4911_v30 = vld [vmem:[#allocation7 + $0xc8] ss:$16 sps:$4 sm:$0xff]   ;;  %v4914_v9 = vld [vmem:[#allocation7 + $0xa4] ss:$16 sps:$4 sm:$0xff]  }
 0xc00   :  { %v3531_v45 = vpop.eup %3530 }
 0xc01   :  { %3534 = vrcp.f32 %v2387_v7  ;;  %v2394_v50 = vadd.f32 1.0, %v3531_v45  ;;  %v4917_v7 = vld [vmem:[#allocation7 + $0xac] ss:$16 sps:$4 sm:$0xff]   ;;  %v4923_v45 = vld [vmem:[#allocation7 + $0xa8] ss:$16 sps:$4 sm:$0xff]  }
 0xc03   :  { %3536 = vrcp.f32 %v2394_v50  ;;  %v4935_v50 = vld [vmem:[#allocation7 + $0x88] ss:$16 sps:$4 sm:$0xff]  }
 0xc0c   :  { %v3533_v57 = vpop.eup %3532 }
 0xc0d   :  { %v2398_v4 = vmul.f32 %v3533_v57, %v3529_v31  ;;  %v4920_v31 = vld [vmem:[#allocation7 + $0xa0] ss:$16 sps:$4 sm:$0xff]   ;;  %v4926_v57 = vld [vmem:[#allocation7 + $0x84] ss:$16 sps:$4 sm:$0xff]  }
 0xc0e   :  { %v3535_v10 = vpop.eup %3534 }
 0xc0f   :  { %v2397_v6 = vmul.f32 %v3535_v10, %v4799_v42  ;;  %v4932_v10 = vld [vmem:[#allocation7 + $0x80] ss:$16 sps:$4 sm:$0xff]  }
 0xc10   :  { %v3537_v25 = vpop.eup %3536 }
 0xc11   :  { %v4845_v51 = vadd.f32 %v2398_v4, %v2397_v6  ;;  %v4929_v4 = vld [vmem:[#allocation7 + $0x8c] ss:$16 sps:$4 sm:$0xff]   ;;  %v4938_v6 = vld [vmem:[#allocation7 + $0x64] ss:$16 sps:$4 sm:$0xff]  }
 0xc13   :  { %3538 = vtanh.f32 %v4845_v51 }
 0xc20   :  { %v3539_v34 = vpop.eup %3538 }
 0xc21   :  { %v2401_v48 = vmul.f32 %v3539_v34, %v3537_v25  ;;  %v4944_v25 = vld [vmem:[#allocation7 + $0x60] ss:$16 sps:$4 sm:$0xff]   ;;  %v4947_v34 = vld [vmem:[#allocation7 + $0x68] ss:$16 sps:$4 sm:$0xff]  }
 0xc23   :  { %v2402_v32 = vpack.c.bf16 %v2401_v48, %v2401_v48  ;;  %v4950_v48 = vld [vmem:[#allocation7 + $0x44] ss:$16 sps:$4 sm:$0xff]  }
 0xc25   :  { %2436 = vmatmul.mubr.bf16.vlgmr.msra.gmra.mxu0 %v2402_v32  ;;  %2477 = vmatmul.mubr.bf16.vlgmr.msra.gmra.mxu1 %v2402_v32  ;;  %v4953_v32 = vld [vmem:[#allocation7 + $0x4c] ss:$16 sps:$4 sm:$0xff]  }
 0xc26   :  { %2515 = vmatpush1.bf16.msra.mxu0 %v4488_v1  ;;  %2556 = vmatpush1.bf16.msra.mxu1 %v4490_v52  ;;  %v5148_v1 = vld [vmem:[#allocation23_spill] sm:$0xff] }
 0xc27   :  { %2516 = vmatprep.subr.bf16.mxu0 %v4496_v37  ;;  %2557 = vmatprep.subr.bf16.mxu1 %v4498_v35  ;;  %v1675_v52 = vadd.f32 %v5148_v1, %v4680_v61  ;;  %v4956_v1 = vld [vmem:[#allocation7 + $0x40] ss:$16 sps:$4 sm:$0xff]  }
 0xc28   :  { %2546 = vmatprep.mubr.bf16.mxu0 %v5095_v60  ;;  %2587 = vmatprep.mubr.bf16.mxu1 %v5095_v60 }
 0xc2a   :  { %2517 = vmatpush1.bf16.msra.mxu0 %v4500_v16  ;;  %2558 = vmatpush1.bf16.msra.mxu1 %v4502_v17  ;;  %v5149_v16 = vld [vmem:[#allocation22_spill] sm:$0xff] }
 0xc2b   :  { %2518 = vmatprep.subr.bf16.mxu0 %v4508_v18  ;;  %2559 = vmatprep.subr.bf16.mxu1 %v4510_v19  ;;  %v1677_v17 = vadd.f32 %v5149_v16, %v4688_v36  ;;  %v4968_v16 = vld [vmem:[#allocation7 + $0x20] ss:$16 sps:$4 sm:$0xff]  }
 0xc2e   :  { %2519 = vmatpush1.bf16.msra.mxu0 %v4512_v21  ;;  %2560 = vmatpush1.bf16.msra.mxu1 %v4514_v22 }
 0xc2f   :  { %2520 = vmatprep.subr.bf16.mxu0 %v4520_v23  ;;  %2561 = vmatprep.subr.bf16.mxu1 %v4522_v3 }
 0xc32   :  { %2521 = vmatpush1.bf16.msra.mxu0 %v4524_v46  ;;  %2562 = vmatpush1.bf16.msra.mxu1 %v4526_v38 }
 0xc33   :  { %2522 = vmatprep.subr.bf16.mxu0 %v4532_v26  ;;  %2563 = vmatprep.subr.bf16.mxu1 %v4534_v39 }
 0xc36   :  { %2523 = vmatpush1.bf16.msra.mxu0 %v4536_v27  ;;  %2564 = vmatpush1.bf16.msra.mxu1 %v4538_v40  ;;  %v5151_v40 = vld [vmem:[#allocation24_spill] sm:$0xff] }
 0xc37   :  { %2524 = vmatprep.subr.bf16.mxu0 %v4544_v28  ;;  %2565 = vmatprep.subr.bf16.mxu1 %v4546_v41  ;;  %v1748_v28 = vadd.f32 %v5151_v40, %v4703_v24 }
 0xc3a   :  { %2525 = vmatpush1.bf16.msra.mxu0 %v4548_v49  ;;  %2566 = vmatpush1.bf16.msra.mxu1 %v4550_v59 }
 0xc3b   :  { %2526 = vmatprep.subr.bf16.mxu0 %v4556_v5  ;;  %2567 = vmatprep.subr.bf16.mxu1 %v4558_v12 }
 0xc3e   :  { %2527 = vmatpush1.bf16.msra.mxu0 %v4560_v56  ;;  %2568 = vmatpush1.bf16.msra.mxu1 %v4562_v13 }
 0xc3f   :  { %2528 = vmatprep.subr.bf16.mxu0 %v4564_v58  ;;  %2569 = vmatprep.subr.bf16.mxu1 %v4568_v62 }
 0xc42   :  { %2529 = vmatpush1.bf16.msra.mxu0 %v4572_v8  ;;  %2570 = vmatpush1.bf16.msra.mxu1 %v4574_v11 }
 0xc43   :  { %2625 = vmatprep.subr.bf16.mxu0 %v4484_v53  ;;  %2666 = vmatprep.subr.bf16.mxu1 %v4486_v55  ;;  %v5150_v55 = vld [vmem:[#allocation25_spill] sm:$0xff] }
 0xc44   :  { %v1750_v39 = vadd.f32 %v5150_v55, %v4698_v54  ;;  %v5153_v55 = vld [vmem:[#allocation26_spill] sm:$0xff] }
 0xce5   :  { %v2437_v37 = vpop.f32.mrf.mxu0  ;;  %v2478_v35 = vpop.f32.mrf.mxu1 }
 0xce6   :  { %v2485_v18 = vadd.f32 %v2437_v37, %v1675_v52  ;;  %v2487_v41 = vadd.f32 %v2478_v35, %v1748_v28  ;;  %v4959_v52 = vld [vmem:[#allocation7 + $0x48] ss:$16 sps:$4 sm:$0xff]   ;;  %v4962_v37 = vld [vmem:[#allocation7 + $0x24] ss:$16 sps:$4 sm:$0xff]   ;;  %v4965_v35 = vld [vmem:[#allocation7 + $0x2c] ss:$16 sps:$4 sm:$0xff]  }
 0xce7   :  { %v2439_v19 = vpop.f32.mrf.mxu0  ;;  %v2480_v21 = vpop.f32.mrf.mxu1 }
 0xce8   :  { %v3126_v22 = vmul.f32 -1.442695, %v2485_v18  ;;  %v2486_v23 = vadd.f32 %v2439_v19, %v1677_v17  ;;  %v2488_v27 = vadd.f32 %v2480_v21, %v1750_v39  ;;  %v4971_v17 = vld [vmem:[#allocation7 + $0x28] ss:$16 sps:$4 sm:$0xff]   ;;  %v4974_v18 = vld [vmem:[#allocation7 + $0x4] ss:$16 sps:$4 sm:$0xff]   ;;  %v1681_v39 = vadd.f32 %v5153_v55, %v4688_v36 }
 0xce9   :  { %v2441_v3 = vpop.f32.mrf.mxu0  ;;  %v2482_v46 = vpop.f32.mrf.mxu1  ;;  %v4977_v19 = vld [vmem:[#allocation7 + $0xc] ss:$16 sps:$4 sm:$0xff]   ;;  %v4980_v21 = vld [vmem:[#allocation7] ss:$16 sps:$4 sm:$0xff]  }
 0xcea   :  { %3540 = vpow2.f32 %v3126_v22  ;;  %v3127_v38 = vmul.f32 -1.442695, %v2486_v23  ;;  %v3128_v49 = vmul.f32 -1.442695, %v2488_v27  ;;  %v4983_v22 = vld [vmem:[#allocation7 + $0x8] ss:$16 sps:$4 sm:$0xff]  }
 0xceb   :  { %v2442_v53 = vpop.f32.mrf.mxu0  ;;  %v2483_v26 = vpop.f32.mrf.mxu1  ;;  %v3666_v23 = vld [vmem:[#allocation7 + $0xe4] ss:$16 sps:$4 sm:$0xff]   ;;  %v3667_v3 = vld [vmem:[#allocation7 + $0xec] ss:$16 sps:$4 sm:$0xff]  }
 0xcec   :  { %3542 = vpow2.f32 %v3127_v38  ;;  %v5152_v46 = vld [vmem:[#allocation27_spill] sm:$0xff] }
 0xced   :  { %3544 = vtanh.f32 %v2487_v41  ;;  %v1679_v38 = vadd.f32 %v5152_v46, %v4680_v61 }
 0xcee   :  { %3546 = vpow2.f32 %v3128_v49 }
 0xcf7   :  { %v3541_v59 = vpop.eup %3540 }
 0xcf8   :  { %v2492_v5 = vadd.f32 1.0, %v3541_v59 }
 0xcf9   :  { %v3543_v12 = vpop.eup %3542 }
 0xcfa   :  { %3548 = vrcp.f32 %v2492_v5  ;;  %v2498_v56 = vadd.f32 1.0, %v3543_v12  ;;  %v3545_v13 = vpop.eup %3544 }
 0xcfb   :  { %v3547_v58 = vpop.eup %3546 }
 0xcfc   :  { %3550 = vrcp.f32 %v2498_v56  ;;  %v2505_v42 = vadd.f32 1.0, %v3547_v58  ;;  %v5154_v58 = vld [vmem:[#allocation29_spill] sm:$0xff] }
 0xcfe   :  { %3552 = vrcp.f32 %v2505_v42 }
 0xd07   :  { %v3549_v62 = vpop.eup %3548 }
 0xd08   :  { %v2509_v8 = vmul.f32 %v3549_v62, %v3545_v13  ;;  %v1754_v62 = vadd.f32 %v5154_v58, %v4698_v54 }
 0xd09   :  { %v3551_v11 = vpop.eup %3550 }
 0xd0a   :  { %v2508_v20 = vmul.f32 %v3551_v11, %v4845_v51  ;;  %v4941_v51 = vld [vmem:[#allocation7 + $0x6c] ss:$16 sps:$4 sm:$0xff]   ;;  %v5155_v11 = vld [vmem:[#allocation28_spill] sm:$0xff] }
 0xd0b   :  { %v3553_v2 = vpop.eup %3552  ;;  %v1752_v42 = vadd.f32 %v5155_v11, %v4703_v24  ;;  %v3785_v11 = vmov 0.0  }
 0xd0c   :  { %v4891_v29 = vadd.f32 %v2509_v8, %v2508_v20 }
 0xd0e   :  { %3554 = vtanh.f32 %v4891_v29 }
 0xd1b   :  { %v3555_v14 = vpop.eup %3554 }
 0xd1c   :  { %v2512_v44 = vmul.f32 %v3555_v14, %v3553_v2 }
 0xd1e   :  { %v2513_v43 = vpack.c.bf16 %v2512_v44, %v2512_v44 }
 0xd20   :  { %2547 = vmatmul.mubr.bf16.vlgmr.msra.gmra.mxu0 %v2513_v43  ;;  %2588 = vmatmul.mubr.bf16.vlgmr.msra.gmra.mxu1 %v2513_v43 }
 0xd21   :  { %2626 = vmatpush1.bf16.msra.mxu0 %v4894_v33  ;;  %2667 = vmatpush1.bf16.msra.mxu1 %v4897_v15 }
 0xd22   :  { %2627 = vmatprep.subr.bf16.mxu0 %v4900_v63  ;;  %2668 = vmatprep.subr.bf16.mxu1 %v4903_v0 }
 0xd23   :  { %2657 = vmatprep.mubr.bf16.mxu0 %v5095_v60  ;;  %2698 = vmatprep.mubr.bf16.mxu1 %v5095_v60 }
 0xd25   :  { %2628 = vmatpush1.bf16.msra.mxu0 %v4908_v47  ;;  %2669 = vmatpush1.bf16.msra.mxu1 %v4911_v30 }
 0xd26   :  { %2629 = vmatprep.subr.bf16.mxu0 %v4914_v9  ;;  %2670 = vmatprep.subr.bf16.mxu1 %v4917_v7 }
 0xd29   :  { %2630 = vmatpush1.bf16.msra.mxu0 %v4920_v31  ;;  %2671 = vmatpush1.bf16.msra.mxu1 %v4923_v45 }
 0xd2a   :  { %2631 = vmatprep.subr.bf16.mxu0 %v4926_v57  ;;  %2672 = vmatprep.subr.bf16.mxu1 %v4929_v4 }
 0xd2d   :  { %2632 = vmatpush1.bf16.msra.mxu0 %v4932_v10  ;;  %2673 = vmatpush1.bf16.msra.mxu1 %v4935_v50 }
 0xd2e   :  { %2633 = vmatprep.subr.bf16.mxu0 %v4938_v6  ;;  %2674 = vmatprep.subr.bf16.mxu1 %v4941_v51 }
 0xd31   :  { %2634 = vmatpush1.bf16.msra.mxu0 %v4944_v25  ;;  %2675 = vmatpush1.bf16.msra.mxu1 %v4947_v34 }
 0xd32   :  { %2635 = vmatprep.subr.bf16.mxu0 %v4950_v48  ;;  %2676 = vmatprep.subr.bf16.mxu1 %v4953_v32 }
 0xd35   :  { %2636 = vmatpush1.bf16.msra.mxu0 %v4956_v1  ;;  %2677 = vmatpush1.bf16.msra.mxu1 %v4959_v52 }
 0xd36   :  { %2637 = vmatprep.subr.bf16.mxu0 %v4962_v37  ;;  %2678 = vmatprep.subr.bf16.mxu1 %v4965_v35 }
 0xd39   :  { %2638 = vmatpush1.bf16.msra.mxu0 %v4968_v16  ;;  %2679 = vmatpush1.bf16.msra.mxu1 %v4971_v17 }
 0xd3a   :  { %2639 = vmatprep.subr.bf16.mxu0 %v4974_v18  ;;  %2680 = vmatprep.subr.bf16.mxu1 %v4977_v19 }
 0xd3d   :  { %2640 = vmatpush1.bf16.msra.mxu0 %v4980_v21  ;;  %2681 = vmatpush1.bf16.msra.mxu1 %v4983_v22 }
 0xd3e   :  { %2736 = vmatprep.subr.bf16.mxu0 %v3666_v23  ;;  %2777 = vmatprep.subr.bf16.mxu1 %v3667_v3 }
 0xde0   :  { %v2548_v53 = vpop.f32.mrf.mxu0  ;;  %v2589_v26 = vpop.f32.mrf.mxu1 }
 0xde1   :  { %v2596_v27 = vadd.f32 %v2548_v53, %v1679_v38  ;;  %v2598_v20 = vadd.f32 %v2589_v26, %v1752_v42  ;;  %v3341_v42 = vld [vmem:[#allocation8 + $0x30] sm:$0xff]  }
 0xde2   :  { %v2550_v40 = vpop.f32.mrf.mxu0  ;;  %v2591_v28 = vpop.f32.mrf.mxu1 }
 0xde3   :  { %v3129_v41 = vmul.f32 -1.442695, %v2596_v27  ;;  %v2597_v49 = vadd.f32 %v2550_v40, %v1681_v39  ;;  %v2599_v8 = vadd.f32 %v2591_v28, %v1754_v62 }
 0xde4   :  { %v2552_v59 = vpop.f32.mrf.mxu0  ;;  %v2593_v5 = vpop.f32.mrf.mxu1 }
 0xde5   :  { %3556 = vpow2.f32 %v3129_v41  ;;  %v3130_v12 = vmul.f32 -1.442695, %v2597_v49  ;;  %v3131_v2 = vmul.f32 -1.442695, %v2599_v8  ;;  %v3340_v8 = vld [vmem:[#allocation8 + $0x38] sm:$0xff]  }
 0xde6   :  { %v2553_v56 = vpop.f32.mrf.mxu0  ;;  %v2594_v13 = vpop.f32.mrf.mxu1 }
 0xde7   :  { %3558 = vpow2.f32 %v3130_v12 }
 0xde8   :  { %3560 = vtanh.f32 %v2598_v20  ;;  %v3342_v20 = vld [vmem:[#allocation8 + $0x28] sm:$0xff]  }
 0xde9   :  { %3562 = vpow2.f32 %v3131_v2  ;;  %v3343_v2 = vld [vmem:[#allocation8 + $0x20] sm:$0xff]  }
 0xdf2   :  { %v3557_v14 = vpop.eup %3556 }
 0xdf3   :  { %v2603_v44 = vadd.f32 1.0, %v3557_v14  ;;  %v3344_v14 = vld [vmem:[#allocation8 + $0x18] sm:$0xff]  }
 0xdf4   :  { %v3559_v43 = vpop.eup %3558 }
 0xdf5   :  { %3564 = vrcp.f32 %v2603_v44  ;;  %v2609_v23 = vadd.f32 1.0, %v3559_v43  ;;  %v3561_v3 = vpop.eup %3560  ;;  %v3345_v44 = vld [vmem:[#allocation8 + $0x10] sm:$0xff]   ;;  %v3346_v43 = vld [vmem:[#allocation8 + $0x8] sm:$0xff]  }
 0xdf6   :  { %v3563_v46 = vpop.eup %3562 }
 0xdf7   :  { %3566 = vrcp.f32 %v2609_v23  ;;  %v2616_v39 = vadd.f32 1.0, %v3563_v46  ;;  %v3347_v23 = vld [vmem:[#allocation8] sm:$0xff]  }
 0xdf9   :  { %3568 = vrcp.f32 %v2616_v39 }
 0xe02   :  { %v3565_v38 = vpop.eup %3564 }
 0xe03   :  { %v2620_v53 = vmul.f32 %v3565_v38, %v3561_v3  ;;  %v5160_v3 = vld [vmem:[#allocation34_spill] sm:$0xff] }
 0xe04   :  { %v3567_v55 = vpop.eup %3566  ;;  %v1689_v46 = vadd.f32 %v5160_v3, %v4680_v61 }
 0xe05   :  { %v2619_v27 = vmul.f32 %v3567_v55, %v4891_v29  ;;  %v5161_v55 = vld [vmem:[#allocation35_spill] sm:$0xff] }
 0xe06   :  { %v3569_v26 = vpop.eup %3568  ;;  %v1691_v39 = vadd.f32 %v5161_v55, %v4688_v36 }
 0xe07   :  { %v4995_v40 = vadd.f32 %v2620_v53, %v2619_v27 }
 0xe09   :  { %3570 = vtanh.f32 %v4995_v40 }
 0xe16   :  { %v3571_v28 = vpop.eup %3570 }
 0xe17   :  { %v2623_v41 = vmul.f32 %v3571_v28, %v3569_v26 }
 0xe19   :  { %v2624_v49 = vpack.c.bf16 %v2623_v41, %v2623_v41 }
 0xe1b   :  { %2658 = vmatmul.mubr.bf16.vlgmr.msra.gmra.mxu0 %v2624_v49  ;;  %2699 = vmatmul.mubr.bf16.vlgmr.msra.gmra.mxu1 %v2624_v49 }
 0xe1c   :  { %2737 = vmatpush1.bf16.msra.mxu0 %v4894_v33  ;;  %2778 = vmatpush1.bf16.msra.mxu1 %v4897_v15 }
 0xe1d   :  { %2738 = vmatprep.subr.bf16.mxu0 %v4900_v63  ;;  %2779 = vmatprep.subr.bf16.mxu1 %v4903_v0  ;;  %v5157_v63 = vld [vmem:[#allocation30_spill] sm:$0xff] }
 0xe1e   :  { %2768 = vmatprep.mubr.bf16.mxu0 %v5095_v60  ;;  %2809 = vmatprep.mubr.bf16.mxu1 %v5095_v60  ;;  %v5156_v60 = vld [vmem:[#allocation31_spill] sm:$0xff]  ;;  %v1687_v0 = vadd.f32 %v5157_v63, %v4688_v36  ;;  %v5162_v63 = vld [vmem:[#allocation36_spill] sm:$0xff] }
 0xe1f   :  { %v1685_v29 = vadd.f32 %v5156_v60, %v4680_v61  ;;  %v1764_v61 = vadd.f32 %v5162_v63, %v4698_v54 }
 0xe20   :  { %2739 = vmatpush1.bf16.msra.mxu0 %v4908_v47  ;;  %2780 = vmatpush1.bf16.msra.mxu1 %v4911_v30 }
 0xe21   :  { %2740 = vmatprep.subr.bf16.mxu0 %v4914_v9  ;;  %2781 = vmatprep.subr.bf16.mxu1 %v4917_v7 }
 0xe24   :  { %2741 = vmatpush1.bf16.msra.mxu0 %v4920_v31  ;;  %2782 = vmatpush1.bf16.msra.mxu1 %v4923_v45 }
 0xe25   :  { %2742 = vmatprep.subr.bf16.mxu0 %v4926_v57  ;;  %2783 = vmatprep.subr.bf16.mxu1 %v4929_v4 }
 0xe28   :  { %2743 = vmatpush1.bf16.msra.mxu0 %v4932_v10  ;;  %2784 = vmatpush1.bf16.msra.mxu1 %v4935_v50 }
 0xe29   :  { %2744 = vmatprep.subr.bf16.mxu0 %v4938_v6  ;;  %2785 = vmatprep.subr.bf16.mxu1 %v4941_v51  ;;  %v5158_v6 = vld [vmem:[#allocation33_spill] sm:$0xff] }
 0xe2a   :  { %v1760_v51 = vadd.f32 %v5158_v6, %v4698_v54 }
 0xe2c   :  { %2745 = vmatpush1.bf16.msra.mxu0 %v4944_v25  ;;  %2786 = vmatpush1.bf16.msra.mxu1 %v4947_v34  ;;  %v5159_v34 = vld [vmem:[#allocation32_spill] sm:$0xff] }
 0xe2d   :  { %2746 = vmatprep.subr.bf16.mxu0 %v4950_v48  ;;  %2787 = vmatprep.subr.bf16.mxu1 %v4953_v32  ;;  %v1758_v48 = vadd.f32 %v5159_v34, %v4703_v24 }
 0xe30   :  { %2747 = vmatpush1.bf16.msra.mxu0 %v4956_v1  ;;  %2788 = vmatpush1.bf16.msra.mxu1 %v4959_v52 }
 0xe31   :  { %2748 = vmatprep.subr.bf16.mxu0 %v4962_v37  ;;  %2789 = vmatprep.subr.bf16.mxu1 %v4965_v35 }
 0xe34   :  { %2749 = vmatpush1.bf16.msra.mxu0 %v4968_v16  ;;  %2790 = vmatpush1.bf16.msra.mxu1 %v4971_v17 }
 0xe35   :  { %2750 = vmatprep.subr.bf16.mxu0 %v4974_v18  ;;  %2791 = vmatprep.subr.bf16.mxu1 %v4977_v19 }
 0xe38   :  { %2751 = vmatpush1.bf16.msra.mxu0 %v4980_v21  ;;  %2792 = vmatpush1.bf16.msra.mxu1 %v4983_v22 }
 0xe39   :  { %3156 = vmatprep.subr.bf16.mxu0 %v3785_v11 }
 0xedb   :  { %v2659_v33 = vpop.f32.mrf.mxu0  ;;  %v2700_v15 = vpop.f32.mrf.mxu1 }
 0xedc   :  { %v2707_v47 = vadd.f32 %v2659_v33, %v1685_v29  ;;  %v2709_v32 = vadd.f32 %v2700_v15, %v1758_v48 }
 0xedd   :  { %v2661_v30 = vpop.f32.mrf.mxu0  ;;  %v2702_v9 = vpop.f32.mrf.mxu1 }
 0xede   :  { %v3132_v7 = vmul.f32 -1.442695, %v2707_v47  ;;  %v2708_v31 = vadd.f32 %v2661_v30, %v1687_v0  ;;  %v2710_v25 = vadd.f32 %v2702_v9, %v1760_v51  ;;  %v5163_v47 = vld [vmem:[#allocation15_spill] sm:$0xff] }
 0xedf   :  { %v2663_v45 = vpop.f32.mrf.mxu0  ;;  %v2704_v57 = vpop.f32.mrf.mxu1  ;;  %v1762_v30 = vadd.f32 %v5163_v47, %v4703_v24 }
 0xee0   :  { %3572 = vpow2.f32 %v3132_v7  ;;  %v3133_v4 = vmul.f32 -1.442695, %v2708_v31  ;;  %v3134_v1 = vmul.f32 -1.442695, %v2710_v25 }
 0xee1   :  { %v2664_v10 = vpop.f32.mrf.mxu0  ;;  %v2705_v50 = vpop.f32.mrf.mxu1 }
 0xee2   :  { %3574 = vpow2.f32 %v3133_v4 }
 0xee3   :  { %3576 = vtanh.f32 %v2709_v32 }
 0xee4   :  { %3578 = vpow2.f32 %v3134_v1 }
 0xeed   :  { %v3573_v52 = vpop.eup %3572 }
 0xeee   :  { %v2714_v37 = vadd.f32 1.0, %v3573_v52  ;;  %v3138_v52 = vld [vmem:[%s5065_s8] ss:$0 sm:$0xff] }
 0xeef   :  { %v3575_v35 = vpop.eup %3574 }
 0xef0   :  { %3580 = vrcp.f32 %v2714_v37  ;;  %v2720_v16 = vadd.f32 1.0, %v3575_v35  ;;  %v3577_v17 = vpop.eup %3576 }
 0xef1   :  { %v3579_v18 = vpop.eup %3578 }
 0xef2   :  { %3582 = vrcp.f32 %v2720_v16  ;;  %v2727_v59 = vadd.f32 1.0, %v3579_v18 }
 0xef4   :  { %3584 = vrcp.f32 %v2727_v59 }
 0xefd   :  { %v3581_v19 = vpop.eup %3580 }
 0xefe   :  { %v2731_v21 = vmul.f32 %v3581_v19, %v3577_v17 }
 0xeff   :  { %v3583_v22 = vpop.eup %3582 }
 0xf00   :  { %v2730_v5 = vmul.f32 %v3583_v22, %v4995_v40 }
 0xf01   :  { %v3585_v56 = vpop.eup %3584 }
 0xf02   :  { %v5039_v12 = vadd.f32 %v2731_v21, %v2730_v5 }
 0xf04   :  { %3586 = vtanh.f32 %v5039_v12 }
 0xf11   :  { %v3587_v13 = vpop.eup %3586 }
 0xf12   :  { %v2734_v58 = vmul.f32 %v3587_v13, %v3585_v56 }
 0xf14   :  { %v2735_v62 = vpack.c.bf16 %v2734_v58, %v2734_v58 }
 0xf16   :  { %2769 = vmatmul.mubr.bf16.vlgmr.msra.gmra.mxu0 %v2735_v62  ;;  %2810 = vmatmul.mubr.bf16.vlgmr.msra.gmra.mxu1 %v2735_v62 }
 0xf17   :  { %3157 = vmatpush3.bf16.msra.mxu0 %v3340_v8  ;;  %3172 = vmatprep.mubr.msk.bf16.mxu0 %vm3786_vm2, %v3785_v11 }
 0xf18   :  { %3158 = vmatprep.subr.bf16.mxu0 %v3785_v11 }
 0xf1b   :  { %3159 = vmatpush3.bf16.msra.mxu0 %v3341_v42 }
 0xf1c   :  { %3160 = vmatprep.subr.bf16.mxu0 %v3785_v11 }
 0xf1f   :  { %3161 = vmatpush3.bf16.msra.mxu0 %v3342_v20 }
 0xf20   :  { %3162 = vmatprep.subr.bf16.mxu0 %v3785_v11 }
 0xf23   :  { %3163 = vmatpush3.bf16.msra.mxu0 %v3343_v2 }
 0xf24   :  { %3164 = vmatprep.subr.bf16.mxu0 %v3785_v11 }
 0xf27   :  { %3165 = vmatpush3.bf16.msra.mxu0 %v3344_v14 }
 0xf28   :  { %3166 = vmatprep.subr.bf16.mxu0 %v3785_v11 }
 0xf2b   :  { %3167 = vmatpush3.bf16.msra.mxu0 %v3345_v44 }
 0xf2c   :  { %3168 = vmatprep.subr.bf16.mxu0 %v3785_v11 }
 0xf2f   :  { %3169 = vmatpush3.bf16.msra.mxu0 %v3346_v43 }
 0xf30   :  { %3170 = vmatprep.subr.bf16.mxu0 %v3785_v11 }
 0xf33   :  { %3171 = vmatpush3.bf16.msra.mxu0 %v3347_v23 }
 0xfd6   :  { %v2770_v38 = vpop.f32.mrf.mxu0  ;;  %v2811_v53 = vpop.f32.mrf.mxu1 }
 0xfd7   :  { %v2818_v27 = vadd.f32 %v2770_v38, %v1689_v46  ;;  %v2820_v36 = vadd.f32 %v2811_v53, %v1762_v30 }
 0xfd8   :  { %v2772_v40 = vpop.f32.mrf.mxu0  ;;  %v2813_v26 = vpop.f32.mrf.mxu1 }
 0xfd9   :  { %v3135_v28 = vmul.f32 -1.442695, %v2818_v27  ;;  %v2819_v41 = vadd.f32 %v2772_v40, %v1691_v39  ;;  %v2821_v0 = vadd.f32 %v2813_v26, %v1764_v61 }
 0xfda   :  { %v2774_v49 = vpop.f32.mrf.mxu0  ;;  %v2815_v60 = vpop.f32.mrf.mxu1 }
 0xfdb   :  { %3588 = vpow2.f32 %v3135_v28  ;;  %v3136_v29 = vmul.f32 -1.442695, %v2819_v41  ;;  %v3137_v9 = vmul.f32 -1.442695, %v2821_v0 }
 0xfdc   :  { %v2775_v33 = vpop.f32.mrf.mxu0  ;;  %v2816_v15 = vpop.f32.mrf.mxu1 }
 0xfdd   :  { %3590 = vpow2.f32 %v3136_v29 }
 0xfde   :  { %3592 = vtanh.f32 %v2820_v36 }
 0xfdf   :  { %3594 = vpow2.f32 %v3137_v9 }
 0xfe8   :  { %v3589_v7 = vpop.eup %3588 }
 0xfe9   :  { %v2825_v31 = vadd.f32 1.0, %v3589_v7 }
 0xfea   :  { %v3591_v45 = vpop.eup %3590 }
 0xfeb   :  { %3596 = vrcp.f32 %v2825_v31  ;;  %v2831_v57 = vadd.f32 1.0, %v3591_v45  ;;  %v3593_v4 = vpop.eup %3592 }
 0xfec   :  { %v3595_v10 = vpop.eup %3594 }
 0xfed   :  { %3598 = vrcp.f32 %v2831_v57  ;;  %v2838_v54 = vadd.f32 1.0, %v3595_v10 }
 0xfef   :  { %3600 = vrcp.f32 %v2838_v54 }
 0xff8   :  { %v3597_v50 = vpop.eup %3596 }
 0xff9   :  { %v2842_v6 = vmul.f32 %v3597_v50, %v3593_v4 }
 0xffa   :  { %v3599_v51 = vpop.eup %3598 }
 0xffb   :  { %v2841_v25 = vmul.f32 %v3599_v51, %v5039_v12 }
 0xffc   :  { %v3601_v24 = vpop.eup %3600 }
 0xffd   :  { %v2843_v34 = vadd.f32 %v2842_v6, %v2841_v25 }
 0xfff   :  { %3602 = vtanh.f32 %v2843_v34 }
0x100c   :  { %v3603_v48 = vpop.eup %3602 }
0x100d   :  { %v2845_v32 = vmul.f32 %v3603_v48, %v3601_v24 }
0x100f   :  { %v2846_v1 = vpack.c.bf16 %v2845_v32, %v2845_v32 }
0x1011   :  { %3173 = vmatmul.mubr.bf16.vlgmr.msra.gmra.mxu0 %v2846_v1 }
0x10d1   :  { %v2952_v37 = vpop.f32.mrf.mxu0 }
0x10d2   :  { %v2953_v35 = vadd.f32 %v3138_v52, %v2952_v37 }
0x10d3   :  { %v3174_v16 = vpop.f32.mrf.mxu0 }
0x10d4   :  { %2958 = vst [vmem:[#allocation10] sm:$0xff] %v2953_v35 }
0x10d5   :  { %v2955_v17 = vpop.f32.mrf.mxu0 }
0x10d6   :  { %3759 = shalt.err (!%p3756_p10)
}
0x10d7   :  { %2968 = dma.vmem_to_hbm [thread:$0]  %s2966_s23, 128, %s5066_s9, [#allocation4]   ;;  %v3175_v18 = vpop.f32.mrf.mxu0 }
0x10d8   :  { %3774 = dma.done.wait [#allocation4], 128  }
0x10d9   :  { %3775 = vsyncadd [#allocation4], 4294967168 }
0x10da   :  { %2972 = vsyncpa [#allocation3], 1 }
0x10db   :  { %2973 = vsyncpa [#allocation6], 1 }
0x10dc   :  { %2974 = vsyncpa [#allocation9], 1 }
0x10dd   :  { %2975 = vsyncpa [#allocation4], 1 }

</bundles_post_ra>
